<compile_context>
chip_gen: v6e
topology: v6e:2x2x1
jax: 0.10.0
libtpu: 0.0.40
codegen_flags: <defaults>
</compile_context>

<pallas_src>
import numpy as np
import jax
import jax.numpy as jnp
from jax.experimental import pallas as pl
from jax.experimental.pallas import tpu as pltpu

# ---- module configuration (consistent with UTimeEncoder.__init__) -----------
IN_CHANNELS = 4
DEPTH = 3
POOLS = (2, 2, 2)
FILTERS = 8
KERNEL_SIZE = 5
DILATION = 1
PADDING = 2          # "same" padding for k=5, dilation=1
COMPLEXITY_FACTOR = 1.0
BN_EPS = 1e-5


def _channels():
    chans, f = [], FILTERS
    for i in range(DEPTH):
        if i > 0:
            f *= 2
        chans.append(int(f * COMPLEXITY_FACTOR))
    return chans


CHANNELS = _channels()


def _round_up(x, m):
    return (x + m - 1) // m * m


def _conv_out_len(l):
    return l + 2 * PADDING - DILATION * (KERNEL_SIZE - 1)


# ------------------------------ fused kernel ----------------------------------
def _encoder_kernel(x_ref, *refs):
    """Whole UTimeEncoder forward in one kernel, NCL layout end-to-end.

    x_ref : (B, Cin, L) NCL input.
    refs  : DEPTH*8 parameter refs [w0,b0,g0,be0,w1,b1,g1,be1] per block
            (weights pre-flattened to (Cout, K*Cin_pad), k-major; bias/gamma/
            beta as (Cout, 1)), then outputs [final, out0..out{DEPTH-1}] (NCL).
    """
    n_p = DEPTH * 8
    params = refs[:n_p]
    final_ref = refs[n_p]
    enc_out_refs = refs[n_p + 1:n_p + 1 + DEPTH]
    B = x_ref.shape[0]
    f32 = jnp.float32

    def zero_pad_buffer_edges(pad_ref, c_valid):
        """Zero the 2*PADDING halo lanes (and any channel-padding rows) once.
        The interior is written directly by the producer, never copied."""
        _, c_rows, lpad = pad_ref.shape
        zh = jnp.zeros((B, c_rows, PADDING), f32)
        pad_ref[:, :, :PADDING] = zh
        pad_ref[:, :, lpad - PADDING:] = zh
        if c_valid < c_rows:   # uninitialised VMEM may hold NaNs -> must zero
            pad_ref[:, c_valid:, :] = jnp.zeros((B, c_rows - c_valid, lpad), f32)

    def conv_relu_bn(src_ref, dst_ref, dst_off, w_ref, b_ref, g_ref, be_ref, l_out):
        """Conv1d -> ReLU -> training-mode BatchNorm1d, channels on sublanes.

        src_ref: (B, Cin_pad, l_out + 2*PADDING) padded input buffer.
        dst_ref: result for batch bi written at [bi, :Cout, dst_off:dst_off+l_out].
        """
        w = w_ref[...]        # (Cout, K*Cin_pad), k-major flattened, hoisted
        bias = b_ref[...]     # (Cout, 1)
        gamma = g_ref[...]
        beta = be_ref[...]
        c_out = w.shape[0]

        ys = []
        for bi in range(B):
            pv = src_ref[bi, :, :]                                 # (Cin_pad, Lpad)
            # im2col: one concatenated (K*Cin_pad, l_out) operand -> single MXU
            # dot per batch (contraction 5x deeper than the old K-dot loop).
            taps = jnp.concatenate(
                [pv[:, k * DILATION:k * DILATION + l_out]
                 for k in range(KERNEL_SIZE)], axis=0)
            acc = jnp.dot(w, taps, preferred_element_type=f32)     # default prec.
            ys.append(jnp.maximum(acc + bias, 0.0))                # bias+ReLU, f32

        # BatchNorm1d batch statistics over (batch, length); two-pass so the
        # variance cannot go negative.  Exact f32 lane reduces.
        # TODO(synk): at production B*L fold these into ones-vector MXU dots /
        # per-tile partial sums (the L-tiled variant gets this for free).
        inv_n = 1.0 / float(B * l_out)
        mean = sum(jnp.sum(y, axis=-1, keepdims=True) for y in ys) * inv_n
        ds = [y - mean for y in ys]
        var = sum(jnp.sum(d * d, axis=-1, keepdims=True) for d in ds) * inv_n
        scale = gamma * jax.lax.rsqrt(var + BN_EPS)
        for bi in range(B):
            dst_ref[bi, :c_out, dst_off:dst_off + l_out] = ds[bi] * scale + beta

    def pool_into(src_ref, pool, dst_ref, dst_off):
        """F.max_pool1d(kernel=stride=pool, floor mode) read straight from the
        source ref, written column-by-column into dst_ref at lane offset dst_off.
        Only contiguous single-lane slices -> no strided reads / lane reshapes."""
        c_src = src_ref.shape[1]
        l_src = src_ref.shape[2]
        sv = src_ref[...]                                          # (B, C, L)
        for j in range(l_src // pool):
            win = sv[:, :, j * pool:j * pool + 1]
            for r in range(1, pool):
                win = jnp.maximum(win, sv[:, :, j * pool + r:j * pool + r + 1])
            dst_ref[:, :c_src, dst_off + j:dst_off + j + 1] = win

    c_in = IN_CHANNELS
    lh = x_ref.shape[2]
    for i in range(DEPTH):
        if i > 0:
            lh = lh // POOLS[i - 1]
        c_out = CHANNELS[i]
        l_mid = _conv_out_len(lh)
        l_out = _conv_out_len(l_mid)
        w0, b0, g0, be0, w1, b1, g1, be1 = params[8 * i:8 * i + 8]

        def block(pad0_ref, pad1_ref):
            # Stage the block input directly inside pad0's interior.
            zero_pad_buffer_edges(pad0_ref, c_in)
            if i == 0:
                pad0_ref[:, :c_in, PADDING:PADDING + lh] = x_ref[...]
            else:
                pool_into(enc_out_refs[i - 1], POOLS[i - 1], pad0_ref, PADDING)

            # conv0 -> ReLU -> BN, written straight into pad1's interior.
            zero_pad_buffer_edges(pad1_ref, c_out)
            conv_relu_bn(pad0_ref, pad1_ref, PADDING, w0, b0, g0, be0, l_mid)
            # conv1 -> ReLU -> BN, written straight to the NCL encoder output.
            conv_relu_bn(pad1_ref, enc_out_refs[i], 0, w1, b1, g1, be1, l_out)

        # Sequential run_scoped regions reuse the same VMEM offset: peak
        # footprint = max over blocks, not the sum of all 6 padded buffers.
        pl.run_scoped(
            block,
            pltpu.VMEM((B, _round_up(c_in, 8), lh + 2 * PADDING), f32),
            pltpu.VMEM((B, _round_up(c_out, 8), l_mid + 2 * PADDING), f32),
        )
        c_in = c_out
        lh = l_out

    # Final max-pool of the last block output, written straight to final_ref.
    pool_into(enc_out_refs[DEPTH - 1], POOLS[-1], final_ref, 0)


# ------------------------------- wrapper ---------------------------------------
def _flatten_conv_weight(w, c_in):
    """(Cout, Cin, K) PyTorch Conv1d weight -> (Cout, K*Cin_pad), k-major, with
    zero-padded channel columns so every in-kernel sublane concat is aligned."""
    c_out = w.shape[0]
    c_in_pad = _round_up(c_in, 8)
    wt = jnp.transpose(w, (0, 2, 1))                     # (Cout, K, Cin)
    if c_in_pad != c_in:
        wt = jnp.pad(wt, ((0, 0), (0, 0), (0, c_in_pad - c_in)))
    return wt.reshape(c_out, KERNEL_SIZE * c_in_pad)


def utime_encoder_forward(x_ncl, params):
    """x_ncl: (B, C_in, L) like PyTorch. Returns (final_pooled, [block outputs]) in NCL."""
    B, c_in, L = x_ncl.shape
    f32 = jnp.float32

    flat, enc_shapes = [], []
    ci, lh = c_in, L
    for i in range(DEPTH):
        if i > 0:
            lh = lh // POOLS[i - 1]
        co = CHANNELS[i]
        p = params[i]
        flat += [_flatten_conv_weight(p['w0'], ci),
                 p['b0'].reshape(co, 1), p['g0'].reshape(co, 1), p['be0'].reshape(co, 1),
                 _flatten_conv_weight(p['w1'], co),
                 p['b1'].reshape(co, 1), p['g1'].reshape(co, 1), p['be1'].reshape(co, 1)]
        lh = _conv_out_len(_conv_out_len(lh))
        enc_shapes.append(jax.ShapeDtypeStruct((B, co, lh), f32))
        ci = co

    final_shape = jax.ShapeDtypeStruct((B, CHANNELS[-1], lh // POOLS[-1]), f32)

    # Gridless single call at these toy sizes (see TODO at top for the L-tiled,
    # "parallel"-gridded production variant); VMEM limit set explicitly.
    res = pl.pallas_call(
        _encoder_kernel,
        out_shape=tuple([final_shape] + enc_shapes),
        compiler_params=pltpu.CompilerParams(vmem_limit_bytes=32 * 1024 * 1024),
    )(x_ncl, *flat)
    return res[0], list(res[1:])


def init_params(key):
    """Deterministic synthetic parameters with PyTorch shapes:
    Conv1d weight (Cout, Cin, K), bias (Cout,), BatchNorm gamma=1, beta=0."""
    params = []
    c_in = IN_CHANNELS
    for i in range(DEPTH):
        c_out = CHANNELS[i]
        k0, k1, k2, k3, key = jax.random.split(key, 5)
        params.append(dict(
            w0=0.1 * jax.random.normal(k0, (c_out, c_in, KERNEL_SIZE), jnp.float32),
            b0=0.05 * jax.random.normal(k1, (c_out,), jnp.float32),
            g0=jnp.ones((c_out,), jnp.float32),
            be0=jnp.zeros((c_out,), jnp.float32),
            w1=0.1 * jax.random.normal(k2, (c_out, c_out, KERNEL_SIZE), jnp.float32),
            b1=0.05 * jax.random.normal(k3, (c_out,), jnp.float32),
            g1=jnp.ones((c_out,), jnp.float32),
            be1=jnp.zeros((c_out,), jnp.float32),
        ))
        c_in = c_out
    return params


# --------------------------- pure-JAX f32 reference ----------------------------
def _block_ref(x, w, b, g, be):
    y = jax.lax.conv_general_dilated(
        x, w, window_strides=(1,), padding=[(PADDING, PADDING)],
        rhs_dilation=(DILATION,), dimension_numbers=('NCW', 'OIW', 'NCW'),
        precision=jax.lax.Precision.HIGHEST)
    y = jnp.maximum(y + b[None, :, None], 0.0)
    mean = jnp.mean(y, axis=(0, 2), keepdims=True)
    var = jnp.mean((y - mean) ** 2, axis=(0, 2), keepdims=True)
    return (y - mean) * jax.lax.rsqrt(var + BN_EPS) * g[None, :, None] + be[None, :, None]


def _maxpool_ref(x, pool):
    B, C, L = x.shape
    Lo = L // pool
    return jnp.max(x[:, :, :Lo * pool].reshape(B, C, Lo, pool), axis=-1)


def _forward_ref(x_ncl, params):
    h = x_ncl
    outs = []
    for i in range(DEPTH):
        if i > 0:
            h = _maxpool_ref(h, POOLS[i - 1])
        p = params[i]
        h = _block_ref(h, p['w0'], p['b0'], p['g0'], p['be0'])
        h = _block_ref(h, p['w1'], p['b1'], p['g1'], p['be1'])
        outs.append(h)
    return _maxpool_ref(outs[-1], POOLS[-1]), outs


# ---------------------------------- main ---------------------------------------
if __name__ == "__main__":
    key = jax.random.PRNGKey(0)
    kx, kp = jax.random.split(key)

    B, L = 2, 16
    x = jax.random.normal(kx, (B, IN_CHANNELS, L), jnp.float32)   # NCL like PyTorch
    params = init_params(kp)

    final, outs = utime_encoder_forward(x, params)
    jax.block_until_ready(final)
    for o in outs:
        jax.block_until_ready(o)

    ref_final, ref_outs = _forward_ref(x, params)
    # The kernel's dots run at the MXU's default (bf16-input) precision per the
    # perf review; the reference stays full-f32, so compare with loose tolerance.
    np.testing.assert_allclose(np.asarray(final), np.asarray(ref_final),
                               rtol=5e-2, atol=5e-2)
    for got, want in zip(outs, ref_outs):
        np.testing.assert_allclose(np.asarray(got), np.asarray(want),
                                   rtol=5e-2, atol=5e-2)

    # shape sanity: channels = filters*2^(depth-1)*cf, length = L / prod(pools)
    assert final.shape == (B, CHANNELS[-1], L // (POOLS[0] * POOLS[1] * POOLS[2]))
    assert [o.shape for o in outs] == [(B, 8, 16), (B, 16, 8), (B, 32, 4)]
    print("KERNEL_OK")
</pallas_src>

<mosaic_0001>
module attributes {stable_mosaic.version = 11 : i64} {
  func.func @_encoder_kernel(%arg0: memref<2x4x16xf32, #tpu.memory_space<vmem>>, %arg1: memref<8x40xf32, #tpu.memory_space<vmem>>, %arg2: memref<8x1xf32, #tpu.memory_space<vmem>>, %arg3: memref<8x1xf32, #tpu.memory_space<vmem>>, %arg4: memref<8x1xf32, #tpu.memory_space<vmem>>, %arg5: memref<8x40xf32, #tpu.memory_space<vmem>>, %arg6: memref<8x1xf32, #tpu.memory_space<vmem>>, %arg7: memref<8x1xf32, #tpu.memory_space<vmem>>, %arg8: memref<8x1xf32, #tpu.memory_space<vmem>>, %arg9: memref<16x40xf32, #tpu.memory_space<vmem>>, %arg10: memref<16x1xf32, #tpu.memory_space<vmem>>, %arg11: memref<16x1xf32, #tpu.memory_space<vmem>>, %arg12: memref<16x1xf32, #tpu.memory_space<vmem>>, %arg13: memref<16x80xf32, #tpu.memory_space<vmem>>, %arg14: memref<16x1xf32, #tpu.memory_space<vmem>>, %arg15: memref<16x1xf32, #tpu.memory_space<vmem>>, %arg16: memref<16x1xf32, #tpu.memory_space<vmem>>, %arg17: memref<32x80xf32, #tpu.memory_space<vmem>>, %arg18: memref<32x1xf32, #tpu.memory_space<vmem>>, %arg19: memref<32x1xf32, #tpu.memory_space<vmem>>, %arg20: memref<32x1xf32, #tpu.memory_space<vmem>>, %arg21: memref<32x160xf32, #tpu.memory_space<vmem>>, %arg22: memref<32x1xf32, #tpu.memory_space<vmem>>, %arg23: memref<32x1xf32, #tpu.memory_space<vmem>>, %arg24: memref<32x1xf32, #tpu.memory_space<vmem>>, %arg25: memref<2x32x2xf32, #tpu.memory_space<vmem>>, %arg26: memref<2x8x16xf32, #tpu.memory_space<vmem>>, %arg27: memref<2x16x8xf32, #tpu.memory_space<vmem>>, %arg28: memref<2x32x4xf32, #tpu.memory_space<vmem>>) attributes {dimension_semantics = [], scalar_prefetch = 0 : i64, scratch_operands = 0 : i64, tpu.core_type = #tpu.core_type<tc>} {
    "tpu.region"() ({
      %alloca = memref.alloca() : memref<2x8x20xf32, #tpu.memory_space<vmem>>
      %alloca_7 = memref.alloca() : memref<2x8x20xf32, #tpu.memory_space<vmem>>
      %cst = arith.constant 0.000000e+00 : f32
      %9 = vector.broadcast %cst : f32 to vector<2x8x2xf32>
      %c0_8 = arith.constant 0 : index
      %c0_9 = arith.constant 0 : index
      %c0_10 = arith.constant 0 : index
      %10 = vector.load %alloca[%c0_8, %c0_9, %c0_10] : memref<2x8x20xf32, #tpu.memory_space<vmem>>, vector<2x8x2xf32>
      tpu.vector_store %alloca[%c0_8, %c0_9, %c0_10], %9 {strides = array<i32>} : memref<2x8x20xf32, #tpu.memory_space<vmem>>, vector<2x8x2xf32>,
      %c0_11 = arith.constant 0 : index
      %c0_12 = arith.constant 0 : index
      %c18 = arith.constant 18 : index
      %11 = vector.load %alloca[%c0_11, %c0_12, %c18] : memref<2x8x20xf32, #tpu.memory_space<vmem>>, vector<2x8x2xf32>
      tpu.vector_store %alloca[%c0_11, %c0_12, %c18], %9 {strides = array<i32>} : memref<2x8x20xf32, #tpu.memory_space<vmem>>, vector<2x8x2xf32>,
      %cst_13 = arith.constant 0.000000e+00 : f32
      %12 = vector.broadcast %cst_13 : f32 to vector<2x4x20xf32>
      %c0_14 = arith.constant 0 : index
      %c4 = arith.constant 4 : index
      %c0_15 = arith.constant 0 : index
      %13 = vector.load %alloca[%c0_14, %c4, %c0_15] : memref<2x8x20xf32, #tpu.memory_space<vmem>>, vector<2x4x20xf32>
      tpu.vector_store %alloca[%c0_14, %c4, %c0_15], %12 {strides = array<i32>} : memref<2x8x20xf32, #tpu.memory_space<vmem>>, vector<2x4x20xf32>,
      %c0_16 = arith.constant 0 : index
      %c0_17 = arith.constant 0 : index
      %c0_18 = arith.constant 0 : index
      %14 = vector.load %arg0[%c0_16, %c0_17, %c0_18] : memref<2x4x16xf32, #tpu.memory_space<vmem>>, vector<2x4x16xf32>
      %c0_19 = arith.constant 0 : index
      %c0_20 = arith.constant 0 : index
      %c2 = arith.constant 2 : index
      %15 = vector.load %alloca[%c0_19, %c0_20, %c2] : memref<2x8x20xf32, #tpu.memory_space<vmem>>, vector<2x4x16xf32>
      tpu.vector_store %alloca[%c0_19, %c0_20, %c2], %14 {strides = array<i32>} : memref<2x8x20xf32, #tpu.memory_space<vmem>>, vector<2x4x16xf32>,
      %cst_21 = arith.constant 0.000000e+00 : f32
      %16 = vector.broadcast %cst_21 : f32 to vector<2x8x2xf32>
      %c0_22 = arith.constant 0 : index
      %c0_23 = arith.constant 0 : index
      %c0_24 = arith.constant 0 : index
      %17 = vector.load %alloca_7[%c0_22, %c0_23, %c0_24] : memref<2x8x20xf32, #tpu.memory_space<vmem>>, vector<2x8x2xf32>
      tpu.vector_store %alloca_7[%c0_22, %c0_23, %c0_24], %16 {strides = array<i32>} : memref<2x8x20xf32, #tpu.memory_space<vmem>>, vector<2x8x2xf32>,
      %c0_25 = arith.constant 0 : index
      %c0_26 = arith.constant 0 : index
      %c18_27 = arith.constant 18 : index
      %18 = vector.load %alloca_7[%c0_25, %c0_26, %c18_27] : memref<2x8x20xf32, #tpu.memory_space<vmem>>, vector<2x8x2xf32>
      tpu.vector_store %alloca_7[%c0_25, %c0_26, %c18_27], %16 {strides = array<i32>} : memref<2x8x20xf32, #tpu.memory_space<vmem>>, vector<2x8x2xf32>,
      %c0_28 = arith.constant 0 : index
      %c0_29 = arith.constant 0 : index
      %19 = vector.load %arg1[%c0_28, %c0_29] : memref<8x40xf32, #tpu.memory_space<vmem>>, vector<8x40xf32>
      %c0_30 = arith.constant 0 : index
      %c0_31 = arith.constant 0 : index
      %20 = vector.load %arg2[%c0_30, %c0_31] : memref<8x1xf32, #tpu.memory_space<vmem>>, vector<8x1xf32>
      %c0_32 = arith.constant 0 : index
      %c0_33 = arith.constant 0 : index
      %21 = vector.load %arg3[%c0_32, %c0_33] : memref<8x1xf32, #tpu.memory_space<vmem>>, vector<8x1xf32>
      %c0_34 = arith.constant 0 : index
      %c0_35 = arith.constant 0 : index
      %22 = vector.load %arg4[%c0_34, %c0_35] : memref<8x1xf32, #tpu.memory_space<vmem>>, vector<8x1xf32>
      %c0_36 = arith.constant 0 : index
      %c0_37 = arith.constant 0 : index
      %c0_38 = arith.constant 0 : index
      %23 = vector.load %alloca[%c0_36, %c0_37, %c0_38] : memref<2x8x20xf32, #tpu.memory_space<vmem>>, vector<1x8x20xf32>
      %24 = vector.shape_cast %23 : vector<1x8x20xf32> to vector<8x20xf32>
      %25 = vector.extract_strided_slice %24 {offsets = [0, 0], sizes = [8, 16], strides = [1, 1]} : vector<8x20xf32> to vector<8x16xf32>
      %26 = vector.extract_strided_slice %24 {offsets = [0, 1], sizes = [8, 16], strides = [1, 1]} : vector<8x20xf32> to vector<8x16xf32>
      %27 = vector.extract_strided_slice %24 {offsets = [0, 2], sizes = [8, 16], strides = [1, 1]} : vector<8x20xf32> to vector<8x16xf32>
      %28 = vector.extract_strided_slice %24 {offsets = [0, 3], sizes = [8, 16], strides = [1, 1]} : vector<8x20xf32> to vector<8x16xf32>
      %29 = vector.extract_strided_slice %24 {offsets = [0, 4], sizes = [8, 16], strides = [1, 1]} : vector<8x20xf32> to vector<8x16xf32>
      %30 = tpu.concatenate %25, %26, %27, %28, %29 in 0 : vector<8x16xf32>, vector<8x16xf32>, vector<8x16xf32>, vector<8x16xf32>, vector<8x16xf32> -> vector<40x16xf32>
      %cst_39 = arith.constant dense<0.000000e+00> : vector<8x16xf32>
      %31 = tpu.matmul %19, %30, %cst_39 {dimension_numbers = #tpu.dot_dimension_numbers<[1], [0], [0], [1], [0, 0, 1, 1], [], []>} : vector<8x40xf32>, vector<40x16xf32>, vector<8x16xf32> -> vector<8x16xf32>
      %32 = vector.broadcast %20 : vector<8x1xf32> to vector<8x16xf32>
      %33 = arith.addf %31, %32 : vector<8x16xf32>
      %cst_40 = arith.constant 0.000000e+00 : f32
      %34 = vector.broadcast %cst_40 : f32 to vector<8x16xf32>
      %35 = arith.maximumf %33, %34 : vector<8x16xf32>
      %c1_41 = arith.constant 1 : index
      %c0_42 = arith.constant 0 : index
      %c0_43 = arith.constant 0 : index
      %36 = vector.load %alloca[%c1_41, %c0_42, %c0_43] : memref<2x8x20xf32, #tpu.memory_space<vmem>>, vector<1x8x20xf32>
      %37 = vector.shape_cast %36 : vector<1x8x20xf32> to vector<8x20xf32>
      %38 = vector.extract_strided_slice %37 {offsets = [0, 0], sizes = [8, 16], strides = [1, 1]} : vector<8x20xf32> to vector<8x16xf32>
      %39 = vector.extract_strided_slice %37 {offsets = [0, 1], sizes = [8, 16], strides = [1, 1]} : vector<8x20xf32> to vector<8x16xf32>
      %40 = vector.extract_strided_slice %37 {offsets = [0, 2], sizes = [8, 16], strides = [1, 1]} : vector<8x20xf32> to vector<8x16xf32>
      %41 = vector.extract_strided_slice %37 {offsets = [0, 3], sizes = [8, 16], strides = [1, 1]} : vector<8x20xf32> to vector<8x16xf32>
      %42 = vector.extract_strided_slice %37 {offsets = [0, 4], sizes = [8, 16], strides = [1, 1]} : vector<8x20xf32> to vector<8x16xf32>
      %43 = tpu.concatenate %38, %39, %40, %41, %42 in 0 : vector<8x16xf32>, vector<8x16xf32>, vector<8x16xf32>, vector<8x16xf32>, vector<8x16xf32> -> vector<40x16xf32>
      %cst_44 = arith.constant dense<0.000000e+00> : vector<8x16xf32>
      %44 = tpu.matmul %19, %43, %cst_44 {dimension_numbers = #tpu.dot_dimension_numbers<[1], [0], [0], [1], [0, 0, 1, 1], [], []>} : vector<8x40xf32>, vector<40x16xf32>, vector<8x16xf32> -> vector<8x16xf32>
      %45 = vector.broadcast %20 : vector<8x1xf32> to vector<8x16xf32>
      %46 = arith.addf %44, %45 : vector<8x16xf32>
      %cst_45 = arith.constant 0.000000e+00 : f32
      %47 = vector.broadcast %cst_45 : f32 to vector<8x16xf32>
      %48 = arith.maximumf %46, %47 : vector<8x16xf32>
      %cst_46 = arith.constant dense<0.000000e+00> : vector<8xf32>
      %49 = vector.multi_reduction <add>, %35, %cst_46 [1] : vector<8x16xf32> to vector<8xf32>
      %50 = vector.shape_cast %49 : vector<8xf32> to vector<8x1xf32>
      %cst_47 = arith.constant 0.000000e+00 : f32
      %51 = vector.broadcast %cst_47 : f32 to vector<8x1xf32>
      %52 = arith.addf %51, %50 : vector<8x1xf32>
      %cst_48 = arith.constant dense<0.000000e+00> : vector<8xf32>
      %53 = vector.multi_reduction <add>, %48, %cst_48 [1] : vector<8x16xf32> to vector<8xf32>
      %54 = vector.shape_cast %53 : vector<8xf32> to vector<8x1xf32>
      %55 = arith.addf %52, %54 : vector<8x1xf32>
      %cst_49 = arith.constant 3.125000e-02 : f32
      %56 = vector.broadcast %cst_49 : f32 to vector<8x1xf32>
      %57 = arith.mulf %55, %56 : vector<8x1xf32>
      %58 = vector.broadcast %57 : vector<8x1xf32> to vector<8x16xf32>
      %59 = arith.subf %35, %58 : vector<8x16xf32>
      %60 = vector.broadcast %57 : vector<8x1xf32> to vector<8x16xf32>
      %61 = arith.subf %48, %60 : vector<8x16xf32>
      %62 = arith.mulf %59, %59 : vector<8x16xf32>
      %cst_50 = arith.constant dense<0.000000e+00> : vector<8xf32>
      %63 = vector.multi_reduction <add>, %62, %cst_50 [1] : vector<8x16xf32> to vector<8xf32>
      %64 = vector.shape_cast %63 : vector<8xf32> to vector<8x1xf32>
      %cst_51 = arith.constant 0.000000e+00 : f32
      %65 = vector.broadcast %cst_51 : f32 to vector<8x1xf32>
      %66 = arith.addf %65, %64 : vector<8x1xf32>
      %67 = arith.mulf %61, %61 : vector<8x16xf32>
      %cst_52 = arith.constant dense<0.000000e+00> : vector<8xf32>
      %68 = vector.multi_reduction <add>, %67, %cst_52 [1] : vector<8x16xf32> to vector<8xf32>
      %69 = vector.shape_cast %68 : vector<8xf32> to vector<8x1xf32>
      %70 = arith.addf %66, %69 : vector<8x1xf32>
      %cst_53 = arith.constant 3.125000e-02 : f32
      %71 = vector.broadcast %cst_53 : f32 to vector<8x1xf32>
      %72 = arith.mulf %70, %71 : vector<8x1xf32>
      %cst_54 = arith.constant 9.99999974E-6 : f32
      %73 = vector.broadcast %cst_54 : f32 to vector<8x1xf32>
      %74 = arith.addf %72, %73 : vector<8x1xf32>
      %75 = math.rsqrt %74 : vector<8x1xf32>
      %76 = arith.mulf %21, %75 : vector<8x1xf32>
      %77 = vector.broadcast %76 : vector<8x1xf32> to vector<8x16xf32>
      %78 = arith.mulf %59, %77 : vector<8x16xf32>
      %79 = vector.broadcast %22 : vector<8x1xf32> to vector<8x16xf32>
      %80 = arith.addf %78, %79 : vector<8x16xf32>
      %c0_55 = arith.constant 0 : index
      %c0_56 = arith.constant 0 : index
      %c2_57 = arith.constant 2 : index
      %81 = vector.load %alloca_7[%c0_55, %c0_56, %c2_57] : memref<2x8x20xf32, #tpu.memory_space<vmem>>, vector<1x8x16xf32>
      %82 = vector.shape_cast %81 : vector<1x8x16xf32> to vector<8x16xf32>
      %83 = vector.shape_cast %80 : vector<8x16xf32> to vector<1x8x16xf32>
      tpu.vector_store %alloca_7[%c0_55, %c0_56, %c2_57], %83 {strides = array<i32>} : memref<2x8x20xf32, #tpu.memory_space<vmem>>, vector<1x8x16xf32>,
      %84 = vector.broadcast %76 : vector<8x1xf32> to vector<8x16xf32>
      %85 = arith.mulf %61, %84 : vector<8x16xf32>
      %86 = vector.broadcast %22 : vector<8x1xf32> to vector<8x16xf32>
      %87 = arith.addf %85, %86 : vector<8x16xf32>
      %c1_58 = arith.constant 1 : index
      %c0_59 = arith.constant 0 : index
      %c2_60 = arith.constant 2 : index
      %88 = vector.load %alloca_7[%c1_58, %c0_59, %c2_60] : memref<2x8x20xf32, #tpu.memory_space<vmem>>, vector<1x8x16xf32>
      %89 = vector.shape_cast %88 : vector<1x8x16xf32> to vector<8x16xf32>
      %90 = vector.shape_cast %87 : vector<8x16xf32> to vector<1x8x16xf32>
      tpu.vector_store %alloca_7[%c1_58, %c0_59, %c2_60], %90 {strides = array<i32>} : memref<2x8x20xf32, #tpu.memory_space<vmem>>, vector<1x8x16xf32>,
      %c0_61 = arith.constant 0 : index
      %c0_62 = arith.constant 0 : index
      %91 = vector.load %arg5[%c0_61, %c0_62] : memref<8x40xf32, #tpu.memory_space<vmem>>, vector<8x40xf32>
      %c0_63 = arith.constant 0 : index
      %c0_64 = arith.constant 0 : index
      %92 = vector.load %arg6[%c0_63, %c0_64] : memref<8x1xf32, #tpu.memory_space<vmem>>, vector<8x1xf32>
      %c0_65 = arith.constant 0 : index
      %c0_66 = arith.constant 0 : index
      %93 = vector.load %arg7[%c0_65, %c0_66] : memref<8x1xf32, #tpu.memory_space<vmem>>, vector<8x1xf32>
      %c0_67 = arith.constant 0 : index
      %c0_68 = arith.constant 0 : index
      %94 = vector.load %arg8[%c0_67, %c0_68] : memref<8x1xf32, #tpu.memory_space<vmem>>, vector<8x1xf32>
      %c0_69 = arith.constant 0 : index
      %c0_70 = arith.constant 0 : index
      %c0_71 = arith.constant 0 : index
      %95 = vector.load %alloca_7[%c0_69, %c0_70, %c0_71] : memref<2x8x20xf32, #tpu.memory_space<vmem>>, vector<1x8x20xf32>
      %96 = vector.shape_cast %95 : vector<1x8x20xf32> to vector<8x20xf32>
      %97 = vector.extract_strided_slice %96 {offsets = [0, 0], sizes = [8, 16], strides = [1, 1]} : vector<8x20xf32> to vector<8x16xf32>
      %98 = vector.extract_strided_slice %96 {offsets = [0, 1], sizes = [8, 16], strides = [1, 1]} : vector<8x20xf32> to vector<8x16xf32>
      %99 = vector.extract_strided_slice %96 {offsets = [0, 2], sizes = [8, 16], strides = [1, 1]} : vector<8x20xf32> to vector<8x16xf32>
      %100 = vector.extract_strided_slice %96 {offsets = [0, 3], sizes = [8, 16], strides = [1, 1]} : vector<8x20xf32> to vector<8x16xf32>
      %101 = vector.extract_strided_slice %96 {offsets = [0, 4], sizes = [8, 16], strides = [1, 1]} : vector<8x20xf32> to vector<8x16xf32>
      %102 = tpu.concatenate %97, %98, %99, %100, %101 in 0 : vector<8x16xf32>, vector<8x16xf32>, vector<8x16xf32>, vector<8x16xf32>, vector<8x16xf32> -> vector<40x16xf32>
      %cst_72 = arith.constant dense<0.000000e+00> : vector<8x16xf32>
      %103 = tpu.matmul %91, %102, %cst_72 {dimension_numbers = #tpu.dot_dimension_numbers<[1], [0], [0], [1], [0, 0, 1, 1], [], []>} : vector<8x40xf32>, vector<40x16xf32>, vector<8x16xf32> -> vector<8x16xf32>
      %104 = vector.broadcast %92 : vector<8x1xf32> to vector<8x16xf32>
      %105 = arith.addf %103, %104 : vector<8x16xf32>
      %cst_73 = arith.constant 0.000000e+00 : f32
      %106 = vector.broadcast %cst_73 : f32 to vector<8x16xf32>
      %107 = arith.maximumf %105, %106 : vector<8x16xf32>
      %c1_74 = arith.constant 1 : index
      %c0_75 = arith.constant 0 : index
      %c0_76 = arith.constant 0 : index
      %108 = vector.load %alloca_7[%c1_74, %c0_75, %c0_76] : memref<2x8x20xf32, #tpu.memory_space<vmem>>, vector<1x8x20xf32>
      %109 = vector.shape_cast %108 : vector<1x8x20xf32> to vector<8x20xf32>
      %110 = vector.extract_strided_slice %109 {offsets = [0, 0], sizes = [8, 16], strides = [1, 1]} : vector<8x20xf32> to vector<8x16xf32>
      %111 = vector.extract_strided_slice %109 {offsets = [0, 1], sizes = [8, 16], strides = [1, 1]} : vector<8x20xf32> to vector<8x16xf32>
      %112 = vector.extract_strided_slice %109 {offsets = [0, 2], sizes = [8, 16], strides = [1, 1]} : vector<8x20xf32> to vector<8x16xf32>
      %113 = vector.extract_strided_slice %109 {offsets = [0, 3], sizes = [8, 16], strides = [1, 1]} : vector<8x20xf32> to vector<8x16xf32>
      %114 = vector.extract_strided_slice %109 {offsets = [0, 4], sizes = [8, 16], strides = [1, 1]} : vector<8x20xf32> to vector<8x16xf32>
      %115 = tpu.concatenate %110, %111, %112, %113, %114 in 0 : vector<8x16xf32>, vector<8x16xf32>, vector<8x16xf32>, vector<8x16xf32>, vector<8x16xf32> -> vector<40x16xf32>
      %cst_77 = arith.constant dense<0.000000e+00> : vector<8x16xf32>
      %116 = tpu.matmul %91, %115, %cst_77 {dimension_numbers = #tpu.dot_dimension_numbers<[1], [0], [0], [1], [0, 0, 1, 1], [], []>} : vector<8x40xf32>, vector<40x16xf32>, vector<8x16xf32> -> vector<8x16xf32>
      %117 = vector.broadcast %92 : vector<8x1xf32> to vector<8x16xf32>
      %118 = arith.addf %116, %117 : vector<8x16xf32>
      %cst_78 = arith.constant 0.000000e+00 : f32
      %119 = vector.broadcast %cst_78 : f32 to vector<8x16xf32>
      %120 = arith.maximumf %118, %119 : vector<8x16xf32>
      %cst_79 = arith.constant dense<0.000000e+00> : vector<8xf32>
      %121 = vector.multi_reduction <add>, %107, %cst_79 [1] : vector<8x16xf32> to vector<8xf32>
      %122 = vector.shape_cast %121 : vector<8xf32> to vector<8x1xf32>
      %cst_80 = arith.constant 0.000000e+00 : f32
      %123 = vector.broadcast %cst_80 : f32 to vector<8x1xf32>
      %124 = arith.addf %123, %122 : vector<8x1xf32>
      %cst_81 = arith.constant dense<0.000000e+00> : vector<8xf32>
      %125 = vector.multi_reduction <add>, %120, %cst_81 [1] : vector<8x16xf32> to vector<8xf32>
      %126 = vector.shape_cast %125 : vector<8xf32> to vector<8x1xf32>
      %127 = arith.addf %124, %126 : vector<8x1xf32>
      %cst_82 = arith.constant 3.125000e-02 : f32
      %128 = vector.broadcast %cst_82 : f32 to vector<8x1xf32>
      %129 = arith.mulf %127, %128 : vector<8x1xf32>
      %130 = vector.broadcast %129 : vector<8x1xf32> to vector<8x16xf32>
      %131 = arith.subf %107, %130 : vector<8x16xf32>
      %132 = vector.broadcast %129 : vector<8x1xf32> to vector<8x16xf32>
      %133 = arith.subf %120, %132 : vector<8x16xf32>
      %134 = arith.mulf %131, %131 : vector<8x16xf32>
      %cst_83 = arith.constant dense<0.000000e+00> : vector<8xf32>
      %135 = vector.multi_reduction <add>, %134, %cst_83 [1] : vector<8x16xf32> to vector<8xf32>
      %136 = vector.shape_cast %135 : vector<8xf32> to vector<8x1xf32>
      %cst_84 = arith.constant 0.000000e+00 : f32
      %137 = vector.broadcast %cst_84 : f32 to vector<8x1xf32>
      %138 = arith.addf %137, %136 : vector<8x1xf32>
      %139 = arith.mulf %133, %133 : vector<8x16xf32>
      %cst_85 = arith.constant dense<0.000000e+00> : vector<8xf32>
      %140 = vector.multi_reduction <add>, %139, %cst_85 [1] : vector<8x16xf32> to vector<8xf32>
      %141 = vector.shape_cast %140 : vector<8xf32> to vector<8x1xf32>
      %142 = arith.addf %138, %141 : vector<8x1xf32>
      %cst_86 = arith.constant 3.125000e-02 : f32
      %143 = vector.broadcast %cst_86 : f32 to vector<8x1xf32>
      %144 = arith.mulf %142, %143 : vector<8x1xf32>
      %cst_87 = arith.constant 9.99999974E-6 : f32
      %145 = vector.broadcast %cst_87 : f32 to vector<8x1xf32>
      %146 = arith.addf %144, %145 : vector<8x1xf32>
      %147 = math.rsqrt %146 : vector<8x1xf32>
      %148 = arith.mulf %93, %147 : vector<8x1xf32>
      %149 = vector.broadcast %148 : vector<8x1xf32> to vector<8x16xf32>
      %150 = arith.mulf %131, %149 : vector<8x16xf32>
      %151 = vector.broadcast %94 : vector<8x1xf32> to vector<8x16xf32>
      %152 = arith.addf %150, %151 : vector<8x16xf32>
      %c0_88 = arith.constant 0 : index
      %c0_89 = arith.constant 0 : index
      %c0_90 = arith.constant 0 : index
      %153 = vector.load %arg26[%c0_88, %c0_89, %c0_90] : memref<2x8x16xf32, #tpu.memory_space<vmem>>, vector<1x8x16xf32>
      %154 = vector.shape_cast %153 : vector<1x8x16xf32> to vector<8x16xf32>
      %155 = vector.shape_cast %152 : vector<8x16xf32> to vector<1x8x16xf32>
      tpu.vector_store %arg26[%c0_88, %c0_89, %c0_90], %155 {strides = array<i32>} : memref<2x8x16xf32, #tpu.memory_space<vmem>>, vector<1x8x16xf32>,
      %156 = vector.broadcast %148 : vector<8x1xf32> to vector<8x16xf32>
      %157 = arith.mulf %133, %156 : vector<8x16xf32>
      %158 = vector.broadcast %94 : vector<8x1xf32> to vector<8x16xf32>
      %159 = arith.addf %157, %158 : vector<8x16xf32>
      %c1_91 = arith.constant 1 : index
      %c0_92 = arith.constant 0 : index
      %c0_93 = arith.constant 0 : index
      %160 = vector.load %arg26[%c1_91, %c0_92, %c0_93] : memref<2x8x16xf32, #tpu.memory_space<vmem>>, vector<1x8x16xf32>
      %161 = vector.shape_cast %160 : vector<1x8x16xf32> to vector<8x16xf32>
      %162 = vector.shape_cast %159 : vector<8x16xf32> to vector<1x8x16xf32>
      tpu.vector_store %arg26[%c1_91, %c0_92, %c0_93], %162 {strides = array<i32>} : memref<2x8x16xf32, #tpu.memory_space<vmem>>, vector<1x8x16xf32>,
      tpu.yield
    }) : () -> ()
    "tpu.region"() ({
      %alloca = memref.alloca() : memref<2x8x12xf32, #tpu.memory_space<vmem>>
      %alloca_7 = memref.alloca() : memref<2x16x12xf32, #tpu.memory_space<vmem>>
      %cst = arith.constant 0.000000e+00 : f32
      %9 = vector.broadcast %cst : f32 to vector<2x8x2xf32>
      %c0_8 = arith.constant 0 : index
      %c0_9 = arith.constant 0 : index
      %c0_10 = arith.constant 0 : index
      %10 = vector.load %alloca[%c0_8, %c0_9, %c0_10] : memref<2x8x12xf32, #tpu.memory_space<vmem>>, vector<2x8x2xf32>
      tpu.vector_store %alloca[%c0_8, %c0_9, %c0_10], %9 {strides = array<i32>} : memref<2x8x12xf32, #tpu.memory_space<vmem>>, vector<2x8x2xf32>,
      %c0_11 = arith.constant 0 : index
      %c0_12 = arith.constant 0 : index
      %c10 = arith.constant 10 : index
      %11 = vector.load %alloca[%c0_11, %c0_12, %c10] : memref<2x8x12xf32, #tpu.memory_space<vmem>>, vector<2x8x2xf32>
      tpu.vector_store %alloca[%c0_11, %c0_12, %c10], %9 {strides = array<i32>} : memref<2x8x12xf32, #tpu.memory_space<vmem>>, vector<2x8x2xf32>,
      %c0_13 = arith.constant 0 : index
      %c0_14 = arith.constant 0 : index
      %c0_15 = arith.constant 0 : index
      %12 = vector.load %arg26[%c0_13, %c0_14, %c0_15] : memref<2x8x16xf32, #tpu.memory_space<vmem>>, vector<2x8x16xf32>
      %13 = vector.extract_strided_slice %12 {offsets = [0, 0, 0], sizes = [2, 8, 1], strides = [1, 1, 1]} : vector<2x8x16xf32> to vector<2x8x1xf32>
      %14 = vector.extract_strided_slice %12 {offsets = [0, 0, 1], sizes = [2, 8, 1], strides = [1, 1, 1]} : vector<2x8x16xf32> to vector<2x8x1xf32>
      %15 = arith.maximumf %13, %14 : vector<2x8x1xf32>
      %c0_16 = arith.constant 0 : index
      %c0_17 = arith.constant 0 : index
      %c2 = arith.constant 2 : index
      %16 = vector.load %alloca[%c0_16, %c0_17, %c2] : memref<2x8x12xf32, #tpu.memory_space<vmem>>, vector<2x8x1xf32>
      tpu.vector_store %alloca[%c0_16, %c0_17, %c2], %15 {strides = array<i32>} : memref<2x8x12xf32, #tpu.memory_space<vmem>>, vector<2x8x1xf32>,
      %17 = vector.extract_strided_slice %12 {offsets = [0, 0, 2], sizes = [2, 8, 1], strides = [1, 1, 1]} : vector<2x8x16xf32> to vector<2x8x1xf32>
      %18 = vector.extract_strided_slice %12 {offsets = [0, 0, 3], sizes = [2, 8, 1], strides = [1, 1, 1]} : vector<2x8x16xf32> to vector<2x8x1xf32>
      %19 = arith.maximumf %17, %18 : vector<2x8x1xf32>
      %c0_18 = arith.constant 0 : index
      %c0_19 = arith.constant 0 : index
      %c3 = arith.constant 3 : index
      %20 = vector.load %alloca[%c0_18, %c0_19, %c3] : memref<2x8x12xf32, #tpu.memory_space<vmem>>, vector<2x8x1xf32>
      tpu.vector_store %alloca[%c0_18, %c0_19, %c3], %19 {strides = array<i32>} : memref<2x8x12xf32, #tpu.memory_space<vmem>>, vector<2x8x1xf32>,
      %21 = vector.extract_strided_slice %12 {offsets = [0, 0, 4], sizes = [2, 8, 1], strides = [1, 1, 1]} : vector<2x8x16xf32> to vector<2x8x1xf32>
      %22 = vector.extract_strided_slice %12 {offsets = [0, 0, 5], sizes = [2, 8, 1], strides = [1, 1, 1]} : vector<2x8x16xf32> to vector<2x8x1xf32>
      %23 = arith.maximumf %21, %22 : vector<2x8x1xf32>
      %c0_20 = arith.constant 0 : index
      %c0_21 = arith.constant 0 : index
      %c4 = arith.constant 4 : index
      %24 = vector.load %alloca[%c0_20, %c0_21, %c4] : memref<2x8x12xf32, #tpu.memory_space<vmem>>, vector<2x8x1xf32>
      tpu.vector_store %alloca[%c0_20, %c0_21, %c4], %23 {strides = array<i32>} : memref<2x8x12xf32, #tpu.memory_space<vmem>>, vector<2x8x1xf32>,
      %25 = vector.extract_strided_slice %12 {offsets = [0, 0, 6], sizes = [2, 8, 1], strides = [1, 1, 1]} : vector<2x8x16xf32> to vector<2x8x1xf32>
      %26 = vector.extract_strided_slice %12 {offsets = [0, 0, 7], sizes = [2, 8, 1], strides = [1, 1, 1]} : vector<2x8x16xf32> to vector<2x8x1xf32>
      %27 = arith.maximumf %25, %26 : vector<2x8x1xf32>
      %c0_22 = arith.constant 0 : index
      %c0_23 = arith.constant 0 : index
      %c5 = arith.constant 5 : index
      %28 = vector.load %alloca[%c0_22, %c0_23, %c5] : memref<2x8x12xf32, #tpu.memory_space<vmem>>, vector<2x8x1xf32>
      tpu.vector_store %alloca[%c0_22, %c0_23, %c5], %27 {strides = array<i32>} : memref<2x8x12xf32, #tpu.memory_space<vmem>>, vector<2x8x1xf32>,
      %29 = vector.extract_strided_slice %12 {offsets = [0, 0, 8], sizes = [2, 8, 1], strides = [1, 1, 1]} : vector<2x8x16xf32> to vector<2x8x1xf32>
      %30 = vector.extract_strided_slice %12 {offsets = [0, 0, 9], sizes = [2, 8, 1], strides = [1, 1, 1]} : vector<2x8x16xf32> to vector<2x8x1xf32>
      %31 = arith.maximumf %29, %30 : vector<2x8x1xf32>
      %c0_24 = arith.constant 0 : index
      %c0_25 = arith.constant 0 : index
      %c6 = arith.constant 6 : index
      %32 = vector.load %alloca[%c0_24, %c0_25, %c6] : memref<2x8x12xf32, #tpu.memory_space<vmem>>, vector<2x8x1xf32>
      tpu.vector_store %alloca[%c0_24, %c0_25, %c6], %31 {strides = array<i32>} : memref<2x8x12xf32, #tpu.memory_space<vmem>>, vector<2x8x1xf32>,
      %33 = vector.extract_strided_slice %12 {offsets = [0, 0, 10], sizes = [2, 8, 1], strides = [1, 1, 1]} : vector<2x8x16xf32> to vector<2x8x1xf32>
      %34 = vector.extract_strided_slice %12 {offsets = [0, 0, 11], sizes = [2, 8, 1], strides = [1, 1, 1]} : vector<2x8x16xf32> to vector<2x8x1xf32>
      %35 = arith.maximumf %33, %34 : vector<2x8x1xf32>
      %c0_26 = arith.constant 0 : index
      %c0_27 = arith.constant 0 : index
      %c7 = arith.constant 7 : index
      %36 = vector.load %alloca[%c0_26, %c0_27, %c7] : memref<2x8x12xf32, #tpu.memory_space<vmem>>, vector<2x8x1xf32>
      tpu.vector_store %alloca[%c0_26, %c0_27, %c7], %35 {strides = array<i32>} : memref<2x8x12xf32, #tpu.memory_space<vmem>>, vector<2x8x1xf32>,
      %37 = vector.extract_strided_slice %12 {offsets = [0, 0, 12], sizes = [2, 8, 1], strides = [1, 1, 1]} : vector<2x8x16xf32> to vector<2x8x1xf32>
      %38 = vector.extract_strided_slice %12 {offsets = [0, 0, 13], sizes = [2, 8, 1], strides = [1, 1, 1]} : vector<2x8x16xf32> to vector<2x8x1xf32>
      %39 = arith.maximumf %37, %38 : vector<2x8x1xf32>
      %c0_28 = arith.constant 0 : index
      %c0_29 = arith.constant 0 : index
      %c8 = arith.constant 8 : index
      %40 = vector.load %alloca[%c0_28, %c0_29, %c8] : memref<2x8x12xf32, #tpu.memory_space<vmem>>, vector<2x8x1xf32>
      tpu.vector_store %alloca[%c0_28, %c0_29, %c8], %39 {strides = array<i32>} : memref<2x8x12xf32, #tpu.memory_space<vmem>>, vector<2x8x1xf32>,
      %41 = vector.extract_strided_slice %12 {offsets = [0, 0, 14], sizes = [2, 8, 1], strides = [1, 1, 1]} : vector<2x8x16xf32> to vector<2x8x1xf32>
      %42 = vector.extract_strided_slice %12 {offsets = [0, 0, 15], sizes = [2, 8, 1], strides = [1, 1, 1]} : vector<2x8x16xf32> to vector<2x8x1xf32>
      %43 = arith.maximumf %41, %42 : vector<2x8x1xf32>
      %c0_30 = arith.constant 0 : index
      %c0_31 = arith.constant 0 : index
      %c9 = arith.constant 9 : index
      %44 = vector.load %alloca[%c0_30, %c0_31, %c9] : memref<2x8x12xf32, #tpu.memory_space<vmem>>, vector<2x8x1xf32>
      tpu.vector_store %alloca[%c0_30, %c0_31, %c9], %43 {strides = array<i32>} : memref<2x8x12xf32, #tpu.memory_space<vmem>>, vector<2x8x1xf32>,
      %cst_32 = arith.constant 0.000000e+00 : f32
      %45 = vector.broadcast %cst_32 : f32 to vector<2x16x2xf32>
      %c0_33 = arith.constant 0 : index
      %c0_34 = arith.constant 0 : index
      %c0_35 = arith.constant 0 : index
      %46 = vector.load %alloca_7[%c0_33, %c0_34, %c0_35] : memref<2x16x12xf32, #tpu.memory_space<vmem>>, vector<2x16x2xf32>
      tpu.vector_store %alloca_7[%c0_33, %c0_34, %c0_35], %45 {strides = array<i32>} : memref<2x16x12xf32, #tpu.memory_space<vmem>>, vector<2x16x2xf32>,
      %c0_36 = arith.constant 0 : index
      %c0_37 = arith.constant 0 : index
      %c10_38 = arith.constant 10 : index
      %47 = vector.load %alloca_7[%c0_36, %c0_37, %c10_38] : memref<2x16x12xf32, #tpu.memory_space<vmem>>, vector<2x16x2xf32>
      tpu.vector_store %alloca_7[%c0_36, %c0_37, %c10_38], %45 {strides = array<i32>} : memref<2x16x12xf32, #tpu.memory_space<vmem>>, vector<2x16x2xf32>,
      %c0_39 = arith.constant 0 : index
      %c0_40 = arith.constant 0 : index
      %48 = vector.load %arg9[%c0_39, %c0_40] : memref<16x40xf32, #tpu.memory_space<vmem>>, vector<16x40xf32>
      %c0_41 = arith.constant 0 : index
      %c0_42 = arith.constant 0 : index
      %49 = vector.load %arg10[%c0_41, %c0_42] : memref<16x1xf32, #tpu.memory_space<vmem>>, vector<16x1xf32>
      %c0_43 = arith.constant 0 : index
      %c0_44 = arith.constant 0 : index
      %50 = vector.load %arg11[%c0_43, %c0_44] : memref<16x1xf32, #tpu.memory_space<vmem>>, vector<16x1xf32>
      %c0_45 = arith.constant 0 : index
      %c0_46 = arith.constant 0 : index
      %51 = vector.load %arg12[%c0_45, %c0_46] : memref<16x1xf32, #tpu.memory_space<vmem>>, vector<16x1xf32>
      %c0_47 = arith.constant 0 : index
      %c0_48 = arith.constant 0 : index
      %c0_49 = arith.constant 0 : index
      %52 = vector.load %alloca[%c0_47, %c0_48, %c0_49] : memref<2x8x12xf32, #tpu.memory_space<vmem>>, vector<1x8x12xf32>
      %53 = vector.shape_cast %52 : vector<1x8x12xf32> to vector<8x12xf32>
      %54 = vector.extract_strided_slice %53 {offsets = [0, 0], sizes = [8, 8], strides = [1, 1]} : vector<8x12xf32> to vector<8x8xf32>
      %55 = vector.extract_strided_slice %53 {offsets = [0, 1], sizes = [8, 8], strides = [1, 1]} : vector<8x12xf32> to vector<8x8xf32>
      %56 = vector.extract_strided_slice %53 {offsets = [0, 2], sizes = [8, 8], strides = [1, 1]} : vector<8x12xf32> to vector<8x8xf32>
      %57 = vector.extract_strided_slice %53 {offsets = [0, 3], sizes = [8, 8], strides = [1, 1]} : vector<8x12xf32> to vector<8x8xf32>
      %58 = vector.extract_strided_slice %53 {offsets = [0, 4], sizes = [8, 8], strides = [1, 1]} : vector<8x12xf32> to vector<8x8xf32>
      %59 = tpu.concatenate %54, %55, %56, %57, %58 in 0 : vector<8x8xf32>, vector<8x8xf32>, vector<8x8xf32>, vector<8x8xf32>, vector<8x8xf32> -> vector<40x8xf32>
      %cst_50 = arith.constant dense<0.000000e+00> : vector<16x8xf32>
      %60 = tpu.matmul %48, %59, %cst_50 {dimension_numbers = #tpu.dot_dimension_numbers<[1], [0], [0], [1], [0, 0, 1, 1], [], []>} : vector<16x40xf32>, vector<40x8xf32>, vector<16x8xf32> -> vector<16x8xf32>
      %61 = vector.broadcast %49 : vector<16x1xf32> to vector<16x8xf32>
      %62 = arith.addf %60, %61 : vector<16x8xf32>
      %cst_51 = arith.constant 0.000000e+00 : f32
      %63 = vector.broadcast %cst_51 : f32 to vector<16x8xf32>
      %64 = arith.maximumf %62, %63 : vector<16x8xf32>
      %c1_52 = arith.constant 1 : index
      %c0_53 = arith.constant 0 : index
      %c0_54 = arith.constant 0 : index
      %65 = vector.load %alloca[%c1_52, %c0_53, %c0_54] : memref<2x8x12xf32, #tpu.memory_space<vmem>>, vector<1x8x12xf32>
      %66 = vector.shape_cast %65 : vector<1x8x12xf32> to vector<8x12xf32>
      %67 = vector.extract_strided_slice %66 {offsets = [0, 0], sizes = [8, 8], strides = [1, 1]} : vector<8x12xf32> to vector<8x8xf32>
      %68 = vector.extract_strided_slice %66 {offsets = [0, 1], sizes = [8, 8], strides = [1, 1]} : vector<8x12xf32> to vector<8x8xf32>
      %69 = vector.extract_strided_slice %66 {offsets = [0, 2], sizes = [8, 8], strides = [1, 1]} : vector<8x12xf32> to vector<8x8xf32>
      %70 = vector.extract_strided_slice %66 {offsets = [0, 3], sizes = [8, 8], strides = [1, 1]} : vector<8x12xf32> to vector<8x8xf32>
      %71 = vector.extract_strided_slice %66 {offsets = [0, 4], sizes = [8, 8], strides = [1, 1]} : vector<8x12xf32> to vector<8x8xf32>
      %72 = tpu.concatenate %67, %68, %69, %70, %71 in 0 : vector<8x8xf32>, vector<8x8xf32>, vector<8x8xf32>, vector<8x8xf32>, vector<8x8xf32> -> vector<40x8xf32>
      %cst_55 = arith.constant dense<0.000000e+00> : vector<16x8xf32>
      %73 = tpu.matmul %48, %72, %cst_55 {dimension_numbers = #tpu.dot_dimension_numbers<[1], [0], [0], [1], [0, 0, 1, 1], [], []>} : vector<16x40xf32>, vector<40x8xf32>, vector<16x8xf32> -> vector<16x8xf32>
      %74 = vector.broadcast %49 : vector<16x1xf32> to vector<16x8xf32>
      %75 = arith.addf %73, %74 : vector<16x8xf32>
      %cst_56 = arith.constant 0.000000e+00 : f32
      %76 = vector.broadcast %cst_56 : f32 to vector<16x8xf32>
      %77 = arith.maximumf %75, %76 : vector<16x8xf32>
      %cst_57 = arith.constant dense<0.000000e+00> : vector<16xf32>
      %78 = vector.multi_reduction <add>, %64, %cst_57 [1] : vector<16x8xf32> to vector<16xf32>
      %79 = vector.shape_cast %78 : vector<16xf32> to vector<16x1xf32>
      %cst_58 = arith.constant 0.000000e+00 : f32
      %80 = vector.broadcast %cst_58 : f32 to vector<16x1xf32>
      %81 = arith.addf %80, %79 : vector<16x1xf32>
      %cst_59 = arith.constant dense<0.000000e+00> : vector<16xf32>
      %82 = vector.multi_reduction <add>, %77, %cst_59 [1] : vector<16x8xf32> to vector<16xf32>
      %83 = vector.shape_cast %82 : vector<16xf32> to vector<16x1xf32>
      %84 = arith.addf %81, %83 : vector<16x1xf32>
      %cst_60 = arith.constant 6.250000e-02 : f32
      %85 = vector.broadcast %cst_60 : f32 to vector<16x1xf32>
      %86 = arith.mulf %84, %85 : vector<16x1xf32>
      %87 = vector.broadcast %86 : vector<16x1xf32> to vector<16x8xf32>
      %88 = arith.subf %64, %87 : vector<16x8xf32>
      %89 = vector.broadcast %86 : vector<16x1xf32> to vector<16x8xf32>
      %90 = arith.subf %77, %89 : vector<16x8xf32>
      %91 = arith.mulf %88, %88 : vector<16x8xf32>
      %cst_61 = arith.constant dense<0.000000e+00> : vector<16xf32>
      %92 = vector.multi_reduction <add>, %91, %cst_61 [1] : vector<16x8xf32> to vector<16xf32>
      %93 = vector.shape_cast %92 : vector<16xf32> to vector<16x1xf32>
      %cst_62 = arith.constant 0.000000e+00 : f32
      %94 = vector.broadcast %cst_62 : f32 to vector<16x1xf32>
      %95 = arith.addf %94, %93 : vector<16x1xf32>
      %96 = arith.mulf %90, %90 : vector<16x8xf32>
      %cst_63 = arith.constant dense<0.000000e+00> : vector<16xf32>
      %97 = vector.multi_reduction <add>, %96, %cst_63 [1] : vector<16x8xf32> to vector<16xf32>
      %98 = vector.shape_cast %97 : vector<16xf32> to vector<16x1xf32>
      %99 = arith.addf %95, %98 : vector<16x1xf32>
      %cst_64 = arith.constant 6.250000e-02 : f32
      %100 = vector.broadcast %cst_64 : f32 to vector<16x1xf32>
      %101 = arith.mulf %99, %100 : vector<16x1xf32>
      %cst_65 = arith.constant 9.99999974E-6 : f32
      %102 = vector.broadcast %cst_65 : f32 to vector<16x1xf32>
      %103 = arith.addf %101, %102 : vector<16x1xf32>
      %104 = math.rsqrt %103 : vector<16x1xf32>
      %105 = arith.mulf %50, %104 : vector<16x1xf32>
      %106 = vector.broadcast %105 : vector<16x1xf32> to vector<16x8xf32>
      %107 = arith.mulf %88, %106 : vector<16x8xf32>
      %108 = vector.broadcast %51 : vector<16x1xf32> to vector<16x8xf32>
      %109 = arith.addf %107, %108 : vector<16x8xf32>
      %c0_66 = arith.constant 0 : index
      %c0_67 = arith.constant 0 : index
      %c2_68 = arith.constant 2 : index
      %110 = vector.load %alloca_7[%c0_66, %c0_67, %c2_68] : memref<2x16x12xf32, #tpu.memory_space<vmem>>, vector<1x16x8xf32>
      %111 = vector.shape_cast %110 : vector<1x16x8xf32> to vector<16x8xf32>
      %112 = vector.shape_cast %109 : vector<16x8xf32> to vector<1x16x8xf32>
      tpu.vector_store %alloca_7[%c0_66, %c0_67, %c2_68], %112 {strides = array<i32>} : memref<2x16x12xf32, #tpu.memory_space<vmem>>, vector<1x16x8xf32>,
      %113 = vector.broadcast %105 : vector<16x1xf32> to vector<16x8xf32>
      %114 = arith.mulf %90, %113 : vector<16x8xf32>
      %115 = vector.broadcast %51 : vector<16x1xf32> to vector<16x8xf32>
      %116 = arith.addf %114, %115 : vector<16x8xf32>
      %c1_69 = arith.constant 1 : index
      %c0_70 = arith.constant 0 : index
      %c2_71 = arith.constant 2 : index
      %117 = vector.load %alloca_7[%c1_69, %c0_70, %c2_71] : memref<2x16x12xf32, #tpu.memory_space<vmem>>, vector<1x16x8xf32>
      %118 = vector.shape_cast %117 : vector<1x16x8xf32> to vector<16x8xf32>
      %119 = vector.shape_cast %116 : vector<16x8xf32> to vector<1x16x8xf32>
      tpu.vector_store %alloca_7[%c1_69, %c0_70, %c2_71], %119 {strides = array<i32>} : memref<2x16x12xf32, #tpu.memory_space<vmem>>, vector<1x16x8xf32>,
      %c0_72 = arith.constant 0 : index
      %c0_73 = arith.constant 0 : index
      %120 = vector.load %arg13[%c0_72, %c0_73] : memref<16x80xf32, #tpu.memory_space<vmem>>, vector<16x80xf32>
      %c0_74 = arith.constant 0 : index
      %c0_75 = arith.constant 0 : index
      %121 = vector.load %arg14[%c0_74, %c0_75] : memref<16x1xf32, #tpu.memory_space<vmem>>, vector<16x1xf32>
      %c0_76 = arith.constant 0 : index
      %c0_77 = arith.constant 0 : index
      %122 = vector.load %arg15[%c0_76, %c0_77] : memref<16x1xf32, #tpu.memory_space<vmem>>, vector<16x1xf32>
      %c0_78 = arith.constant 0 : index
      %c0_79 = arith.constant 0 : index
      %123 = vector.load %arg16[%c0_78, %c0_79] : memref<16x1xf32, #tpu.memory_space<vmem>>, vector<16x1xf32>
      %c0_80 = arith.constant 0 : index
      %c0_81 = arith.constant 0 : index
      %c0_82 = arith.constant 0 : index
      %124 = vector.load %alloca_7[%c0_80, %c0_81, %c0_82] : memref<2x16x12xf32, #tpu.memory_space<vmem>>, vector<1x16x12xf32>
      %125 = vector.shape_cast %124 : vector<1x16x12xf32> to vector<16x12xf32>
      %126 = vector.extract_strided_slice %125 {offsets = [0, 0], sizes = [16, 8], strides = [1, 1]} : vector<16x12xf32> to vector<16x8xf32>
      %127 = vector.extract_strided_slice %125 {offsets = [0, 1], sizes = [16, 8], strides = [1, 1]} : vector<16x12xf32> to vector<16x8xf32>
      %128 = vector.extract_strided_slice %125 {offsets = [0, 2], sizes = [16, 8], strides = [1, 1]} : vector<16x12xf32> to vector<16x8xf32>
      %129 = vector.extract_strided_slice %125 {offsets = [0, 3], sizes = [16, 8], strides = [1, 1]} : vector<16x12xf32> to vector<16x8xf32>
      %130 = vector.extract_strided_slice %125 {offsets = [0, 4], sizes = [16, 8], strides = [1, 1]} : vector<16x12xf32> to vector<16x8xf32>
      %131 = tpu.concatenate %126, %127, %128, %129, %130 in 0 : vector<16x8xf32>, vector<16x8xf32>, vector<16x8xf32>, vector<16x8xf32>, vector<16x8xf32> -> vector<80x8xf32>
      %cst_83 = arith.constant dense<0.000000e+00> : vector<16x8xf32>
      %132 = tpu.matmul %120, %131, %cst_83 {dimension_numbers = #tpu.dot_dimension_numbers<[1], [0], [0], [1], [0, 0, 1, 1], [], []>} : vector<16x80xf32>, vector<80x8xf32>, vector<16x8xf32> -> vector<16x8xf32>
      %133 = vector.broadcast %121 : vector<16x1xf32> to vector<16x8xf32>
      %134 = arith.addf %132, %133 : vector<16x8xf32>
      %cst_84 = arith.constant 0.000000e+00 : f32
      %135 = vector.broadcast %cst_84 : f32 to vector<16x8xf32>
      %136 = arith.maximumf %134, %135 : vector<16x8xf32>
      %c1_85 = arith.constant 1 : index
      %c0_86 = arith.constant 0 : index
      %c0_87 = arith.constant 0 : index
      %137 = vector.load %alloca_7[%c1_85, %c0_86, %c0_87] : memref<2x16x12xf32, #tpu.memory_space<vmem>>, vector<1x16x12xf32>
      %138 = vector.shape_cast %137 : vector<1x16x12xf32> to vector<16x12xf32>
      %139 = vector.extract_strided_slice %138 {offsets = [0, 0], sizes = [16, 8], strides = [1, 1]} : vector<16x12xf32> to vector<16x8xf32>
      %140 = vector.extract_strided_slice %138 {offsets = [0, 1], sizes = [16, 8], strides = [1, 1]} : vector<16x12xf32> to vector<16x8xf32>
      %141 = vector.extract_strided_slice %138 {offsets = [0, 2], sizes = [16, 8], strides = [1, 1]} : vector<16x12xf32> to vector<16x8xf32>
      %142 = vector.extract_strided_slice %138 {offsets = [0, 3], sizes = [16, 8], strides = [1, 1]} : vector<16x12xf32> to vector<16x8xf32>
      %143 = vector.extract_strided_slice %138 {offsets = [0, 4], sizes = [16, 8], strides = [1, 1]} : vector<16x12xf32> to vector<16x8xf32>
      %144 = tpu.concatenate %139, %140, %141, %142, %143 in 0 : vector<16x8xf32>, vector<16x8xf32>, vector<16x8xf32>, vector<16x8xf32>, vector<16x8xf32> -> vector<80x8xf32>
      %cst_88 = arith.constant dense<0.000000e+00> : vector<16x8xf32>
      %145 = tpu.matmul %120, %144, %cst_88 {dimension_numbers = #tpu.dot_dimension_numbers<[1], [0], [0], [1], [0, 0, 1, 1], [], []>} : vector<16x80xf32>, vector<80x8xf32>, vector<16x8xf32> -> vector<16x8xf32>
      %146 = vector.broadcast %121 : vector<16x1xf32> to vector<16x8xf32>
      %147 = arith.addf %145, %146 : vector<16x8xf32>
      %cst_89 = arith.constant 0.000000e+00 : f32
      %148 = vector.broadcast %cst_89 : f32 to vector<16x8xf32>
      %149 = arith.maximumf %147, %148 : vector<16x8xf32>
      %cst_90 = arith.constant dense<0.000000e+00> : vector<16xf32>
      %150 = vector.multi_reduction <add>, %136, %cst_90 [1] : vector<16x8xf32> to vector<16xf32>
      %151 = vector.shape_cast %150 : vector<16xf32> to vector<16x1xf32>
      %cst_91 = arith.constant 0.000000e+00 : f32
      %152 = vector.broadcast %cst_91 : f32 to vector<16x1xf32>
      %153 = arith.addf %152, %151 : vector<16x1xf32>
      %cst_92 = arith.constant dense<0.000000e+00> : vector<16xf32>
      %154 = vector.multi_reduction <add>, %149, %cst_92 [1] : vector<16x8xf32> to vector<16xf32>
      %155 = vector.shape_cast %154 : vector<16xf32> to vector<16x1xf32>
      %156 = arith.addf %153, %155 : vector<16x1xf32>
      %cst_93 = arith.constant 6.250000e-02 : f32
      %157 = vector.broadcast %cst_93 : f32 to vector<16x1xf32>
      %158 = arith.mulf %156, %157 : vector<16x1xf32>
      %159 = vector.broadcast %158 : vector<16x1xf32> to vector<16x8xf32>
      %160 = arith.subf %136, %159 : vector<16x8xf32>
      %161 = vector.broadcast %158 : vector<16x1xf32> to vector<16x8xf32>
      %162 = arith.subf %149, %161 : vector<16x8xf32>
      %163 = arith.mulf %160, %160 : vector<16x8xf32>
      %cst_94 = arith.constant dense<0.000000e+00> : vector<16xf32>
      %164 = vector.multi_reduction <add>, %163, %cst_94 [1] : vector<16x8xf32> to vector<16xf32>
      %165 = vector.shape_cast %164 : vector<16xf32> to vector<16x1xf32>
      %cst_95 = arith.constant 0.000000e+00 : f32
      %166 = vector.broadcast %cst_95 : f32 to vector<16x1xf32>
      %167 = arith.addf %166, %165 : vector<16x1xf32>
      %168 = arith.mulf %162, %162 : vector<16x8xf32>
      %cst_96 = arith.constant dense<0.000000e+00> : vector<16xf32>
      %169 = vector.multi_reduction <add>, %168, %cst_96 [1] : vector<16x8xf32> to vector<16xf32>
      %170 = vector.shape_cast %169 : vector<16xf32> to vector<16x1xf32>
      %171 = arith.addf %167, %170 : vector<16x1xf32>
      %cst_97 = arith.constant 6.250000e-02 : f32
      %172 = vector.broadcast %cst_97 : f32 to vector<16x1xf32>
      %173 = arith.mulf %171, %172 : vector<16x1xf32>
      %cst_98 = arith.constant 9.99999974E-6 : f32
      %174 = vector.broadcast %cst_98 : f32 to vector<16x1xf32>
      %175 = arith.addf %173, %174 : vector<16x1xf32>
      %176 = math.rsqrt %175 : vector<16x1xf32>
      %177 = arith.mulf %122, %176 : vector<16x1xf32>
      %178 = vector.broadcast %177 : vector<16x1xf32> to vector<16x8xf32>
      %179 = arith.mulf %160, %178 : vector<16x8xf32>
      %180 = vector.broadcast %123 : vector<16x1xf32> to vector<16x8xf32>
      %181 = arith.addf %179, %180 : vector<16x8xf32>
      %c0_99 = arith.constant 0 : index
      %c0_100 = arith.constant 0 : index
      %c0_101 = arith.constant 0 : index
      %182 = vector.load %arg27[%c0_99, %c0_100, %c0_101] : memref<2x16x8xf32, #tpu.memory_space<vmem>>, vector<1x16x8xf32>
      %183 = vector.shape_cast %182 : vector<1x16x8xf32> to vector<16x8xf32>
      %184 = vector.shape_cast %181 : vector<16x8xf32> to vector<1x16x8xf32>
      tpu.vector_store %arg27[%c0_99, %c0_100, %c0_101], %184 {strides = array<i32>} : memref<2x16x8xf32, #tpu.memory_space<vmem>>, vector<1x16x8xf32>,
      %185 = vector.broadcast %177 : vector<16x1xf32> to vector<16x8xf32>
      %186 = arith.mulf %162, %185 : vector<16x8xf32>
      %187 = vector.broadcast %123 : vector<16x1xf32> to vector<16x8xf32>
      %188 = arith.addf %186, %187 : vector<16x8xf32>
      %c1_102 = arith.constant 1 : index
      %c0_103 = arith.constant 0 : index
      %c0_104 = arith.constant 0 : index
      %189 = vector.load %arg27[%c1_102, %c0_103, %c0_104] : memref<2x16x8xf32, #tpu.memory_space<vmem>>, vector<1x16x8xf32>
      %190 = vector.shape_cast %189 : vector<1x16x8xf32> to vector<16x8xf32>
      %191 = vector.shape_cast %188 : vector<16x8xf32> to vector<1x16x8xf32>
      tpu.vector_store %arg27[%c1_102, %c0_103, %c0_104], %191 {strides = array<i32>} : memref<2x16x8xf32, #tpu.memory_space<vmem>>, vector<1x16x8xf32>,
      tpu.yield
    }) : () -> ()
    "tpu.region"() ({
      %alloca = memref.alloca() : memref<2x16x8xf32, #tpu.memory_space<vmem>>
      %alloca_7 = memref.alloca() : memref<2x32x8xf32, #tpu.memory_space<vmem>>
      %cst = arith.constant 0.000000e+00 : f32
      %9 = vector.broadcast %cst : f32 to vector<2x16x2xf32>
      %c0_8 = arith.constant 0 : index
      %c0_9 = arith.constant 0 : index
      %c0_10 = arith.constant 0 : index
      %10 = vector.load %alloca[%c0_8, %c0_9, %c0_10] : memref<2x16x8xf32, #tpu.memory_space<vmem>>, vector<2x16x2xf32>
      tpu.vector_store %alloca[%c0_8, %c0_9, %c0_10], %9 {strides = array<i32>} : memref<2x16x8xf32, #tpu.memory_space<vmem>>, vector<2x16x2xf32>,
      %c0_11 = arith.constant 0 : index
      %c0_12 = arith.constant 0 : index
      %c6 = arith.constant 6 : index
      %11 = vector.load %alloca[%c0_11, %c0_12, %c6] : memref<2x16x8xf32, #tpu.memory_space<vmem>>, vector<2x16x2xf32>
      tpu.vector_store %alloca[%c0_11, %c0_12, %c6], %9 {strides = array<i32>} : memref<2x16x8xf32, #tpu.memory_space<vmem>>, vector<2x16x2xf32>,
      %c0_13 = arith.constant 0 : index
      %c0_14 = arith.constant 0 : index
      %c0_15 = arith.constant 0 : index
      %12 = vector.load %arg27[%c0_13, %c0_14, %c0_15] : memref<2x16x8xf32, #tpu.memory_space<vmem>>, vector<2x16x8xf32>
      %13 = vector.extract_strided_slice %12 {offsets = [0, 0, 0], sizes = [2, 16, 1], strides = [1, 1, 1]} : vector<2x16x8xf32> to vector<2x16x1xf32>
      %14 = vector.extract_strided_slice %12 {offsets = [0, 0, 1], sizes = [2, 16, 1], strides = [1, 1, 1]} : vector<2x16x8xf32> to vector<2x16x1xf32>
      %15 = arith.maximumf %13, %14 : vector<2x16x1xf32>
      %c0_16 = arith.constant 0 : index
      %c0_17 = arith.constant 0 : index
      %c2 = arith.constant 2 : index
      %16 = vector.load %alloca[%c0_16, %c0_17, %c2] : memref<2x16x8xf32, #tpu.memory_space<vmem>>, vector<2x16x1xf32>
      tpu.vector_store %alloca[%c0_16, %c0_17, %c2], %15 {strides = array<i32>} : memref<2x16x8xf32, #tpu.memory_space<vmem>>, vector<2x16x1xf32>,
      %17 = vector.extract_strided_slice %12 {offsets = [0, 0, 2], sizes = [2, 16, 1], strides = [1, 1, 1]} : vector<2x16x8xf32> to vector<2x16x1xf32>
      %18 = vector.extract_strided_slice %12 {offsets = [0, 0, 3], sizes = [2, 16, 1], strides = [1, 1, 1]} : vector<2x16x8xf32> to vector<2x16x1xf32>
      %19 = arith.maximumf %17, %18 : vector<2x16x1xf32>
      %c0_18 = arith.constant 0 : index
      %c0_19 = arith.constant 0 : index
      %c3 = arith.constant 3 : index
      %20 = vector.load %alloca[%c0_18, %c0_19, %c3] : memref<2x16x8xf32, #tpu.memory_space<vmem>>, vector<2x16x1xf32>
      tpu.vector_store %alloca[%c0_18, %c0_19, %c3], %19 {strides = array<i32>} : memref<2x16x8xf32, #tpu.memory_space<vmem>>, vector<2x16x1xf32>,
      %21 = vector.extract_strided_slice %12 {offsets = [0, 0, 4], sizes = [2, 16, 1], strides = [1, 1, 1]} : vector<2x16x8xf32> to vector<2x16x1xf32>
      %22 = vector.extract_strided_slice %12 {offsets = [0, 0, 5], sizes = [2, 16, 1], strides = [1, 1, 1]} : vector<2x16x8xf32> to vector<2x16x1xf32>
      %23 = arith.maximumf %21, %22 : vector<2x16x1xf32>
      %c0_20 = arith.constant 0 : index
      %c0_21 = arith.constant 0 : index
      %c4 = arith.constant 4 : index
      %24 = vector.load %alloca[%c0_20, %c0_21, %c4] : memref<2x16x8xf32, #tpu.memory_space<vmem>>, vector<2x16x1xf32>
      tpu.vector_store %alloca[%c0_20, %c0_21, %c4], %23 {strides = array<i32>} : memref<2x16x8xf32, #tpu.memory_space<vmem>>, vector<2x16x1xf32>,
      %25 = vector.extract_strided_slice %12 {offsets = [0, 0, 6], sizes = [2, 16, 1], strides = [1, 1, 1]} : vector<2x16x8xf32> to vector<2x16x1xf32>
      %26 = vector.extract_strided_slice %12 {offsets = [0, 0, 7], sizes = [2, 16, 1], strides = [1, 1, 1]} : vector<2x16x8xf32> to vector<2x16x1xf32>
      %27 = arith.maximumf %25, %26 : vector<2x16x1xf32>
      %c0_22 = arith.constant 0 : index
      %c0_23 = arith.constant 0 : index
      %c5 = arith.constant 5 : index
      %28 = vector.load %alloca[%c0_22, %c0_23, %c5] : memref<2x16x8xf32, #tpu.memory_space<vmem>>, vector<2x16x1xf32>
      tpu.vector_store %alloca[%c0_22, %c0_23, %c5], %27 {strides = array<i32>} : memref<2x16x8xf32, #tpu.memory_space<vmem>>, vector<2x16x1xf32>,
      %cst_24 = arith.constant 0.000000e+00 : f32
      %29 = vector.broadcast %cst_24 : f32 to vector<2x32x2xf32>
      %c0_25 = arith.constant 0 : index
      %c0_26 = arith.constant 0 : index
      %c0_27 = arith.constant 0 : index
      %30 = vector.load %alloca_7[%c0_25, %c0_26, %c0_27] : memref<2x32x8xf32, #tpu.memory_space<vmem>>, vector<2x32x2xf32>
      tpu.vector_store %alloca_7[%c0_25, %c0_26, %c0_27], %29 {strides = array<i32>} : memref<2x32x8xf32, #tpu.memory_space<vmem>>, vector<2x32x2xf32>,
      %c0_28 = arith.constant 0 : index
      %c0_29 = arith.constant 0 : index
      %c6_30 = arith.constant 6 : index
      %31 = vector.load %alloca_7[%c0_28, %c0_29, %c6_30] : memref<2x32x8xf32, #tpu.memory_space<vmem>>, vector<2x32x2xf32>
      tpu.vector_store %alloca_7[%c0_28, %c0_29, %c6_30], %29 {strides = array<i32>} : memref<2x32x8xf32, #tpu.memory_space<vmem>>, vector<2x32x2xf32>,
      %c0_31 = arith.constant 0 : index
      %c0_32 = arith.constant 0 : index
      %32 = vector.load %arg17[%c0_31, %c0_32] : memref<32x80xf32, #tpu.memory_space<vmem>>, vector<32x80xf32>
      %c0_33 = arith.constant 0 : index
      %c0_34 = arith.constant 0 : index
      %33 = vector.load %arg18[%c0_33, %c0_34] : memref<32x1xf32, #tpu.memory_space<vmem>>, vector<32x1xf32>
      %c0_35 = arith.constant 0 : index
      %c0_36 = arith.constant 0 : index
      %34 = vector.load %arg19[%c0_35, %c0_36] : memref<32x1xf32, #tpu.memory_space<vmem>>, vector<32x1xf32>
      %c0_37 = arith.constant 0 : index
      %c0_38 = arith.constant 0 : index
      %35 = vector.load %arg20[%c0_37, %c0_38] : memref<32x1xf32, #tpu.memory_space<vmem>>, vector<32x1xf32>
      %c0_39 = arith.constant 0 : index
      %c0_40 = arith.constant 0 : index
      %c0_41 = arith.constant 0 : index
      %36 = vector.load %alloca[%c0_39, %c0_40, %c0_41] : memref<2x16x8xf32, #tpu.memory_space<vmem>>, vector<1x16x8xf32>
      %37 = vector.shape_cast %36 : vector<1x16x8xf32> to vector<16x8xf32>
      %38 = vector.extract_strided_slice %37 {offsets = [0, 0], sizes = [16, 4], strides = [1, 1]} : vector<16x8xf32> to vector<16x4xf32>
      %39 = vector.extract_strided_slice %37 {offsets = [0, 1], sizes = [16, 4], strides = [1, 1]} : vector<16x8xf32> to vector<16x4xf32>
      %40 = vector.extract_strided_slice %37 {offsets = [0, 2], sizes = [16, 4], strides = [1, 1]} : vector<16x8xf32> to vector<16x4xf32>
      %41 = vector.extract_strided_slice %37 {offsets = [0, 3], sizes = [16, 4], strides = [1, 1]} : vector<16x8xf32> to vector<16x4xf32>
      %42 = vector.extract_strided_slice %37 {offsets = [0, 4], sizes = [16, 4], strides = [1, 1]} : vector<16x8xf32> to vector<16x4xf32>
      %43 = tpu.concatenate %38, %39, %40, %41, %42 in 0 : vector<16x4xf32>, vector<16x4xf32>, vector<16x4xf32>, vector<16x4xf32>, vector<16x4xf32> -> vector<80x4xf32>
      %cst_42 = arith.constant dense<0.000000e+00> : vector<32x4xf32>
      %44 = tpu.matmul %32, %43, %cst_42 {dimension_numbers = #tpu.dot_dimension_numbers<[1], [0], [0], [1], [0, 0, 1, 1], [], []>} : vector<32x80xf32>, vector<80x4xf32>, vector<32x4xf32> -> vector<32x4xf32>
      %45 = vector.broadcast %33 : vector<32x1xf32> to vector<32x4xf32>
      %46 = arith.addf %44, %45 : vector<32x4xf32>
      %cst_43 = arith.constant 0.000000e+00 : f32
      %47 = vector.broadcast %cst_43 : f32 to vector<32x4xf32>
      %48 = arith.maximumf %46, %47 : vector<32x4xf32>
      %c1_44 = arith.constant 1 : index
      %c0_45 = arith.constant 0 : index
      %c0_46 = arith.constant 0 : index
      %49 = vector.load %alloca[%c1_44, %c0_45, %c0_46] : memref<2x16x8xf32, #tpu.memory_space<vmem>>, vector<1x16x8xf32>
      %50 = vector.shape_cast %49 : vector<1x16x8xf32> to vector<16x8xf32>
      %51 = vector.extract_strided_slice %50 {offsets = [0, 0], sizes = [16, 4], strides = [1, 1]} : vector<16x8xf32> to vector<16x4xf32>
      %52 = vector.extract_strided_slice %50 {offsets = [0, 1], sizes = [16, 4], strides = [1, 1]} : vector<16x8xf32> to vector<16x4xf32>
      %53 = vector.extract_strided_slice %50 {offsets = [0, 2], sizes = [16, 4], strides = [1, 1]} : vector<16x8xf32> to vector<16x4xf32>
      %54 = vector.extract_strided_slice %50 {offsets = [0, 3], sizes = [16, 4], strides = [1, 1]} : vector<16x8xf32> to vector<16x4xf32>
      %55 = vector.extract_strided_slice %50 {offsets = [0, 4], sizes = [16, 4], strides = [1, 1]} : vector<16x8xf32> to vector<16x4xf32>
      %56 = tpu.concatenate %51, %52, %53, %54, %55 in 0 : vector<16x4xf32>, vector<16x4xf32>, vector<16x4xf32>, vector<16x4xf32>, vector<16x4xf32> -> vector<80x4xf32>
      %cst_47 = arith.constant dense<0.000000e+00> : vector<32x4xf32>
      %57 = tpu.matmul %32, %56, %cst_47 {dimension_numbers = #tpu.dot_dimension_numbers<[1], [0], [0], [1], [0, 0, 1, 1], [], []>} : vector<32x80xf32>, vector<80x4xf32>, vector<32x4xf32> -> vector<32x4xf32>
      %58 = vector.broadcast %33 : vector<32x1xf32> to vector<32x4xf32>
      %59 = arith.addf %57, %58 : vector<32x4xf32>
      %cst_48 = arith.constant 0.000000e+00 : f32
      %60 = vector.broadcast %cst_48 : f32 to vector<32x4xf32>
      %61 = arith.maximumf %59, %60 : vector<32x4xf32>
      %cst_49 = arith.constant dense<0.000000e+00> : vector<32xf32>
      %62 = vector.multi_reduction <add>, %48, %cst_49 [1] : vector<32x4xf32> to vector<32xf32>
      %63 = vector.shape_cast %62 : vector<32xf32> to vector<32x1xf32>
      %cst_50 = arith.constant 0.000000e+00 : f32
      %64 = vector.broadcast %cst_50 : f32 to vector<32x1xf32>
      %65 = arith.addf %64, %63 : vector<32x1xf32>
      %cst_51 = arith.constant dense<0.000000e+00> : vector<32xf32>
      %66 = vector.multi_reduction <add>, %61, %cst_51 [1] : vector<32x4xf32> to vector<32xf32>
      %67 = vector.shape_cast %66 : vector<32xf32> to vector<32x1xf32>
      %68 = arith.addf %65, %67 : vector<32x1xf32>
      %cst_52 = arith.constant 1.250000e-01 : f32
      %69 = vector.broadcast %cst_52 : f32 to vector<32x1xf32>
      %70 = arith.mulf %68, %69 : vector<32x1xf32>
      %71 = vector.broadcast %70 : vector<32x1xf32> to vector<32x4xf32>
      %72 = arith.subf %48, %71 : vector<32x4xf32>
      %73 = vector.broadcast %70 : vector<32x1xf32> to vector<32x4xf32>
      %74 = arith.subf %61, %73 : vector<32x4xf32>
      %75 = arith.mulf %72, %72 : vector<32x4xf32>
      %cst_53 = arith.constant dense<0.000000e+00> : vector<32xf32>
      %76 = vector.multi_reduction <add>, %75, %cst_53 [1] : vector<32x4xf32> to vector<32xf32>
      %77 = vector.shape_cast %76 : vector<32xf32> to vector<32x1xf32>
      %cst_54 = arith.constant 0.000000e+00 : f32
      %78 = vector.broadcast %cst_54 : f32 to vector<32x1xf32>
      %79 = arith.addf %78, %77 : vector<32x1xf32>
      %80 = arith.mulf %74, %74 : vector<32x4xf32>
      %cst_55 = arith.constant dense<0.000000e+00> : vector<32xf32>
      %81 = vector.multi_reduction <add>, %80, %cst_55 [1] : vector<32x4xf32> to vector<32xf32>
      %82 = vector.shape_cast %81 : vector<32xf32> to vector<32x1xf32>
      %83 = arith.addf %79, %82 : vector<32x1xf32>
      %cst_56 = arith.constant 1.250000e-01 : f32
      %84 = vector.broadcast %cst_56 : f32 to vector<32x1xf32>
      %85 = arith.mulf %83, %84 : vector<32x1xf32>
      %cst_57 = arith.constant 9.99999974E-6 : f32
      %86 = vector.broadcast %cst_57 : f32 to vector<32x1xf32>
      %87 = arith.addf %85, %86 : vector<32x1xf32>
      %88 = math.rsqrt %87 : vector<32x1xf32>
      %89 = arith.mulf %34, %88 : vector<32x1xf32>
      %90 = vector.broadcast %89 : vector<32x1xf32> to vector<32x4xf32>
      %91 = arith.mulf %72, %90 : vector<32x4xf32>
      %92 = vector.broadcast %35 : vector<32x1xf32> to vector<32x4xf32>
      %93 = arith.addf %91, %92 : vector<32x4xf32>
      %c0_58 = arith.constant 0 : index
      %c0_59 = arith.constant 0 : index
      %c2_60 = arith.constant 2 : index
      %94 = vector.load %alloca_7[%c0_58, %c0_59, %c2_60] : memref<2x32x8xf32, #tpu.memory_space<vmem>>, vector<1x32x4xf32>
      %95 = vector.shape_cast %94 : vector<1x32x4xf32> to vector<32x4xf32>
      %96 = vector.shape_cast %93 : vector<32x4xf32> to vector<1x32x4xf32>
      tpu.vector_store %alloca_7[%c0_58, %c0_59, %c2_60], %96 {strides = array<i32>} : memref<2x32x8xf32, #tpu.memory_space<vmem>>, vector<1x32x4xf32>,
      %97 = vector.broadcast %89 : vector<32x1xf32> to vector<32x4xf32>
      %98 = arith.mulf %74, %97 : vector<32x4xf32>
      %99 = vector.broadcast %35 : vector<32x1xf32> to vector<32x4xf32>
      %100 = arith.addf %98, %99 : vector<32x4xf32>
      %c1_61 = arith.constant 1 : index
      %c0_62 = arith.constant 0 : index
      %c2_63 = arith.constant 2 : index
      %101 = vector.load %alloca_7[%c1_61, %c0_62, %c2_63] : memref<2x32x8xf32, #tpu.memory_space<vmem>>, vector<1x32x4xf32>
      %102 = vector.shape_cast %101 : vector<1x32x4xf32> to vector<32x4xf32>
      %103 = vector.shape_cast %100 : vector<32x4xf32> to vector<1x32x4xf32>
      tpu.vector_store %alloca_7[%c1_61, %c0_62, %c2_63], %103 {strides = array<i32>} : memref<2x32x8xf32, #tpu.memory_space<vmem>>, vector<1x32x4xf32>,
      %c0_64 = arith.constant 0 : index
      %c0_65 = arith.constant 0 : index
      %104 = vector.load %arg21[%c0_64, %c0_65] : memref<32x160xf32, #tpu.memory_space<vmem>>, vector<32x160xf32>
      %c0_66 = arith.constant 0 : index
      %c0_67 = arith.constant 0 : index
      %105 = vector.load %arg22[%c0_66, %c0_67] : memref<32x1xf32, #tpu.memory_space<vmem>>, vector<32x1xf32>
      %c0_68 = arith.constant 0 : index
      %c0_69 = arith.constant 0 : index
      %106 = vector.load %arg23[%c0_68, %c0_69] : memref<32x1xf32, #tpu.memory_space<vmem>>, vector<32x1xf32>
      %c0_70 = arith.constant 0 : index
      %c0_71 = arith.constant 0 : index
      %107 = vector.load %arg24[%c0_70, %c0_71] : memref<32x1xf32, #tpu.memory_space<vmem>>, vector<32x1xf32>
      %c0_72 = arith.constant 0 : index
      %c0_73 = arith.constant 0 : index
      %c0_74 = arith.constant 0 : index
      %108 = vector.load %alloca_7[%c0_72, %c0_73, %c0_74] : memref<2x32x8xf32, #tpu.memory_space<vmem>>, vector<1x32x8xf32>
      %109 = vector.shape_cast %108 : vector<1x32x8xf32> to vector<32x8xf32>
      %110 = vector.extract_strided_slice %109 {offsets = [0, 0], sizes = [32, 4], strides = [1, 1]} : vector<32x8xf32> to vector<32x4xf32>
      %111 = vector.extract_strided_slice %109 {offsets = [0, 1], sizes = [32, 4], strides = [1, 1]} : vector<32x8xf32> to vector<32x4xf32>
      %112 = vector.extract_strided_slice %109 {offsets = [0, 2], sizes = [32, 4], strides = [1, 1]} : vector<32x8xf32> to vector<32x4xf32>
      %113 = vector.extract_strided_slice %109 {offsets = [0, 3], sizes = [32, 4], strides = [1, 1]} : vector<32x8xf32> to vector<32x4xf32>
      %114 = vector.extract_strided_slice %109 {offsets = [0, 4], sizes = [32, 4], strides = [1, 1]} : vector<32x8xf32> to vector<32x4xf32>
      %115 = tpu.concatenate %110, %111, %112, %113, %114 in 0 : vector<32x4xf32>, vector<32x4xf32>, vector<32x4xf32>, vector<32x4xf32>, vector<32x4xf32> -> vector<160x4xf32>
      %cst_75 = arith.constant dense<0.000000e+00> : vector<32x4xf32>
      %116 = tpu.matmul %104, %115, %cst_75 {dimension_numbers = #tpu.dot_dimension_numbers<[1], [0], [0], [1], [0, 0, 1, 1], [], []>} : vector<32x160xf32>, vector<160x4xf32>, vector<32x4xf32> -> vector<32x4xf32>
      %117 = vector.broadcast %105 : vector<32x1xf32> to vector<32x4xf32>
      %118 = arith.addf %116, %117 : vector<32x4xf32>
      %cst_76 = arith.constant 0.000000e+00 : f32
      %119 = vector.broadcast %cst_76 : f32 to vector<32x4xf32>
      %120 = arith.maximumf %118, %119 : vector<32x4xf32>
      %c1_77 = arith.constant 1 : index
      %c0_78 = arith.constant 0 : index
      %c0_79 = arith.constant 0 : index
      %121 = vector.load %alloca_7[%c1_77, %c0_78, %c0_79] : memref<2x32x8xf32, #tpu.memory_space<vmem>>, vector<1x32x8xf32>
      %122 = vector.shape_cast %121 : vector<1x32x8xf32> to vector<32x8xf32>
      %123 = vector.extract_strided_slice %122 {offsets = [0, 0], sizes = [32, 4], strides = [1, 1]} : vector<32x8xf32> to vector<32x4xf32>
      %124 = vector.extract_strided_slice %122 {offsets = [0, 1], sizes = [32, 4], strides = [1, 1]} : vector<32x8xf32> to vector<32x4xf32>
      %125 = vector.extract_strided_slice %122 {offsets = [0, 2], sizes = [32, 4], strides = [1, 1]} : vector<32x8xf32> to vector<32x4xf32>
      %126 = vector.extract_strided_slice %122 {offsets = [0, 3], sizes = [32, 4], strides = [1, 1]} : vector<32x8xf32> to vector<32x4xf32>
      %127 = vector.extract_strided_slice %122 {offsets = [0, 4], sizes = [32, 4], strides = [1, 1]} : vector<32x8xf32> to vector<32x4xf32>
      %128 = tpu.concatenate %123, %124, %125, %126, %127 in 0 : vector<32x4xf32>, vector<32x4xf32>, vector<32x4xf32>, vector<32x4xf32>, vector<32x4xf32> -> vector<160x4xf32>
      %cst_80 = arith.constant dense<0.000000e+00> : vector<32x4xf32>
      %129 = tpu.matmul %104, %128, %cst_80 {dimension_numbers = #tpu.dot_dimension_numbers<[1], [0], [0], [1], [0, 0, 1, 1], [], []>} : vector<32x160xf32>, vector<160x4xf32>, vector<32x4xf32> -> vector<32x4xf32>
      %130 = vector.broadcast %105 : vector<32x1xf32> to vector<32x4xf32>
      %131 = arith.addf %129, %130 : vector<32x4xf32>
      %cst_81 = arith.constant 0.000000e+00 : f32
      %132 = vector.broadcast %cst_81 : f32 to vector<32x4xf32>
      %133 = arith.maximumf %131, %132 : vector<32x4xf32>
      %cst_82 = arith.constant dense<0.000000e+00> : vector<32xf32>
      %134 = vector.multi_reduction <add>, %120, %cst_82 [1] : vector<32x4xf32> to vector<32xf32>
      %135 = vector.shape_cast %134 : vector<32xf32> to vector<32x1xf32>
      %cst_83 = arith.constant 0.000000e+00 : f32
      %136 = vector.broadcast %cst_83 : f32 to vector<32x1xf32>
      %137 = arith.addf %136, %135 : vector<32x1xf32>
      %cst_84 = arith.constant dense<0.000000e+00> : vector<32xf32>
      %138 = vector.multi_reduction <add>, %133, %cst_84 [1] : vector<32x4xf32> to vector<32xf32>
      %139 = vector.shape_cast %138 : vector<32xf32> to vector<32x1xf32>
      %140 = arith.addf %137, %139 : vector<32x1xf32>
      %cst_85 = arith.constant 1.250000e-01 : f32
      %141 = vector.broadcast %cst_85 : f32 to vector<32x1xf32>
      %142 = arith.mulf %140, %141 : vector<32x1xf32>
      %143 = vector.broadcast %142 : vector<32x1xf32> to vector<32x4xf32>
      %144 = arith.subf %120, %143 : vector<32x4xf32>
      %145 = vector.broadcast %142 : vector<32x1xf32> to vector<32x4xf32>
      %146 = arith.subf %133, %145 : vector<32x4xf32>
      %147 = arith.mulf %144, %144 : vector<32x4xf32>
      %cst_86 = arith.constant dense<0.000000e+00> : vector<32xf32>
      %148 = vector.multi_reduction <add>, %147, %cst_86 [1] : vector<32x4xf32> to vector<32xf32>
      %149 = vector.shape_cast %148 : vector<32xf32> to vector<32x1xf32>
      %cst_87 = arith.constant 0.000000e+00 : f32
      %150 = vector.broadcast %cst_87 : f32 to vector<32x1xf32>
      %151 = arith.addf %150, %149 : vector<32x1xf32>
      %152 = arith.mulf %146, %146 : vector<32x4xf32>
      %cst_88 = arith.constant dense<0.000000e+00> : vector<32xf32>
      %153 = vector.multi_reduction <add>, %152, %cst_88 [1] : vector<32x4xf32> to vector<32xf32>
      %154 = vector.shape_cast %153 : vector<32xf32> to vector<32x1xf32>
      %155 = arith.addf %151, %154 : vector<32x1xf32>
      %cst_89 = arith.constant 1.250000e-01 : f32
      %156 = vector.broadcast %cst_89 : f32 to vector<32x1xf32>
      %157 = arith.mulf %155, %156 : vector<32x1xf32>
      %cst_90 = arith.constant 9.99999974E-6 : f32
      %158 = vector.broadcast %cst_90 : f32 to vector<32x1xf32>
      %159 = arith.addf %157, %158 : vector<32x1xf32>
      %160 = math.rsqrt %159 : vector<32x1xf32>
      %161 = arith.mulf %106, %160 : vector<32x1xf32>
      %162 = vector.broadcast %161 : vector<32x1xf32> to vector<32x4xf32>
      %163 = arith.mulf %144, %162 : vector<32x4xf32>
      %164 = vector.broadcast %107 : vector<32x1xf32> to vector<32x4xf32>
      %165 = arith.addf %163, %164 : vector<32x4xf32>
      %c0_91 = arith.constant 0 : index
      %c0_92 = arith.constant 0 : index
      %c0_93 = arith.constant 0 : index
      %166 = vector.load %arg28[%c0_91, %c0_92, %c0_93] : memref<2x32x4xf32, #tpu.memory_space<vmem>>, vector<1x32x4xf32>
      %167 = vector.shape_cast %166 : vector<1x32x4xf32> to vector<32x4xf32>
      %168 = vector.shape_cast %165 : vector<32x4xf32> to vector<1x32x4xf32>
      tpu.vector_store %arg28[%c0_91, %c0_92, %c0_93], %168 {strides = array<i32>} : memref<2x32x4xf32, #tpu.memory_space<vmem>>, vector<1x32x4xf32>,
      %169 = vector.broadcast %161 : vector<32x1xf32> to vector<32x4xf32>
      %170 = arith.mulf %146, %169 : vector<32x4xf32>
      %171 = vector.broadcast %107 : vector<32x1xf32> to vector<32x4xf32>
      %172 = arith.addf %170, %171 : vector<32x4xf32>
      %c1_94 = arith.constant 1 : index
      %c0_95 = arith.constant 0 : index
      %c0_96 = arith.constant 0 : index
      %173 = vector.load %arg28[%c1_94, %c0_95, %c0_96] : memref<2x32x4xf32, #tpu.memory_space<vmem>>, vector<1x32x4xf32>
      %174 = vector.shape_cast %173 : vector<1x32x4xf32> to vector<32x4xf32>
      %175 = vector.shape_cast %172 : vector<32x4xf32> to vector<1x32x4xf32>
      tpu.vector_store %arg28[%c1_94, %c0_95, %c0_96], %175 {strides = array<i32>} : memref<2x32x4xf32, #tpu.memory_space<vmem>>, vector<1x32x4xf32>,
      tpu.yield
    }) : () -> ()
    %c0 = arith.constant 0 : index
    %c0_0 = arith.constant 0 : index
    %c0_1 = arith.constant 0 : index
    %0 = vector.load %arg28[%c0, %c0_0, %c0_1] : memref<2x32x4xf32, #tpu.memory_space<vmem>>, vector<2x32x4xf32>
    %1 = vector.extract_strided_slice %0 {offsets = [0, 0, 0], sizes = [2, 32, 1], strides = [1, 1, 1]} : vector<2x32x4xf32> to vector<2x32x1xf32>
    %2 = vector.extract_strided_slice %0 {offsets = [0, 0, 1], sizes = [2, 32, 1], strides = [1, 1, 1]} : vector<2x32x4xf32> to vector<2x32x1xf32>
    %3 = arith.maximumf %1, %2 : vector<2x32x1xf32>
    %c0_2 = arith.constant 0 : index
    %c0_3 = arith.constant 0 : index
    %c0_4 = arith.constant 0 : index
    %4 = vector.load %arg25[%c0_2, %c0_3, %c0_4] : memref<2x32x2xf32, #tpu.memory_space<vmem>>, vector<2x32x1xf32>
    tpu.vector_store %arg25[%c0_2, %c0_3, %c0_4], %3 {strides = array<i32>} : memref<2x32x2xf32, #tpu.memory_space<vmem>>, vector<2x32x1xf32>,
    %5 = vector.extract_strided_slice %0 {offsets = [0, 0, 2], sizes = [2, 32, 1], strides = [1, 1, 1]} : vector<2x32x4xf32> to vector<2x32x1xf32>
    %6 = vector.extract_strided_slice %0 {offsets = [0, 0, 3], sizes = [2, 32, 1], strides = [1, 1, 1]} : vector<2x32x4xf32> to vector<2x32x1xf32>
    %7 = arith.maximumf %5, %6 : vector<2x32x1xf32>
    %c0_5 = arith.constant 0 : index
    %c0_6 = arith.constant 0 : index
    %c1 = arith.constant 1 : index
    %8 = vector.load %arg25[%c0_5, %c0_6, %c1] : memref<2x32x2xf32, #tpu.memory_space<vmem>>, vector<2x32x1xf32>
    tpu.vector_store %arg25[%c0_5, %c0_6, %c1], %7 {strides = array<i32>} : memref<2x32x2xf32, #tpu.memory_space<vmem>>, vector<2x32x1xf32>,
    return
  }
}

</mosaic_0001>

<bundles_post_ra>
// kernel: tpu_custom_call.1
= control target key start
LH: loop header
LB: loop body
LE: loop exit
PB: predicated region body
PF: predicated region fallthrough
CT: control target
= control target key end

     0   :  { %s4013_s0 = inlined_call_operand.vmem [shape: f32[2,4,16], index: 0, kind: input, shape index: {}]   ;;  %s4014_s1 = inlined_call_operand.vmem [shape: f32[8,40], index: 1, kind: input, shape index: {}]   ;;  %s4015_s2 = inlined_call_operand.vmem [shape: f32[8,1], index: 2, kind: input, shape index: {}]   ;;  %s4016_s3 = inlined_call_operand.vmem [shape: f32[8,1], index: 3, kind: input, shape index: {}]   ;;  %s4017_s4 = inlined_call_operand.vmem [shape: f32[8,1], index: 4, kind: input, shape index: {}]   ;;  %s4018_s5 = inlined_call_operand.vmem [shape: f32[8,40], index: 5, kind: input, shape index: {}]   ;;  %s4019_s6 = inlined_call_operand.vmem [shape: f32[8,1], index: 6, kind: input, shape index: {}]   ;;  %s4020_s7 = inlined_call_operand.vmem [shape: f32[8,1], index: 7, kind: input, shape index: {}]   ;;  %s4021_s8 = inlined_call_operand.vmem [shape: f32[8,1], index: 8, kind: input, shape index: {}]   ;;  %s4022_s9 = inlined_call_operand.vmem [shape: f32[16,40], index: 9, kind: input, shape index: {}]   ;;  %s4023_s10 = inlined_call_operand.vmem [shape: f32[16,1], index: 10, kind: input, shape index: {}]   ;;  %s4024_s11 = inlined_call_operand.vmem [shape: f32[16,1], index: 11, kind: input, shape index: {}]   ;;  %s4025_s12 = inlined_call_operand.vmem [shape: f32[16,1], index: 12, kind: input, shape index: {}]   ;;  %s4026_s13 = inlined_call_operand.vmem [shape: f32[16,80], index: 13, kind: input, shape index: {}]   ;;  %s4027_s14 = inlined_call_operand.vmem [shape: f32[16,1], index: 14, kind: input, shape index: {}]   ;;  %s4028_s15 = inlined_call_operand.vmem [shape: f32[16,1], index: 15, kind: input, shape index: {}]   ;;  %s4029_s16 = inlined_call_operand.vmem [shape: f32[16,1], index: 16, kind: input, shape index: {}]   ;;  %s4030_s17 = inlined_call_operand.vmem [shape: f32[32,80], index: 17, kind: input, shape index: {}]   ;;  %s4031_s18 = inlined_call_operand.vmem [shape: f32[32,1], index: 18, kind: input, shape index: {}]   ;;  %s4032_s19 = inlined_call_operand.vmem [shape: f32[32,1], index: 19, kind: input, shape index: {}]   ;;  %s4033_s20 = inlined_call_operand.vmem [shape: f32[32,1], index: 20, kind: input, shape index: {}]   ;;  %s4034_s21 = inlined_call_operand.vmem [shape: f32[32,160], index: 21, kind: input, shape index: {}]   ;;  %s4035_s22 = inlined_call_operand.vmem [shape: f32[32,1], index: 22, kind: input, shape index: {}]   ;;  %s4036_s23 = inlined_call_operand.vmem [shape: f32[32,1], index: 23, kind: input, shape index: {}]   ;;  %s4037_s24 = inlined_call_operand.vmem [shape: f32[32,1], index: 24, kind: input, shape index: {}]   ;;  %s4038_s25 = inlined_call_operand.vmem [shape: f32[2,32,2], index: 25, kind: output, shape index: {0}]   ;;  %s4039_s26 = inlined_call_operand.hbm [shape: f32[2,8,16], index: 26, kind: output, shape index: {1}]   ;;  %s4040_s27 = inlined_call_operand.vmem [shape: f32[2,16,8], index: 27, kind: output, shape index: {2}]   ;;  %s4041_s28 = inlined_call_operand.vmem [shape: f32[2,32,4], index: 28, kind: output, shape index: {3}]  }
   0x1   :  { %4047 = sst [smem:[#allocation11_spill]] %s4013_s0 }
   0x2   :  { %4048 = sst [smem:[#allocation12_spill]] %s4014_s1 }
   0x3   :  { %4049 = sst [smem:[#allocation13_spill]] %s4015_s2 }
   0x4   :  { %4050 = sst [smem:[#allocation14_spill]] %s4016_s3 }
   0x5   :  { %4051 = sst [smem:[#allocation15_spill]] %s4017_s4 }
   0x6   :  { %4052 = sst [smem:[#allocation16_spill]] %s4018_s5 }
   0x7   :  { %4053 = sst [smem:[#allocation17_spill]] %s4019_s6 }
   0x8   :  { %4054 = sst [smem:[#allocation18_spill]] %s4020_s7 }
   0x9   :  { %4055 = sst [smem:[#allocation19_spill]] %s4021_s8 }
   0xa   :  { %4056 = sst [smem:[#allocation20_spill]] %s4022_s9 }
   0xb   :  { %4057 = sst [smem:[#allocation21_spill]] %s4023_s10 }
   0xc   :  { %4058 = sst [smem:[#allocation22_spill]] %s4024_s11 }
   0xd   :  { %4059 = sst [smem:[#allocation23_spill]] %s4025_s12 }
   0xe   :  { %34 = vsyncpa [#allocation3], 0 }
   0xf   :  { %s4060_s9 = sld [smem:[#allocation11_spill]]  ;;  %s2904_s30 = smov 2   ;;  %vm85_vm0 = vcmask 15360   ;;  %vm88_vm1 = vcmask 162960   ;;  %vm91_vm2 = vcmask 158720   ;;  %v2905_v2 = vmov 0.0  }
  0x10   :  { %86 = vst.msk [vmem:[#allocation4] sm:$0xff] %vm85_vm0, %v2905_v2  ;;  %87 = vst.msk [vmem:[#allocation4 + $0x8] sm:$0xff] %vm85_vm0, %v2905_v2  ;;  %2643 = vmatprep.subr.mxu0 %v2905_v2  ;;  %2656 = vmatprep.subr.mxu1 %v2905_v2  ;;  %vm104_vm3 = vcmask 142352   ;;  %s2906_s10 = smov 125   ;;  %s2907_s0 = smov 124   ;;  %vm2908_vm4 = vmmov 0  }
  0x11   :  { %107 = vst.msk [vmem:[#allocation5] sm:$0xff] %vm85_vm0, %v2905_v2  ;;  %108 = vst.msk [vmem:[#allocation5 + $0x8] sm:$0xff] %vm85_vm0, %v2905_v2  ;;  %2653 = vmatprep.mubr.msk.f32.mxu0 %vm2908_vm4, %v2905_v2  ;;  %2666 = vmatprep.mubr.msk.f32.mxu1 %vm2908_vm4, %v2905_v2  ;;  %s2909_s11 = smov 126   ;;  %v2910_v7 = vmov 0   ;;  %s2911_s29 = smov 127   ;;  %vm134_vm5 = vcmask 326656  }
  0x12   :  { %89 = vst.msk [vmem:[#allocation4] sm:$0xff] %vm88_vm1, %v2905_v2  ;;  %90 = vst.msk [vmem:[#allocation4 + $0x8] sm:$0xff] %vm88_vm1, %v2905_v2  ;;  %2848 = vset.pattern.permute.xlu0 %v2910_v7  ;;  %2849 = vset.pattern.permute.xlu1 %v2910_v7  ;;  %s4061_s12 = sld [smem:[#allocation13_spill]]  ;;  %vm295_vm6 = vcmask 130048   ;;  %vm337_vm7 = vcmask 146448  }
  0x13   :  { %109 = vst.msk [vmem:[#allocation5] sm:$0xff] %vm88_vm1, %v2905_v2  ;;  %110 = vst.msk [vmem:[#allocation5 + $0x8] sm:$0xff] %vm88_vm1, %v2905_v2  ;;  %s4062_s8 = sld [smem:[#allocation12_spill]] }
  0x14   :  { %92 = vst.msk [vmem:[#allocation4 + $0x4] sm:$0xf] %vm91_vm2, %v2905_v2  ;;  %93 = vst.msk [vmem:[#allocation4 + $0xc] sm:$0xf] %vm91_vm2, %v2905_v2  ;;  %s4063_s3 = sld [smem:[#allocation15_spill]] }
  0x15   :  { %v94_v0 = vld [vmem:[%s4060_s9] sm:$0xf]  ;;  %v95_v1 = vld [vmem:[%s4060_s9 + $0x4] sm:$0xf]  ;;  %s4064_s7 = sld [smem:[#allocation14_spill]] }
  0x16   :  { %98 = vrot.lane.b32.xlu0 %v94_v0, %s2904_s30  ;;  %s4065_s1 = sld [smem:[#allocation17_spill]] }
  0x18   :  { %v112_v8 = vld [vmem:[%s4061_s12] sm:$0xff] }
  0x19   :  { %v111_v15 = vld [vmem:[%s4062_s8] sm:$0xff]  ;;  %s4067_s8 = sld [smem:[#allocation19_spill]] }
  0x1a   :  { %100 = vrot.lane.b32.xlu0 %v95_v1, %s2904_s30  ;;  %v114_v39 = vld [vmem:[%s4063_s3] sm:$0xff]  ;;  %s4068_s3 = sld [smem:[#allocation18_spill]] }
  0x1b   :  { %v113_v45 = vld [vmem:[%s4064_s7] sm:$0xff] }
  0x1c   :  { %v348_v58 = vld [vmem:[%s4065_s1] sm:$0xff] }
  0x88   :  { %v99_v3 = vpop.permute.xlu0 %98 }
  0x89   :  { %105 = vst.msk [vmem:[#allocation4] sm:$0xf] %vm104_vm3, %v99_v3 }
  0x8c   :  { %v101_v4 = vpop.permute.xlu0 %100 }
  0x8d   :  { %106 = vst.msk [vmem:[#allocation4 + $0x8] sm:$0xf] %vm104_vm3, %v101_v4 }
  0x90   :  { %v115_v5 = vld [vmem:[#allocation4] sm:$0xff] }
  0x91   :  { %123 = vrot.lane.b32.xlu0 %v115_v5, %s2906_s10  ;;  %126 = vrot.lane.b32.xlu1 %v115_v5, %s2907_s0 }
  0x94   :  { %v210_v6 = vld [vmem:[#allocation4 + $0x8] sm:$0xff] }
  0x95   :  { %120 = vrot.lane.b32.xlu0 %v115_v5, %s2909_s11  ;;  %221 = vrot.lane.b32.xlu1 %v210_v6, %s2907_s0 }
  0x99   :  { %117 = vrot.lane.b32.xlu0 %v115_v5, %s2911_s29  ;;  %218 = vrot.lane.b32.xlu1 %v210_v6, %s2906_s10 }
  0x9d   :  { %215 = vrot.lane.b32.xlu1 %v210_v6, %s2909_s11  ;;  %131 = vperm.xlu0 %2848, %v112_v8  }
  0xa1   :  { %212 = vrot.lane.b32.xlu1 %v210_v6, %s2911_s29 }
 0x103   :  { %v124_v9 = vpop.permute.xlu0 %123  ;;  %v127_v10 = vpop.permute.xlu1 %126 }
 0x104   :  { %2644 = vmatpush3.msra.mxu0 %v127_v10 }
 0x105   :  { %2645 = vmatprep.subr.mxu0 %v2905_v2 }
 0x106   :  { %2646 = vmatpush3.msra.mxu0 %v124_v9 }
 0x107   :  { %v121_v11 = vpop.permute.xlu0 %120  ;;  %2647 = vmatprep.subr.mxu0 %v2905_v2  ;;  %v222_v12 = vpop.permute.xlu1 %221 }
 0x108   :  { %2648 = vmatpush3.msra.mxu0 %v121_v11  ;;  %2657 = vmatpush3.msra.mxu1 %v222_v12 }
 0x109   :  { %2649 = vmatprep.subr.mxu0 %v2905_v2  ;;  %2658 = vmatprep.subr.mxu1 %v2905_v2 }
 0x10b   :  { %v118_v13 = vpop.permute.xlu0 %117  ;;  %v219_v14 = vpop.permute.xlu1 %218 }
 0x10c   :  { %2650 = vmatpush3.msra.mxu0 %v118_v13  ;;  %2659 = vmatpush3.msra.mxu1 %v219_v14 }
 0x10d   :  { %2651 = vmatprep.subr.mxu0 %v2905_v2  ;;  %2660 = vmatprep.subr.mxu1 %v2905_v2 }
 0x10e   :  { %2652 = vmatpush3.msra.mxu0 %v115_v5 }
 0x10f   :  { %v216_v16 = vpop.permute.xlu1 %215  ;;  %2654 = vmatmul.mubr.msk.f32.vlgmr.msra.gmra.mxu0 %vm134_vm5, %v111_v15  ;;  %2669 = vmatprep.subr.mxu0 %v2905_v2 }
 0x110   :  { %2661 = vmatpush3.msra.mxu1 %v216_v16  ;;  %2679 = vmatprep.mubr.msk.f32.mxu0 %vm2908_vm4, %v2905_v2 }
 0x111   :  { %2662 = vmatprep.subr.mxu1 %v2905_v2 }
 0x113   :  { %v213_v17 = vpop.permute.xlu1 %212 }
 0x114   :  { %2663 = vmatpush3.msra.mxu1 %v213_v17 }
 0x115   :  { %2664 = vmatprep.subr.mxu1 %v2905_v2 }
 0x116   :  { %2665 = vmatpush3.msra.mxu1 %v210_v6 }
 0x117   :  { %2667 = vmatmul.mubr.msk.f32.vlgmr.msra.gmra.mxu1 %vm134_vm5, %v111_v15  ;;  %2682 = vmatprep.subr.mxu1 %v2905_v2 }
 0x118   :  { %2692 = vmatprep.mubr.msk.f32.mxu1 %vm2908_vm4, %v2905_v2  ;;  %v132_v18 = vpop.permute.xlu0 %131 }
 0x1cf   :  { %v204_v19 = vpop.f32.mrf.mxu0 }
 0x1d0   :  { %v205_v20 = vadd.f32 %v204_v19, %v132_v18 }
 0x1d1   :  { %v2655_v21 = vpop.f32.mrf.mxu0 }
 0x1d2   :  { %v208_v22 = vmax.f32 %v205_v20, 0.0 }
 0x1d4   :  { %v296_v23 = vsel %vm295_vm6, %v208_v22, 0.0 }
 0x1d5   :  { %297 = vadd.xlane.f32.xlu1 %v296_v23 }
 0x1d7   :  { %v290_v24 = vpop.f32.mrf.mxu1 }
 0x1d8   :  { %v291_v25 = vadd.f32 %v290_v24, %v132_v18 }
 0x1d9   :  { %v2668_v26 = vpop.f32.mrf.mxu1 }
 0x1da   :  { %v294_v27 = vmax.f32 %v291_v25, 0.0  ;;  %v350_v25 = vld [vmem:[%s4067_s8] sm:$0xff] }
 0x1dc   :  { %v300_v28 = vsel %vm295_vm6, %v294_v27, 0.0 }
 0x1dd   :  { %301 = vadd.xlane.f32.xlu0 %v300_v28 }
 0x25e   :  { %v298_v29 = vpop.xlane.xlu1 %297 }
 0x266   :  { %v302_v30 = vpop.xlane.xlu0 %301 }
 0x267   :  { %v303_v31 = vadd.f32 %v302_v30, %v298_v29 }
 0x269   :  { %v304_v32 = vmul.f32 0.03125, %v303_v31  ;;  %v349_v31 = vld [vmem:[%s4068_s3] sm:$0xff] }
 0x26b   :  { %v305_v33 = vsub.f32 %v208_v22, %v304_v32  ;;  %v306_v34 = vsub.f32 %v294_v27, %v304_v32 }
 0x26d   :  { %v312_v35 = vmul.f32 %v306_v34, %v306_v34  ;;  %v307_v36 = vmul.f32 %v305_v33, %v305_v33 }
 0x26f   :  { %v313_v37 = vsel %vm295_vm6, %v312_v35, 0.0  ;;  %v308_v38 = vsel %vm295_vm6, %v307_v36, 0.0 }
 0x270   :  { %314 = vadd.xlane.f32.xlu0 %v313_v37  ;;  %309 = vadd.xlane.f32.xlu1 %v308_v38 }
 0x286   :  { %329 = vperm.xlu0 %2848, %v114_v39  }
 0x2f9   :  { %v315_v40 = vpop.xlane.xlu0 %314  ;;  %v310_v41 = vpop.xlane.xlu1 %309 }
 0x2fa   :  { %v316_v42 = vadd.f32 %v315_v40, %v310_v41 }
 0x2fc   :  { %v317_v43 = vmul.f32 0.03125, %v316_v42 }
 0x2fe   :  { %v318_v44 = vadd.f32 1e-05, %v317_v43 }
 0x300   :  { %2850 = vrsqrt.f32 %v318_v44 }
 0x301   :  { %v330_v50 = vpop.permute.xlu0 %329 }
 0x30d   :  { %v2851_v46 = vpop.eup %2850 }
 0x30e   :  { %v320_v47 = vmul.f32 %v2851_v46, %v113_v45 }
 0x310   :  { %323 = vperm.xlu1 %2849, %v320_v47  }
 0x38b   :  { %v324_v48 = vpop.permute.xlu1 %323 }
 0x38c   :  { %v326_v49 = vmul.f32 %v324_v48, %v305_v33  ;;  %v339_v52 = vmul.f32 %v324_v48, %v306_v34 }
 0x38e   :  { %v332_v51 = vadd.f32 %v330_v50, %v326_v49  ;;  %v340_v53 = vadd.f32 %v339_v52, %v330_v50 }
 0x390   :  { %334 = vrot.lane.b32.xlu1 %v332_v51, %s2904_s30 }
 0x394   :  { %342 = vrot.lane.b32.xlu1 %v340_v53, %s2904_s30 }
 0x402   :  { %v335_v54 = vpop.permute.xlu1 %334 }
 0x403   :  { %338 = vst.msk [vmem:[#allocation5] sm:$0xff] %vm337_vm7, %v335_v54 }
 0x406   :  { %v343_v55 = vpop.permute.xlu1 %342 }
 0x407   :  { %346 = vst.msk [vmem:[#allocation5 + $0x8] sm:$0xff] %vm337_vm7, %v343_v55 }
 0x40a   :  { %v351_v56 = vld [vmem:[#allocation5] sm:$0xff] }
 0x40b   :  { %362 = vrot.lane.b32.xlu0 %v351_v56, %s2907_s0 }
 0x40e   :  { %v444_v57 = vld [vmem:[#allocation5 + $0x8] sm:$0xff] }
 0x40f   :  { %359 = vrot.lane.b32.xlu0 %v351_v56, %s2906_s10  ;;  %455 = vrot.lane.b32.xlu1 %v444_v57, %s2907_s0 }
 0x413   :  { %356 = vrot.lane.b32.xlu0 %v351_v56, %s2909_s11  ;;  %452 = vrot.lane.b32.xlu1 %v444_v57, %s2906_s10 }
 0x417   :  { %353 = vrot.lane.b32.xlu0 %v351_v56, %s2911_s29  ;;  %449 = vrot.lane.b32.xlu1 %v444_v57, %s2909_s11  ;;  %s4066_s11 = sld [smem:[#allocation16_spill]] }
 0x41b   :  { %367 = vperm.xlu0 %2848, %v348_v58   ;;  %446 = vrot.lane.b32.xlu1 %v444_v57, %s2911_s29 }
 0x41d   :  { %v347_v3 = vld [vmem:[%s4066_s11] sm:$0xff] }
 0x47d   :  { %v363_v59 = vpop.permute.xlu0 %362 }
 0x47e   :  { %2670 = vmatpush3.msra.mxu0 %v363_v59 }
 0x47f   :  { %2671 = vmatprep.subr.mxu0 %v2905_v2 }
 0x481   :  { %v360_v60 = vpop.permute.xlu0 %359  ;;  %v456_v61 = vpop.permute.xlu1 %455 }
 0x482   :  { %2672 = vmatpush3.msra.mxu0 %v360_v60  ;;  %2683 = vmatpush3.msra.mxu1 %v456_v61 }
 0x483   :  { %2673 = vmatprep.subr.mxu0 %v2905_v2  ;;  %2684 = vmatprep.subr.mxu1 %v2905_v2 }
 0x485   :  { %v357_v62 = vpop.permute.xlu0 %356  ;;  %v453_v63 = vpop.permute.xlu1 %452 }
 0x486   :  { %2674 = vmatpush3.msra.mxu0 %v357_v62  ;;  %2685 = vmatpush3.msra.mxu1 %v453_v63 }
 0x487   :  { %2675 = vmatprep.subr.mxu0 %v2905_v2  ;;  %2686 = vmatprep.subr.mxu1 %v2905_v2 }
 0x489   :  { %v354_v0 = vpop.permute.xlu0 %353  ;;  %v450_v1 = vpop.permute.xlu1 %449 }
 0x48a   :  { %2676 = vmatpush3.msra.mxu0 %v354_v0  ;;  %2687 = vmatpush3.msra.mxu1 %v450_v1 }
 0x48b   :  { %2677 = vmatprep.subr.mxu0 %v2905_v2  ;;  %2688 = vmatprep.subr.mxu1 %v2905_v2 }
 0x48c   :  { %2678 = vmatpush3.msra.mxu0 %v351_v56 }
 0x48d   :  { %2680 = vmatmul.mubr.msk.f32.vlgmr.msra.gmra.mxu0 %vm134_vm5, %v347_v3  ;;  %v447_v4 = vpop.permute.xlu1 %446 }
 0x48e   :  { %2689 = vmatpush3.msra.mxu1 %v447_v4 }
 0x48f   :  { %2690 = vmatprep.subr.mxu1 %v2905_v2 }
 0x490   :  { %2691 = vmatpush3.msra.mxu1 %v444_v57 }
 0x491   :  { %2693 = vmatmul.mubr.msk.f32.vlgmr.msra.gmra.mxu1 %vm134_vm5, %v347_v3 }
 0x496   :  { %v368_v5 = vpop.permute.xlu0 %367 }
 0x54d   :  { %v439_v6 = vpop.f32.mrf.mxu0 }
 0x54e   :  { %v440_v7 = vadd.f32 %v439_v6, %v368_v5 }
 0x54f   :  { %v2681_v8 = vpop.f32.mrf.mxu0 }
 0x550   :  { %v443_v9 = vmax.f32 %v440_v7, 0.0 }
 0x551   :  { %v524_v10 = vpop.f32.mrf.mxu1 }
 0x552   :  { %v525_v11 = vadd.f32 %v524_v10, %v368_v5  ;;  %v529_v12 = vsel %vm295_vm6, %v443_v9, 0.0 }
 0x553   :  { %530 = vadd.xlane.f32.xlu1 %v529_v12  ;;  %v2694_v13 = vpop.f32.mrf.mxu1 }
 0x554   :  { %v528_v14 = vmax.f32 %v525_v11, 0.0 }
 0x556   :  { %v533_v15 = vsel %vm295_vm6, %v528_v14, 0.0 }
 0x557   :  { %534 = vadd.xlane.f32.xlu0 %v533_v15 }
 0x5dc   :  { %v531_v16 = vpop.xlane.xlu1 %530 }
 0x5e0   :  { %v535_v2 = vpop.xlane.xlu0 %534 }
 0x5e1   :  { %v536_v17 = vadd.f32 %v535_v2, %v531_v16 }
 0x5e3   :  { %v537_v18 = vmul.f32 0.03125, %v536_v17 }
 0x5e5   :  { %v538_v19 = vsub.f32 %v443_v9, %v537_v18  ;;  %v539_v20 = vsub.f32 %v528_v14, %v537_v18 }
 0x5e7   :  { %v545_v21 = vmul.f32 %v539_v20, %v539_v20  ;;  %v540_v22 = vmul.f32 %v538_v19, %v538_v19 }
 0x5e9   :  { %v546_v23 = vsel %vm295_vm6, %v545_v21, 0.0  ;;  %v541_v24 = vsel %vm295_vm6, %v540_v22, 0.0 }
 0x5ea   :  { %547 = vadd.xlane.f32.xlu1 %v546_v23  ;;  %542 = vadd.xlane.f32.xlu0 %v541_v24 }
 0x5fb   :  { %562 = vperm.xlu1 %2849, %v350_v25  }
 0x673   :  { %v548_v26 = vpop.xlane.xlu1 %547  ;;  %v543_v27 = vpop.xlane.xlu0 %542 }
 0x674   :  { %v549_v28 = vadd.f32 %v548_v26, %v543_v27 }
 0x676   :  { %v550_v29 = vmul.f32 0.03125, %v549_v28 }
 0x677   :  { %v563_v37 = vpop.permute.xlu1 %562 }
 0x678   :  { %v551_v30 = vadd.f32 1e-05, %v550_v29 }
 0x67a   :  { %2852 = vrsqrt.f32 %v551_v30 }
 0x687   :  { %v2853_v32 = vpop.eup %2852 }
 0x688   :  { %v553_v33 = vmul.f32 %v2853_v32, %v349_v31 }
 0x68a   :  { %556 = vperm.xlu0 %2848, %v553_v33  }
 0x705   :  { %v557_v34 = vpop.permute.xlu0 %556 }
 0x706   :  { %v559_v35 = vmul.f32 %v557_v34, %v538_v19  ;;  %v567_v36 = vmul.f32 %v557_v34, %v539_v20 }
 0x708   :  { %v565_v38 = vadd.f32 %v563_v37, %v559_v35  ;;  %v568_v39 = vadd.f32 %v567_v36, %v563_v37 }
 0x70a   :  { %566 = vst.msk [vmem:[#allocation2] sm:$0xff] %vm295_vm6, %v565_v38  ;;  %570 = vst.msk [vmem:[#allocation2 + $0x8] sm:$0xff] %vm295_vm6, %v568_v39 }
 0x70b   :  { %s2912_s6 = smov 127   ;;  %v2913_v42 = vmov 0.0   ;;  %vm574_vm8 = vcmask 97360   ;;  %s2914_s2 = smov 1   ;;  %vm597_vm9 = vcmask 23568   ;;  %vm606_vm10 = vcmask 31768  }
 0x70c   :  { %572 = vst.msk [vmem:[#allocation6] sm:$0xff] %vm85_vm0, %v2913_v42  ;;  %573 = vst.msk [vmem:[#allocation6 + $0x8] sm:$0xff] %vm85_vm0, %v2913_v42  ;;  %s2915_s7 = smov 2   ;;  %s2916_s30 = smov 126   ;;  %vm609_vm11 = vcmask 39968   ;;  %vm618_vm12 = vcmask 48168  }
 0x70d   :  { %657 = vst.msk [vmem:[#allocation7] sm:$0xff] %vm85_vm0, %v2913_v42  ;;  %658 = vst.msk [vmem:[#allocation7 + $0x8] sm:$0xff] %vm85_vm0, %v2913_v42  ;;  %s2917_s12 = smov 125   ;;  %s2918_s1 = smov 124   ;;  %vm627_vm13 = vcmask 56368   ;;  %vm636_vm14 = vcmask 64568  }
 0x70e   :  { %659 = vst.msk [vmem:[#allocation7 + $0x10] sm:$0xff] %vm85_vm0, %v2913_v42  ;;  %660 = vst.msk [vmem:[#allocation7 + $0x18] sm:$0xff] %vm85_vm0, %v2913_v42  ;;  %s2919_s10 = smov 123   ;;  %vm645_vm15 = vcmask 72768   ;;  %vm654_vm1 = vcmask 80968   ;;  %s4069_s29 = sld [smem:[#allocation20_spill]] }
 0x70f   :  { %575 = vst.msk [vmem:[#allocation6] sm:$0xff] %vm574_vm8, %v2913_v42  ;;  %576 = vst.msk [vmem:[#allocation6 + $0x8] sm:$0xff] %vm574_vm8, %v2913_v42  ;;  %v2920_v0 = vmov 0   ;;  %s4070_s5 = sld [smem:[#allocation21_spill]]  ;;  %vm873_vm2 = vcmask 64512   ;;  %vm956_vm3 = vcmask 80912  }
 0x710   :  { %661 = vst.msk [vmem:[#allocation7] sm:$0xff] %vm574_vm8, %v2913_v42  ;;  %662 = vst.msk [vmem:[#allocation7 + $0x8] sm:$0xff] %vm574_vm8, %v2913_v42  ;;  %2854 = vset.pattern.permute.xlu0 %v2920_v0  ;;  %2855 = vset.pattern.permute.xlu1 %v2920_v0  ;;  %s4072_s3 = sld [smem:[#allocation23_spill]]  ;;  %vm1020_vm4 = vcmask 654336  }
 0x711   :  { %v577_v40 = vld [vmem:[#allocation2] sm:$0xff]  ;;  %v578_v41 = vld [vmem:[#allocation2 + $0x8] sm:$0xff]  ;;  %663 = vst.msk [vmem:[#allocation7 + $0x10] sm:$0xff] %vm574_vm8, %v2913_v42  ;;  %664 = vst.msk [vmem:[#allocation7 + $0x18] sm:$0xff] %vm574_vm8, %v2913_v42 }
 0x712   :  { %581 = vrot.lane.b32.xlu0 %v577_v40, %s2912_s6 }
 0x714   :  { %v665_v63 = vld [vmem:[%s4069_s29] sm:$0xff]  ;;  %v666_v10 = vld [vmem:[%s4069_s29 + $0x8] sm:$0xff]  ;;  %s4071_s29 = sld [smem:[#allocation22_spill]] }
 0x715   :  { %2705 = vmatprep.mubr.msk.f32.mxu0 %vm134_vm5, %v665_v63  ;;  %2718 = vmatprep.mubr.msk.f32.mxu1 %vm134_vm5, %v665_v63  ;;  %v668_v1 = vld [vmem:[%s4070_s5 + $0x8] sm:$0xff]  ;;  %v667_v3 = vld [vmem:[%s4070_s5] sm:$0xff] }
 0x716   :  { %583 = vrot.lane.b32.xlu0 %v578_v41, %s2912_s6 }
 0x71a   :  { %v669_v63 = vld [vmem:[%s4071_s29] sm:$0xff] }
 0x784   :  { %v582_v43 = vpop.permute.xlu0 %581 }
 0x785   :  { %v587_v44 = vmax.f32 %v577_v40, %v582_v43 }
 0x787   :  { %600 = vrot.lane.b32.xlu0 %v587_v44, %s2914_s2  ;;  %591 = vrot.lane.b32.xlu1 %v587_v44, %s2915_s7 }
 0x788   :  { %v584_v45 = vpop.permute.xlu0 %583 }
 0x789   :  { %v588_v46 = vmax.f32 %v578_v41, %v584_v45 }
 0x78b   :  { %612 = vrot.lane.b32.xlu0 %v587_v44, %s2912_s6  ;;  %593 = vrot.lane.b32.xlu1 %v588_v46, %s2915_s7 }
 0x78f   :  { %621 = vrot.lane.b32.xlu0 %v587_v44, %s2916_s30  ;;  %602 = vrot.lane.b32.xlu1 %v588_v46, %s2914_s2 }
 0x793   :  { %630 = vrot.lane.b32.xlu0 %v587_v44, %s2917_s12  ;;  %614 = vrot.lane.b32.xlu1 %v588_v46, %s2912_s6 }
 0x797   :  { %639 = vrot.lane.b32.xlu0 %v587_v44, %s2918_s1  ;;  %623 = vrot.lane.b32.xlu1 %v588_v46, %s2916_s30 }
 0x79b   :  { %648 = vrot.lane.b32.xlu0 %v587_v44, %s2919_s10  ;;  %632 = vrot.lane.b32.xlu1 %v588_v46, %s2917_s12 }
 0x79f   :  { %641 = vrot.lane.b32.xlu1 %v588_v46, %s2918_s1 }
 0x7a3   :  { %650 = vrot.lane.b32.xlu1 %v588_v46, %s2919_s10 }
 0x7f9   :  { %v592_v47 = vpop.permute.xlu1 %591  ;;  %v601_v48 = vpop.permute.xlu0 %600 }
 0x7fa   :  { %598 = vst.msk [vmem:[#allocation6] sm:$0xff] %vm597_vm9, %v592_v47 }
 0x7fb   :  { %607 = vst.msk [vmem:[#allocation6] sm:$0xff] %vm606_vm10, %v601_v48 }
 0x7fc   :  { %610 = vst.msk [vmem:[#allocation6] sm:$0xff] %vm609_vm11, %v587_v44 }
 0x7fd   :  { %v594_v49 = vpop.permute.xlu1 %593  ;;  %v613_v50 = vpop.permute.xlu0 %612 }
 0x7fe   :  { %599 = vst.msk [vmem:[#allocation6 + $0x8] sm:$0xff] %vm597_vm9, %v594_v49 }
 0x7ff   :  { %619 = vst.msk [vmem:[#allocation6] sm:$0xff] %vm618_vm12, %v613_v50 }
 0x801   :  { %v603_v51 = vpop.permute.xlu1 %602  ;;  %v622_v52 = vpop.permute.xlu0 %621 }
 0x802   :  { %608 = vst.msk [vmem:[#allocation6 + $0x8] sm:$0xff] %vm606_vm10, %v603_v51 }
 0x803   :  { %628 = vst.msk [vmem:[#allocation6] sm:$0xff] %vm627_vm13, %v622_v52 }
 0x804   :  { %611 = vst.msk [vmem:[#allocation6 + $0x8] sm:$0xff] %vm609_vm11, %v588_v46 }
 0x805   :  { %v615_v53 = vpop.permute.xlu1 %614  ;;  %v631_v54 = vpop.permute.xlu0 %630 }
 0x806   :  { %620 = vst.msk [vmem:[#allocation6 + $0x8] sm:$0xff] %vm618_vm12, %v615_v53 }
 0x807   :  { %637 = vst.msk [vmem:[#allocation6] sm:$0xff] %vm636_vm14, %v631_v54 }
 0x809   :  { %v624_v55 = vpop.permute.xlu1 %623  ;;  %v640_v56 = vpop.permute.xlu0 %639 }
 0x80a   :  { %629 = vst.msk [vmem:[#allocation6 + $0x8] sm:$0xff] %vm627_vm13, %v624_v55 }
 0x80b   :  { %646 = vst.msk [vmem:[#allocation6] sm:$0xff] %vm645_vm15, %v640_v56 }
 0x80d   :  { %v633_v57 = vpop.permute.xlu1 %632  ;;  %v649_v58 = vpop.permute.xlu0 %648 }
 0x80e   :  { %638 = vst.msk [vmem:[#allocation6 + $0x8] sm:$0xff] %vm636_vm14, %v633_v57 }
 0x80f   :  { %655 = vst.msk [vmem:[#allocation6] sm:$0xff] %vm654_vm1, %v649_v58 }
 0x811   :  { %v642_v59 = vpop.permute.xlu1 %641 }
 0x812   :  { %647 = vst.msk [vmem:[#allocation6 + $0x8] sm:$0xff] %vm645_vm15, %v642_v59 }
 0x815   :  { %v651_v60 = vpop.permute.xlu1 %650 }
 0x816   :  { %v673_v61 = vld [vmem:[#allocation6] sm:$0xff]  ;;  %656 = vst.msk [vmem:[#allocation6 + $0x8] sm:$0xff] %vm654_vm1, %v651_v60  ;;  %v670_v60 = vld [vmem:[%s4071_s29 + $0x8] sm:$0xff] }
 0x817   :  { %684 = vrot.lane.b32.xlu0 %v673_v61, %s2918_s1 }
 0x81b   :  { %681 = vrot.lane.b32.xlu0 %v673_v61, %s2917_s12 }
 0x81d   :  { %v782_v62 = vld [vmem:[#allocation6 + $0x8] sm:$0xff] }
 0x81e   :  { %793 = vrot.lane.b32.xlu1 %v782_v62, %s2918_s1 }
 0x81f   :  { %678 = vrot.lane.b32.xlu0 %v673_v61, %s2916_s30 }
 0x822   :  { %790 = vrot.lane.b32.xlu1 %v782_v62, %s2917_s12 }
 0x823   :  { %675 = vrot.lane.b32.xlu0 %v673_v61, %s2912_s6 }
 0x826   :  { %787 = vrot.lane.b32.xlu1 %v782_v62, %s2916_s30 }
 0x827   :  { %694 = vperm.xlu0 %2854, %v668_v1   ;;  %v671_v1 = vld [vmem:[%s4072_s3] sm:$0xff] }
 0x82a   :  { %784 = vrot.lane.b32.xlu1 %v782_v62, %s2912_s6 }
 0x82e   :  { %689 = vperm.xlu1 %2855, %v667_v3  }
 0x889   :  { %v685_v4 = vpop.permute.xlu0 %684 }
 0x88a   :  { %2695 = vmatprep.subr.mxu0 %v685_v4 }
 0x88b   :  { %2696 = vmatpush3.msra.mxu0 %v685_v4  ;;  %v672_v4 = vld [vmem:[%s4072_s3 + $0x8] sm:$0xff] }
 0x88d   :  { %v682_v5 = vpop.permute.xlu0 %681 }
 0x88e   :  { %2697 = vmatprep.subr.mxu0 %v682_v5 }
 0x88f   :  { %2698 = vmatpush3.msra.mxu0 %v682_v5 }
 0x890   :  { %v794_v6 = vpop.permute.xlu1 %793 }
 0x891   :  { %v679_v7 = vpop.permute.xlu0 %678  ;;  %2708 = vmatprep.subr.mxu1 %v794_v6 }
 0x892   :  { %2699 = vmatprep.subr.mxu0 %v679_v7  ;;  %2709 = vmatpush3.msra.mxu1 %v794_v6 }
 0x893   :  { %2700 = vmatpush3.msra.mxu0 %v679_v7 }
 0x894   :  { %v791_v8 = vpop.permute.xlu1 %790 }
 0x895   :  { %v676_v9 = vpop.permute.xlu0 %675  ;;  %2710 = vmatprep.subr.mxu1 %v791_v8 }
 0x896   :  { %2701 = vmatprep.subr.mxu0 %v676_v9  ;;  %2711 = vmatpush3.msra.mxu1 %v791_v8 }
 0x897   :  { %2702 = vmatpush3.msra.mxu0 %v676_v9 }
 0x898   :  { %2703 = vmatprep.subr.mxu0 %v673_v61  ;;  %v788_v11 = vpop.permute.xlu1 %787 }
 0x899   :  { %2704 = vmatpush3.msra.mxu0 %v673_v61  ;;  %2712 = vmatprep.subr.mxu1 %v788_v11 }
 0x89a   :  { %2706 = vmatmul.mubr.msk.f32.vlgmr.msra.gmra.mxu0 %vm134_vm5, %v666_v10  ;;  %2713 = vmatpush3.msra.mxu1 %v788_v11 }
 0x89c   :  { %v785_v12 = vpop.permute.xlu1 %784 }
 0x89d   :  { %2714 = vmatprep.subr.mxu1 %v785_v12 }
 0x89e   :  { %2715 = vmatpush3.msra.mxu1 %v785_v12 }
 0x89f   :  { %2716 = vmatprep.subr.mxu1 %v782_v62 }
 0x8a0   :  { %2717 = vmatpush3.msra.mxu1 %v782_v62 }
 0x8a1   :  { %2719 = vmatmul.mubr.msk.f32.vlgmr.msra.gmra.mxu1 %vm134_vm5, %v666_v10 }
 0x8a2   :  { %v695_v13 = vpop.permute.xlu0 %694 }
 0x8a9   :  { %v690_v17 = vpop.permute.xlu1 %689 }
 0x95a   :  { %v2707_v14 = vpop.f32.mrf.mxu0 }
 0x95b   :  { %v776_v15 = vadd.f32 %v2707_v14, %v695_v13 }
 0x95c   :  { %v770_v18 = vpop.f32.mrf.mxu0 }
 0x95d   :  { %v780_v16 = vmax.f32 %v776_v15, 0.0  ;;  %v771_v21 = vadd.f32 %v770_v18, %v690_v17 }
 0x95f   :  { %v877_v2 = vsel %vm873_vm2, %v780_v16, 0.0  ;;  %v779_v25 = vmax.f32 %v771_v21, 0.0 }
 0x960   :  { %878 = vadd.xlane.f32.xlu1 %v877_v2 }
 0x961   :  { %v2720_v19 = vpop.f32.mrf.mxu1  ;;  %v874_v29 = vsel %vm873_vm2, %v779_v25, 0.0 }
 0x962   :  { %v868_v20 = vadd.f32 %v2720_v19, %v695_v13 }
 0x963   :  { %v862_v22 = vpop.f32.mrf.mxu1 }
 0x964   :  { %v872_v23 = vmax.f32 %v868_v20, 0.0  ;;  %v863_v24 = vadd.f32 %v862_v22, %v690_v17 }
 0x966   :  { %v871_v26 = vmax.f32 %v863_v24, 0.0  ;;  %v885_v27 = vsel %vm873_vm2, %v872_v23, 0.0  ;;  %v974_v24 = vld [vmem:[%s4026_s13] sm:$0xff] }
 0x967   :  { %886 = vadd.xlane.f32.xlu0 %v885_v27  ;;  %2741 = vmatprep.mubr.msk.f32.mxu0 %vm1020_vm4, %v974_v24 }
 0x968   :  { %v882_v28 = vsel %vm873_vm2, %v871_v26, 0.0  ;;  %2764 = vmatprep.mubr.msk.f32.mxu1 %vm1020_vm4, %v974_v24 }
 0x969   :  { %883 = vadd.xlane.f32.xlu1 %v882_v28 }
 0x96b   :  { %875 = vadd.xlane.f32.xlu0 %v874_v29 }
 0x9e9   :  { %v879_v30 = vpop.xlane.xlu1 %878 }
 0x9f0   :  { %v887_v31 = vpop.xlane.xlu0 %886 }
 0x9f1   :  { %v889_v32 = vadd.f32 %v887_v31, %v879_v30 }
 0x9f2   :  { %v884_v34 = vpop.xlane.xlu1 %883 }
 0x9f3   :  { %v891_v33 = vmul.f32 0.0625, %v889_v32 }
 0x9f4   :  { %v876_v35 = vpop.xlane.xlu0 %875 }
 0x9f5   :  { %v893_v36 = vsub.f32 %v780_v16, %v891_v33  ;;  %v895_v37 = vsub.f32 %v872_v23, %v891_v33  ;;  %v888_v38 = vadd.f32 %v884_v34, %v876_v35 }
 0x9f7   :  { %v890_v39 = vmul.f32 0.0625, %v888_v38  ;;  %v907_v40 = vmul.f32 %v895_v37, %v895_v37  ;;  %v897_v41 = vmul.f32 %v893_v36, %v893_v36 }
 0x9f9   :  { %v892_v42 = vsub.f32 %v779_v25, %v890_v39  ;;  %v894_v43 = vsub.f32 %v871_v26, %v890_v39  ;;  %v911_v44 = vsel %vm873_vm2, %v907_v40, 0.0  ;;  %v901_v45 = vsel %vm873_vm2, %v897_v41, 0.0  ;;  %v976_v25 = vld [vmem:[%s4027_s14] sm:$0xff]  ;;  %v977_v26 = vld [vmem:[%s4027_s14 + $0x8] sm:$0xff] }
 0x9fa   :  { %912 = vadd.xlane.f32.xlu1 %v911_v44  ;;  %902 = vadd.xlane.f32.xlu0 %v901_v45 }
 0x9fb   :  { %v906_v46 = vmul.f32 %v894_v43, %v894_v43  ;;  %v896_v47 = vmul.f32 %v892_v42, %v892_v42 }
 0x9fd   :  { %v908_v48 = vsel %vm873_vm2, %v906_v46, 0.0  ;;  %v898_v49 = vsel %vm873_vm2, %v896_v47, 0.0 }
 0x9fe   :  { %909 = vadd.xlane.f32.xlu1 %v908_v48  ;;  %899 = vadd.xlane.f32.xlu0 %v898_v49 }
 0xa83   :  { %v903_v50 = vpop.xlane.xlu0 %902  ;;  %v913_v51 = vpop.xlane.xlu1 %912 }
 0xa84   :  { %v915_v52 = vadd.f32 %v913_v51, %v903_v50 }
 0xa86   :  { %v917_v53 = vmul.f32 0.0625, %v915_v52 }
 0xa87   :  { %v900_v54 = vpop.xlane.xlu0 %899  ;;  %v910_v55 = vpop.xlane.xlu1 %909 }
 0xa88   :  { %v919_v56 = vadd.f32 1e-05, %v917_v53  ;;  %v914_v57 = vadd.f32 %v910_v55, %v900_v54 }
 0xa8a   :  { %2856 = vrsqrt.f32 %v919_v56  ;;  %v916_v58 = vmul.f32 0.0625, %v914_v57 }
 0xa8c   :  { %v918_v59 = vadd.f32 1e-05, %v916_v58 }
 0xa8e   :  { %2858 = vrsqrt.f32 %v918_v59 }
 0xa97   :  { %v2857_v61 = vpop.eup %2856 }
 0xa98   :  { %v923_v62 = vmul.f32 %v2857_v61, %v670_v60 }
 0xa9a   :  { %931 = vperm.xlu0 %2854, %v923_v62  }
 0xa9b   :  { %v2859_v0 = vpop.eup %2858 }
 0xa9c   :  { %v922_v3 = vmul.f32 %v2859_v0, %v669_v63 }
 0xa9e   :  { %938 = vperm.xlu0 %2854, %v671_v1   ;;  %926 = vperm.xlu1 %2855, %v922_v3  }
 0xaa2   :  { %943 = vperm.xlu1 %2855, %v672_v4  }
 0xb15   :  { %v932_v5 = vpop.permute.xlu0 %931 }
 0xb16   :  { %v935_v7 = vmul.f32 %v932_v5, %v893_v36  ;;  %v960_v8 = vmul.f32 %v932_v5, %v895_v37 }
 0xb19   :  { %v927_v6 = vpop.permute.xlu1 %926  ;;  %v939_v14 = vpop.permute.xlu0 %938 }
 0xb1a   :  { %v934_v10 = vmul.f32 %v927_v6, %v892_v42  ;;  %v959_v11 = vmul.f32 %v927_v6, %v894_v43  ;;  %v975_v43 = vld [vmem:[%s4026_s13 + $0x8] sm:$0xff] }
 0xb1c   :  { %v946_v15 = vadd.f32 %v939_v14, %v934_v10  ;;  %v961_v16 = vadd.f32 %v959_v11, %v939_v14 }
 0xb1d   :  { %v944_v9 = vpop.permute.xlu1 %943 }
 0xb1e   :  { %v947_v12 = vadd.f32 %v944_v9, %v935_v7  ;;  %v962_v13 = vadd.f32 %v960_v8, %v944_v9 }
 0xb20   :  { %952 = vrot.lane.b32.xlu1 %v947_v12, %s2915_s7  ;;  %967 = vrot.lane.b32.xlu0 %v962_v13, %s2915_s7 }
 0xb24   :  { %950 = vrot.lane.b32.xlu1 %v946_v15, %s2915_s7  ;;  %965 = vrot.lane.b32.xlu0 %v961_v16, %s2915_s7 }
 0xb92   :  { %v953_v2 = vpop.permute.xlu1 %952  ;;  %v968_v17 = vpop.permute.xlu0 %967 }
 0xb93   :  { %958 = vst.msk [vmem:[#allocation7 + $0x8] sm:$0xff] %vm956_vm3, %v953_v2  ;;  %973 = vst.msk [vmem:[#allocation7 + $0x18] sm:$0xff] %vm956_vm3, %v968_v17 }
 0xb96   :  { %v951_v18 = vpop.permute.xlu1 %950  ;;  %v966_v19 = vpop.permute.xlu0 %965 }
 0xb97   :  { %957 = vst.msk [vmem:[#allocation7] sm:$0xff] %vm956_vm3, %v951_v18  ;;  %972 = vst.msk [vmem:[#allocation7 + $0x10] sm:$0xff] %vm956_vm3, %v966_v19 }
 0xb9a   :  { %v3258_v20 = vld [vmem:[#allocation7 + $0x8] sm:$0xff]  ;;  %v3260_v21 = vld [vmem:[#allocation7 + $0x18] sm:$0xff] }
 0xb9b   :  { %1006 = vrot.lane.b32.xlu1 %v3258_v20, %s2918_s1  ;;  %1128 = vrot.lane.b32.xlu0 %v3260_v21, %s2918_s1 }
 0xb9e   :  { %v3278_v22 = vld [vmem:[#allocation7] sm:$0xff]  ;;  %v3280_v23 = vld [vmem:[#allocation7 + $0x10] sm:$0xff] }
 0xb9f   :  { %1000 = vrot.lane.b32.xlu1 %v3258_v20, %s2917_s12  ;;  %1122 = vrot.lane.b32.xlu0 %v3260_v21, %s2917_s12 }
 0xba3   :  { %994 = vrot.lane.b32.xlu1 %v3258_v20, %s2916_s30  ;;  %1116 = vrot.lane.b32.xlu0 %v3260_v21, %s2916_s30 }
 0xba7   :  { %988 = vrot.lane.b32.xlu1 %v3258_v20, %s2912_s6  ;;  %1110 = vrot.lane.b32.xlu0 %v3260_v21, %s2912_s6 }
 0xbab   :  { %1004 = vrot.lane.b32.xlu1 %v3278_v22, %s2918_s1  ;;  %1126 = vrot.lane.b32.xlu0 %v3280_v23, %s2918_s1 }
 0xbaf   :  { %998 = vrot.lane.b32.xlu1 %v3278_v22, %s2917_s12  ;;  %1120 = vrot.lane.b32.xlu0 %v3280_v23, %s2917_s12 }
 0xbb3   :  { %992 = vrot.lane.b32.xlu1 %v3278_v22, %s2916_s30  ;;  %1114 = vrot.lane.b32.xlu0 %v3280_v23, %s2916_s30 }
 0xbb7   :  { %986 = vrot.lane.b32.xlu1 %v3278_v22, %s2912_s6  ;;  %1108 = vrot.lane.b32.xlu0 %v3280_v23, %s2912_s6 }
 0xbbb   :  { %1012 = vperm.xlu1 %2855, %v976_v25   ;;  %1017 = vperm.xlu0 %2854, %v977_v26  }
 0xc0d   :  { %v1007_v27 = vpop.permute.xlu1 %1006  ;;  %v1129_v28 = vpop.permute.xlu0 %1128 }
 0xc0e   :  { %2721 = vmatprep.subr.mxu0 %v1007_v27  ;;  %2744 = vmatprep.subr.mxu1 %v1129_v28 }
 0xc0f   :  { %2722 = vmatpush3.msra.mxu0 %v1007_v27  ;;  %2745 = vmatpush3.msra.mxu1 %v1129_v28  ;;  %v978_v28 = vld [vmem:[%s4028_s15] sm:$0xff] }
 0xc11   :  { %v1001_v29 = vpop.permute.xlu1 %1000  ;;  %v1123_v30 = vpop.permute.xlu0 %1122 }
 0xc15   :  { %v995_v31 = vpop.permute.xlu1 %994  ;;  %v1117_v32 = vpop.permute.xlu0 %1116 }
 0xc19   :  { %v989_v33 = vpop.permute.xlu1 %988  ;;  %v1111_v34 = vpop.permute.xlu0 %1110 }
 0xc1d   :  { %v1005_v35 = vpop.permute.xlu1 %1004  ;;  %v1127_v36 = vpop.permute.xlu0 %1126 }
 0xc1e   :  { %2723 = vmatprep.subr.mxu0 %v1005_v35  ;;  %2746 = vmatprep.subr.mxu1 %v1127_v36 }
 0xc1f   :  { %2724 = vmatpush3.msra.mxu0 %v1005_v35  ;;  %2747 = vmatpush3.msra.mxu1 %v1127_v36  ;;  %v980_v35 = vld [vmem:[%s4029_s16] sm:$0xff] }
 0xc20   :  { %2725 = vmatprep.subr.mxu0 %v1001_v29  ;;  %2748 = vmatprep.subr.mxu1 %v1123_v30 }
 0xc21   :  { %2726 = vmatpush3.msra.mxu0 %v1001_v29  ;;  %v999_v37 = vpop.permute.xlu1 %998  ;;  %2749 = vmatpush3.msra.mxu1 %v1123_v30  ;;  %v1121_v38 = vpop.permute.xlu0 %1120  ;;  %v979_v30 = vld [vmem:[%s4028_s15 + $0x8] sm:$0xff] }
 0xc22   :  { %2727 = vmatprep.subr.mxu0 %v999_v37  ;;  %2750 = vmatprep.subr.mxu1 %v1121_v38 }
 0xc23   :  { %2728 = vmatpush3.msra.mxu0 %v999_v37  ;;  %2751 = vmatpush3.msra.mxu1 %v1121_v38 }
 0xc24   :  { %2729 = vmatprep.subr.mxu0 %v995_v31  ;;  %2752 = vmatprep.subr.mxu1 %v1117_v32 }
 0xc25   :  { %2730 = vmatpush3.msra.mxu0 %v995_v31  ;;  %v993_v39 = vpop.permute.xlu1 %992  ;;  %2753 = vmatpush3.msra.mxu1 %v1117_v32  ;;  %v1115_v40 = vpop.permute.xlu0 %1114 }
 0xc26   :  { %2731 = vmatprep.subr.mxu0 %v993_v39  ;;  %2754 = vmatprep.subr.mxu1 %v1115_v40 }
 0xc27   :  { %2732 = vmatpush3.msra.mxu0 %v993_v39  ;;  %2755 = vmatpush3.msra.mxu1 %v1115_v40 }
 0xc28   :  { %2733 = vmatprep.subr.mxu0 %v989_v33  ;;  %2756 = vmatprep.subr.mxu1 %v1111_v34 }
 0xc29   :  { %2734 = vmatpush3.msra.mxu0 %v989_v33  ;;  %v987_v41 = vpop.permute.xlu1 %986  ;;  %2757 = vmatpush3.msra.mxu1 %v1111_v34  ;;  %v1109_v42 = vpop.permute.xlu0 %1108  ;;  %v981_v34 = vld [vmem:[%s4029_s16 + $0x8] sm:$0xff] }
 0xc2a   :  { %2735 = vmatprep.subr.mxu0 %v987_v41  ;;  %2758 = vmatprep.subr.mxu1 %v1109_v42 }
 0xc2b   :  { %2736 = vmatpush3.msra.mxu0 %v987_v41  ;;  %2759 = vmatpush3.msra.mxu1 %v1109_v42 }
 0xc2c   :  { %2737 = vmatprep.subr.mxu0 %v3258_v20  ;;  %2760 = vmatprep.subr.mxu1 %v3260_v21 }
 0xc2d   :  { %2738 = vmatpush3.msra.mxu0 %v3258_v20  ;;  %2761 = vmatpush3.msra.mxu1 %v3260_v21 }
 0xc2e   :  { %2739 = vmatprep.subr.mxu0 %v3278_v22  ;;  %2762 = vmatprep.subr.mxu1 %v3280_v23 }
 0xc2f   :  { %2740 = vmatpush3.msra.mxu0 %v3278_v22  ;;  %2763 = vmatpush3.msra.mxu1 %v3280_v23 }
 0xc30   :  { %2742 = vmatmul.mubr.msk.f32.vlgmr.msra.gmra.mxu0 %vm1020_vm4, %v975_v43  ;;  %2765 = vmatmul.mubr.msk.f32.vlgmr.msra.gmra.mxu1 %vm1020_vm4, %v975_v43 }
 0xc36   :  { %v1018_v44 = vpop.permute.xlu0 %1017  ;;  %v1013_v47 = vpop.permute.xlu1 %1012 }
 0xcf0   :  { %v2743_v45 = vpop.f32.mrf.mxu0  ;;  %v2766_v46 = vpop.f32.mrf.mxu1 }
 0xcf1   :  { %v1099_v48 = vadd.f32 %v2743_v45, %v1018_v44  ;;  %v1204_v52 = vadd.f32 %v2766_v46, %v1018_v44 }
 0xcf2   :  { %v1093_v49 = vpop.f32.mrf.mxu0  ;;  %v1198_v50 = vpop.f32.mrf.mxu1 }
 0xcf3   :  { %v1103_v51 = vmax.f32 %v1099_v48, 0.0  ;;  %v1094_v53 = vadd.f32 %v1093_v49, %v1013_v47  ;;  %v1199_v54 = vadd.f32 %v1198_v50, %v1013_v47  ;;  %v1208_v58 = vmax.f32 %v1204_v52, 0.0 }
 0xcf5   :  { %v1102_v55 = vmax.f32 %v1094_v53, 0.0  ;;  %v1207_v56 = vmax.f32 %v1199_v54, 0.0  ;;  %v1212_v57 = vsel %vm873_vm2, %v1103_v51, 0.0  ;;  %v1220_v61 = vsel %vm873_vm2, %v1208_v58, 0.0 }
 0xcf6   :  { %1213 = vadd.xlane.f32.xlu0 %v1212_v57 }
 0xcf7   :  { %v1209_v59 = vsel %vm873_vm2, %v1102_v55, 0.0  ;;  %v1217_v60 = vsel %vm873_vm2, %v1207_v56, 0.0 }
 0xcf8   :  { %1210 = vadd.xlane.f32.xlu1 %v1209_v59 }
 0xcfa   :  { %1218 = vadd.xlane.f32.xlu0 %v1217_v60 }
 0xcfc   :  { %1221 = vadd.xlane.f32.xlu1 %v1220_v61 }
 0xd7f   :  { %v1214_v62 = vpop.xlane.xlu0 %1213 }
 0xd81   :  { %v1211_v63 = vpop.xlane.xlu1 %1210 }
 0xd83   :  { %v1219_v0 = vpop.xlane.xlu0 %1218 }
 0xd84   :  { %v1223_v1 = vadd.f32 %v1219_v0, %v1211_v63 }
 0xd85   :  { %v1222_v3 = vpop.xlane.xlu1 %1221 }
 0xd86   :  { %v1225_v4 = vmul.f32 0.0625, %v1223_v1  ;;  %v1224_v5 = vadd.f32 %v1222_v3, %v1214_v62 }
 0xd88   :  { %v1227_v6 = vsub.f32 %v1102_v55, %v1225_v4  ;;  %v1229_v7 = vsub.f32 %v1207_v56, %v1225_v4  ;;  %v1226_v8 = vmul.f32 0.0625, %v1224_v5 }
 0xd8a   :  { %v1228_v9 = vsub.f32 %v1103_v51, %v1226_v8  ;;  %v1230_v10 = vsub.f32 %v1208_v58, %v1226_v8  ;;  %v1231_v11 = vmul.f32 %v1227_v6, %v1227_v6  ;;  %v1241_v14 = vmul.f32 %v1229_v7, %v1229_v7 }
 0xd8c   :  { %v1233_v12 = vsel %vm873_vm2, %v1231_v11, 0.0  ;;  %v1232_v13 = vmul.f32 %v1228_v9, %v1228_v9  ;;  %v1242_v16 = vmul.f32 %v1230_v10, %v1230_v10  ;;  %v1243_v2 = vsel %vm873_vm2, %v1241_v14, 0.0 }
 0xd8d   :  { %1234 = vadd.xlane.f32.xlu0 %v1233_v12 }
 0xd8e   :  { %v1236_v15 = vsel %vm873_vm2, %v1232_v13, 0.0  ;;  %v1246_v17 = vsel %vm873_vm2, %v1242_v16, 0.0 }
 0xd8f   :  { %1237 = vadd.xlane.f32.xlu1 %v1236_v15 }
 0xd91   :  { %1244 = vadd.xlane.f32.xlu0 %v1243_v2 }
 0xd93   :  { %1247 = vadd.xlane.f32.xlu1 %v1246_v17 }
 0xe16   :  { %v1235_v18 = vpop.xlane.xlu0 %1234 }
 0xe18   :  { %v1238_v19 = vpop.xlane.xlu1 %1237 }
 0xe1a   :  { %v1245_v20 = vpop.xlane.xlu0 %1244 }
 0xe1b   :  { %v1249_v21 = vadd.f32 %v1245_v20, %v1235_v18 }
 0xe1c   :  { %v1248_v22 = vpop.xlane.xlu1 %1247 }
 0xe1d   :  { %v1251_v23 = vmul.f32 0.0625, %v1249_v21  ;;  %v1250_v24 = vadd.f32 %v1248_v22, %v1238_v19 }
 0xe1f   :  { %v1253_v25 = vadd.f32 1e-05, %v1251_v23  ;;  %v1252_v26 = vmul.f32 0.0625, %v1250_v24 }
 0xe21   :  { %2860 = vrsqrt.f32 %v1253_v25  ;;  %v1254_v27 = vadd.f32 1e-05, %v1252_v26 }
 0xe23   :  { %2862 = vrsqrt.f32 %v1254_v27 }
 0xe2e   :  { %v2861_v29 = vpop.eup %2860 }
 0xe2f   :  { %v1257_v31 = vmul.f32 %v2861_v29, %v978_v28 }
 0xe30   :  { %v2863_v32 = vpop.eup %2862 }
 0xe31   :  { %1261 = vperm.xlu0 %2854, %v1257_v31   ;;  %v1258_v33 = vmul.f32 %v2863_v32, %v979_v30 }
 0xe33   :  { %1266 = vperm.xlu1 %2855, %v1258_v33  }
 0xe35   :  { %1278 = vperm.xlu0 %2854, %v981_v34  }
 0xe37   :  { %1273 = vperm.xlu1 %2855, %v980_v35  }
 0xeac   :  { %v1262_v36 = vpop.permute.xlu0 %1261 }
 0xead   :  { %v1269_v41 = vmul.f32 %v1262_v36, %v1227_v6  ;;  %v1285_v42 = vmul.f32 %v1262_v36, %v1229_v7 }
 0xeae   :  { %v1267_v37 = vpop.permute.xlu1 %1266 }
 0xeaf   :  { %v1270_v38 = vmul.f32 %v1267_v37, %v1228_v9  ;;  %v1286_v39 = vmul.f32 %v1267_v37, %v1230_v10 }
 0xeb0   :  { %v1279_v40 = vpop.permute.xlu0 %1278 }
 0xeb1   :  { %v1282_v43 = vadd.f32 %v1279_v40, %v1270_v38  ;;  %v1288_v44 = vadd.f32 %v1286_v39, %v1279_v40 }
 0xeb2   :  { %v1274_v45 = vpop.permute.xlu1 %1273 }
 0xeb3   :  { %1284 = vst.msk [vmem:[%s4040_s27 + $0x8] sm:$0xff] %vm873_vm2, %v1282_v43  ;;  %2532 = vst.msk [vmem:[%s4040_s27 + $0x18] sm:$0xff] %vm873_vm2, %v1288_v44  ;;  %v1281_v46 = vadd.f32 %v1274_v45, %v1269_v41  ;;  %v1287_v47 = vadd.f32 %v1285_v42, %v1274_v45 }
 0xeb5   :  { %1283 = vst.msk [vmem:[%s4040_s27] sm:$0xff] %vm873_vm2, %v1281_v46  ;;  %2531 = vst.msk [vmem:[%s4040_s27 + $0x10] sm:$0xff] %vm873_vm2, %v1287_v47 }
 0xeb6   :  { %s2921_s30 = smov 127   ;;  %v2922_v52 = vmov 0.0   ;;  %vm1297_vm5 = vcmask 64560   ;;  %s2924_s3 = smov 1   ;;  %v1402_v14 = vld [vmem:[%s4030_s17] sm:$0xff]  ;;  %v1409_v15 = vld [vmem:[%s4031_s18 + $0x18] sm:$0xff] }
 0xeb7   :  { %1294 = vst.msk [vmem:[#allocation8 + $0x8] sm:$0xff] %vm85_vm0, %v2922_v52  ;;  %1293 = vst.msk [vmem:[#allocation8] sm:$0xff] %vm85_vm0, %v2922_v52  ;;  %s2925_s2 = smov 124   ;;  %s2926_s15 = smov 125   ;;  %2787 = vmatprep.mubr.msk.f32.mxu0 %vm1020_vm4, %v1402_v14  ;;  %2813 = vmatprep.mubr.msk.f32.mxu1 %vm1020_vm4, %v1402_v14  ;;  %v2928_v16 = vmov 0   ;;  %v1408_v2 = vld [vmem:[%s4031_s18 + $0x10] sm:$0xff] }
 0xeb8   :  { %1295 = vst.msk [vmem:[#allocation8 + $0x10] sm:$0xff] %vm85_vm0, %v2922_v52  ;;  %1296 = vst.msk [vmem:[#allocation8 + $0x18] sm:$0xff] %vm85_vm0, %v2922_v52  ;;  %s2927_s10 = smov 126   ;;  %2865 = vset.pattern.permute.xlu1 %v2928_v16  ;;  %2864 = vset.pattern.permute.xlu0 %v2928_v16  ;;  %v1406_v17 = vld [vmem:[%s4031_s18] sm:$0xff]  ;;  %v1407_v18 = vld [vmem:[%s4031_s18 + $0x8] sm:$0xff]  ;;  %vm1851_vm6 = vcmask 48144  }
 0xeb9   :  { %1386 = vst.msk [vmem:[#allocation9] sm:$0xff] %vm85_vm0, %v2922_v52  ;;  %1387 = vst.msk [vmem:[#allocation9 + $0x8] sm:$0xff] %vm85_vm0, %v2922_v52  ;;  %v1403_v35 = vld [vmem:[%s4030_s17 + $0x8] sm:$0xff]  ;;  %v1404_v36 = vld [vmem:[%s4030_s17 + $0x10] sm:$0xff]  ;;  %vm1981_vm7 = vcmask 261120   ;;  %vm2441_vm8 = vcmask 7168  }
 0xeba   :  { %v1303_v48 = vld [vmem:[%s4040_s27 + $0x8] sm:$0xff]  ;;  %v1305_v50 = vld [vmem:[%s4040_s27 + $0x18] sm:$0xff]  ;;  %1388 = vst.msk [vmem:[#allocation9 + $0x10] sm:$0xff] %vm85_vm0, %v2922_v52  ;;  %1389 = vst.msk [vmem:[#allocation9 + $0x18] sm:$0xff] %vm85_vm0, %v2922_v52 }
 0xebb   :  { %1312 = vrot.lane.b32.xlu0 %v1303_v48, %s2921_s30  ;;  %1390 = vst.msk [vmem:[#allocation9 + $0x20] sm:$0xff] %vm85_vm0, %v2922_v52  ;;  %1391 = vst.msk [vmem:[#allocation9 + $0x28] sm:$0xff] %vm85_vm0, %v2922_v52  ;;  %v1405_v37 = vld [vmem:[%s4030_s17 + $0x18] sm:$0xff] }
 0xebc   :  { %v1302_v49 = vld [vmem:[%s4040_s27] sm:$0xff]  ;;  %v1304_v51 = vld [vmem:[%s4040_s27 + $0x10] sm:$0xff]  ;;  %1392 = vst.msk [vmem:[#allocation9 + $0x30] sm:$0xff] %vm85_vm0, %v2922_v52  ;;  %1393 = vst.msk [vmem:[#allocation9 + $0x38] sm:$0xff] %vm85_vm0, %v2922_v52  ;;  %s2923_s27 = smov 2   ;;  %vm1686_vm0 = vcmask 31744  }
 0xebd   :  { %1310 = vrot.lane.b32.xlu1 %v1302_v49, %s2921_s30  ;;  %1299 = vst.msk [vmem:[#allocation8 + $0x8] sm:$0xff] %vm1297_vm5, %v2922_v52  ;;  %1298 = vst.msk [vmem:[#allocation8] sm:$0xff] %vm1297_vm5, %v2922_v52 }
 0xebe   :  { %1300 = vst.msk [vmem:[#allocation8 + $0x10] sm:$0xff] %vm1297_vm5, %v2922_v52  ;;  %1301 = vst.msk [vmem:[#allocation8 + $0x18] sm:$0xff] %vm1297_vm5, %v2922_v52 }
 0xebf   :  { %1316 = vrot.lane.b32.xlu0 %v1305_v50, %s2921_s30  ;;  %1394 = vst.msk [vmem:[#allocation9] sm:$0xff] %vm1297_vm5, %v2922_v52  ;;  %1395 = vst.msk [vmem:[#allocation9 + $0x8] sm:$0xff] %vm1297_vm5, %v2922_v52 }
 0xec0   :  { %1396 = vst.msk [vmem:[#allocation9 + $0x10] sm:$0xff] %vm1297_vm5, %v2922_v52  ;;  %1397 = vst.msk [vmem:[#allocation9 + $0x18] sm:$0xff] %vm1297_vm5, %v2922_v52 }
 0xec1   :  { %1314 = vrot.lane.b32.xlu1 %v1304_v51, %s2921_s30  ;;  %1398 = vst.msk [vmem:[#allocation9 + $0x20] sm:$0xff] %vm1297_vm5, %v2922_v52  ;;  %1399 = vst.msk [vmem:[#allocation9 + $0x28] sm:$0xff] %vm1297_vm5, %v2922_v52 }
 0xec2   :  { %1400 = vst.msk [vmem:[#allocation9 + $0x30] sm:$0xff] %vm1297_vm5, %v2922_v52  ;;  %1401 = vst.msk [vmem:[#allocation9 + $0x38] sm:$0xff] %vm1297_vm5, %v2922_v52 }
 0xf2d   :  { %v1313_v53 = vpop.permute.xlu0 %1312 }
 0xf2e   :  { %v1323_v54 = vmax.f32 %v1303_v48, %v1313_v53 }
 0xf2f   :  { %v1311_v55 = vpop.permute.xlu1 %1310 }
 0xf30   :  { %1332 = vrot.lane.b32.xlu0 %v1323_v54, %s2923_s27  ;;  %v1322_v58 = vmax.f32 %v1302_v49, %v1311_v55 }
 0xf31   :  { %v1317_v56 = vpop.permute.xlu0 %1316 }
 0xf32   :  { %v1325_v57 = vmax.f32 %v1305_v50, %v1317_v56 }
 0xf33   :  { %v1315_v59 = vpop.permute.xlu1 %1314 }
 0xf34   :  { %1349 = vrot.lane.b32.xlu0 %v1323_v54, %s2924_s3  ;;  %1336 = vrot.lane.b32.xlu1 %v1325_v57, %s2923_s27  ;;  %v1324_v60 = vmax.f32 %v1304_v51, %v1315_v59 }
 0xf38   :  { %1353 = vrot.lane.b32.xlu1 %v1325_v57, %s2924_s3  ;;  %1330 = vrot.lane.b32.xlu0 %v1322_v58, %s2923_s27 }
 0xf3c   :  { %1347 = vrot.lane.b32.xlu0 %v1322_v58, %s2924_s3  ;;  %1334 = vrot.lane.b32.xlu1 %v1324_v60, %s2923_s27 }
 0xf40   :  { %1371 = vrot.lane.b32.xlu0 %v1323_v54, %s2921_s30  ;;  %1351 = vrot.lane.b32.xlu1 %v1324_v60, %s2924_s3  ;;  %s2929_s3 = smov 127  }
 0xf44   :  { %1369 = vrot.lane.b32.xlu0 %v1322_v58, %s2921_s30  ;;  %1375 = vrot.lane.b32.xlu1 %v1325_v57, %s2921_s30 }
 0xf48   :  { %1373 = vrot.lane.b32.xlu1 %v1324_v60, %s2921_s30 }
 0xfa2   :  { %v1333_v61 = vpop.permute.xlu0 %1332 }
 0xfa3   :  { %1344 = vst.msk [vmem:[#allocation8 + $0x8] sm:$0xff] %vm597_vm9, %v1333_v61 }
 0xfa6   :  { %v1350_v62 = vpop.permute.xlu0 %1349  ;;  %v1337_v63 = vpop.permute.xlu1 %1336 }
 0xfa7   :  { %1361 = vst.msk [vmem:[#allocation8 + $0x8] sm:$0xff] %vm606_vm10, %v1350_v62 }
 0xfa8   :  { %1346 = vst.msk [vmem:[#allocation8 + $0x18] sm:$0xff] %vm597_vm9, %v1337_v63 }
 0xfa9   :  { %1366 = vst.msk [vmem:[#allocation8 + $0x8] sm:$0xff] %vm609_vm11, %v1323_v54 }
 0xfaa   :  { %v1331_v0 = vpop.permute.xlu0 %1330  ;;  %v1354_v1 = vpop.permute.xlu1 %1353 }
 0xfab   :  { %1343 = vst.msk [vmem:[#allocation8] sm:$0xff] %vm597_vm9, %v1331_v0 }
 0xfac   :  { %1363 = vst.msk [vmem:[#allocation8 + $0x18] sm:$0xff] %vm606_vm10, %v1354_v1 }
 0xfad   :  { %1368 = vst.msk [vmem:[#allocation8 + $0x18] sm:$0xff] %vm609_vm11, %v1325_v57 }
 0xfae   :  { %v1348_v3 = vpop.permute.xlu0 %1347  ;;  %v1335_v4 = vpop.permute.xlu1 %1334 }
 0xfaf   :  { %1360 = vst.msk [vmem:[#allocation8] sm:$0xff] %vm606_vm10, %v1348_v3 }
 0xfb0   :  { %1345 = vst.msk [vmem:[#allocation8 + $0x10] sm:$0xff] %vm597_vm9, %v1335_v4 }
 0xfb1   :  { %1365 = vst.msk [vmem:[#allocation8] sm:$0xff] %vm609_vm11, %v1322_v58 }
 0xfb2   :  { %v1372_v5 = vpop.permute.xlu0 %1371  ;;  %v1352_v6 = vpop.permute.xlu1 %1351 }
 0xfb3   :  { %1383 = vst.msk [vmem:[#allocation8 + $0x8] sm:$0xff] %vm618_vm12, %v1372_v5 }
 0xfb4   :  { %1362 = vst.msk [vmem:[#allocation8 + $0x10] sm:$0xff] %vm606_vm10, %v1352_v6 }
 0xfb5   :  { %1367 = vst.msk [vmem:[#allocation8 + $0x10] sm:$0xff] %vm609_vm11, %v1324_v60 }
 0xfb6   :  { %v1370_v7 = vpop.permute.xlu0 %1369  ;;  %v1376_v8 = vpop.permute.xlu1 %1375 }
 0xfb7   :  { %1382 = vst.msk [vmem:[#allocation8] sm:$0xff] %vm618_vm12, %v1370_v7  ;;  %1385 = vst.msk [vmem:[#allocation8 + $0x18] sm:$0xff] %vm618_vm12, %v1376_v8 }
 0xfba   :  { %v1374_v9 = vpop.permute.xlu1 %1373  ;;  %v3445_v10 = vld [vmem:[#allocation8 + $0x8] sm:$0xff] }
 0xfbb   :  { %1384 = vst.msk [vmem:[#allocation8 + $0x10] sm:$0xff] %vm618_vm12, %v1374_v9  ;;  %1442 = vrot.lane.b32.xlu0 %v3445_v10, %s2925_s2 }
 0xfbe   :  { %v3450_v11 = vld [vmem:[#allocation8 + $0x18] sm:$0xff]  ;;  %v3452_v12 = vld [vmem:[#allocation8] sm:$0xff] }
 0xfbf   :  { %1593 = vrot.lane.b32.xlu1 %v3450_v11, %s2925_s2  ;;  %1440 = vrot.lane.b32.xlu0 %v3452_v12, %s2925_s2 }
 0xfc2   :  { %v3458_v13 = vld [vmem:[#allocation8 + $0x10] sm:$0xff] }
 0xfc3   :  { %1591 = vrot.lane.b32.xlu1 %v3458_v13, %s2925_s2  ;;  %1436 = vrot.lane.b32.xlu0 %v3445_v10, %s2926_s15 }
 0xfc7   :  { %1587 = vrot.lane.b32.xlu1 %v3450_v11, %s2926_s15  ;;  %1434 = vrot.lane.b32.xlu0 %v3452_v12, %s2926_s15 }
 0xfcb   :  { %1585 = vrot.lane.b32.xlu1 %v3458_v13, %s2926_s15  ;;  %1430 = vrot.lane.b32.xlu0 %v3445_v10, %s2927_s10 }
 0xfcf   :  { %1581 = vrot.lane.b32.xlu1 %v3450_v11, %s2927_s10  ;;  %1428 = vrot.lane.b32.xlu0 %v3452_v12, %s2927_s10 }
 0xfd3   :  { %1579 = vrot.lane.b32.xlu1 %v3458_v13, %s2927_s10  ;;  %1424 = vrot.lane.b32.xlu0 %v3445_v10, %s2921_s30 }
 0xfd7   :  { %1575 = vrot.lane.b32.xlu1 %v3450_v11, %s2921_s30  ;;  %1422 = vrot.lane.b32.xlu0 %v3452_v12, %s2921_s30 }
 0xfdb   :  { %1573 = vrot.lane.b32.xlu1 %v3458_v13, %s2921_s30  ;;  %1463 = vperm.xlu0 %2864, %v1409_v15  }
 0xfdf   :  { %1458 = vperm.xlu1 %2865, %v1408_v2   ;;  %1448 = vperm.xlu0 %2864, %v1406_v17  }
 0xfe3   :  { %1453 = vperm.xlu1 %2865, %v1407_v18  }
0x102d   :  { %v1443_v19 = vpop.permute.xlu0 %1442 }
0x102e   :  { %2767 = vmatprep.subr.mxu0 %v1443_v19 }
0x102f   :  { %2768 = vmatpush3.msra.mxu0 %v1443_v19 }
0x1031   :  { %v1594_v20 = vpop.permute.xlu1 %1593  ;;  %v1441_v21 = vpop.permute.xlu0 %1440 }
0x1032   :  { %2769 = vmatprep.subr.mxu0 %v1441_v21  ;;  %2793 = vmatprep.subr.mxu1 %v1594_v20 }
0x1033   :  { %2770 = vmatpush3.msra.mxu0 %v1441_v21  ;;  %2794 = vmatpush3.msra.mxu1 %v1594_v20 }
0x1035   :  { %v1592_v22 = vpop.permute.xlu1 %1591  ;;  %v1437_v23 = vpop.permute.xlu0 %1436 }
0x1036   :  { %2771 = vmatprep.subr.mxu0 %v1437_v23  ;;  %2795 = vmatprep.subr.mxu1 %v1592_v22 }
0x1037   :  { %2772 = vmatpush3.msra.mxu0 %v1437_v23  ;;  %2796 = vmatpush3.msra.mxu1 %v1592_v22 }
0x1039   :  { %v1588_v24 = vpop.permute.xlu1 %1587  ;;  %v1435_v25 = vpop.permute.xlu0 %1434 }
0x103a   :  { %2773 = vmatprep.subr.mxu0 %v1435_v25  ;;  %2797 = vmatprep.subr.mxu1 %v1588_v24 }
0x103b   :  { %2774 = vmatpush3.msra.mxu0 %v1435_v25  ;;  %2798 = vmatpush3.msra.mxu1 %v1588_v24 }
0x103d   :  { %v1586_v26 = vpop.permute.xlu1 %1585  ;;  %v1431_v27 = vpop.permute.xlu0 %1430 }
0x103e   :  { %2775 = vmatprep.subr.mxu0 %v1431_v27  ;;  %2799 = vmatprep.subr.mxu1 %v1586_v26 }
0x103f   :  { %2776 = vmatpush3.msra.mxu0 %v1431_v27  ;;  %2800 = vmatpush3.msra.mxu1 %v1586_v26 }
0x1041   :  { %v1582_v28 = vpop.permute.xlu1 %1581  ;;  %v1429_v29 = vpop.permute.xlu0 %1428 }
0x1042   :  { %2777 = vmatprep.subr.mxu0 %v1429_v29  ;;  %2801 = vmatprep.subr.mxu1 %v1582_v28 }
0x1043   :  { %2778 = vmatpush3.msra.mxu0 %v1429_v29  ;;  %2802 = vmatpush3.msra.mxu1 %v1582_v28 }
0x1045   :  { %v1580_v30 = vpop.permute.xlu1 %1579  ;;  %v1425_v31 = vpop.permute.xlu0 %1424 }
0x1046   :  { %2779 = vmatprep.subr.mxu0 %v1425_v31  ;;  %2803 = vmatprep.subr.mxu1 %v1580_v30 }
0x1047   :  { %2780 = vmatpush3.msra.mxu0 %v1425_v31  ;;  %2804 = vmatpush3.msra.mxu1 %v1580_v30 }
0x1049   :  { %v1576_v32 = vpop.permute.xlu1 %1575  ;;  %v1423_v33 = vpop.permute.xlu0 %1422 }
0x104a   :  { %2781 = vmatprep.subr.mxu0 %v1423_v33  ;;  %2805 = vmatprep.subr.mxu1 %v1576_v32 }
0x104b   :  { %2782 = vmatpush3.msra.mxu0 %v1423_v33  ;;  %2806 = vmatpush3.msra.mxu1 %v1576_v32 }
0x104c   :  { %2783 = vmatprep.subr.mxu0 %v3445_v10 }
0x104d   :  { %v1574_v34 = vpop.permute.xlu1 %1573  ;;  %2784 = vmatpush3.msra.mxu0 %v3445_v10 }
0x104e   :  { %2785 = vmatprep.subr.mxu0 %v3452_v12  ;;  %2807 = vmatprep.subr.mxu1 %v1574_v34 }
0x104f   :  { %2786 = vmatpush3.msra.mxu0 %v3452_v12  ;;  %2808 = vmatpush3.msra.mxu1 %v1574_v34 }
0x1050   :  { %2788 = vmatmul.mubr.msk.f32.vlgmr.msra.gmra.mxu0 %vm1020_vm4, %v1403_v35  ;;  %2809 = vmatprep.subr.mxu1 %v3450_v11 }
0x1051   :  { %2810 = vmatpush3.msra.mxu1 %v3450_v11  ;;  %2790 = vmatprep.mubr.msk.f32.mxu0 %vm1020_vm4, %v1404_v36 }
0x1052   :  { %2811 = vmatprep.subr.mxu1 %v3458_v13  ;;  %1994 = vmatprep.subr.mxu0 %v2922_v52 }
0x1053   :  { %2812 = vmatpush3.msra.mxu1 %v3458_v13 }
0x1054   :  { %2791 = vmatmul.mubr.msk.f32.gmra.mxu0 %vm1020_vm4, %v1405_v37  ;;  %2814 = vmatmul.mubr.msk.f32.vlgmr.msra.gmra.mxu1 %vm1020_vm4, %v1403_v35 }
0x1055   :  { %2816 = vmatprep.mubr.msk.f32.mxu1 %vm1020_vm4, %v1404_v36  ;;  %2139 = vmatprep.subr.mxu1 %v2922_v52 }
0x1056   :  { %v1464_v44 = vpop.permute.xlu0 %1463 }
0x1058   :  { %2817 = vmatmul.mubr.msk.f32.gmra.mxu1 %vm1020_vm4, %v1405_v37 }
0x105a   :  { %v1459_v38 = vpop.permute.xlu1 %1458  ;;  %v1449_v56 = vpop.permute.xlu0 %1448 }
0x105e   :  { %v1454_v39 = vpop.permute.xlu1 %1453 }
0x1110   :  { %v2789_v40 = vpop.f32.mrf.mxu0 }
0x1111   :  { %v1551_v41 = vadd.f32 %v2789_v40, %v1454_v39 }
0x1112   :  { %v1545_v42 = vpop.f32.mrf.mxu0 }
0x1113   :  { %v1565_v43 = vmax.f32 %v1551_v41, 0.0  ;;  %v1546_v0 = vadd.f32 %v1545_v42, %v1449_v56 }
0x1114   :  { %v2792_v45 = vpop.f32.mrf.mxu0  ;;  %v2815_v46 = vpop.f32.mrf.mxu1 }
0x1115   :  { %v1561_v47 = vadd.f32 %v2792_v45, %v1464_v44  ;;  %v1669_v48 = vadd.f32 %v2815_v46, %v1454_v39  ;;  %v1690_v49 = vsel %vm1686_vm0, %v1565_v43, 0.0  ;;  %v1564_v6 = vmax.f32 %v1546_v0, 0.0 }
0x1116   :  { %v1663_v50 = vpop.f32.mrf.mxu1  ;;  %1691 = vadd.xlane.f32.xlu0 %v1690_v49  ;;  %v1555_v51 = vpop.f32.mrf.mxu0 }
0x1117   :  { %v1567_v53 = vmax.f32 %v1561_v47, 0.0  ;;  %v1683_v54 = vmax.f32 %v1669_v48, 0.0  ;;  %v1556_v57 = vadd.f32 %v1555_v51, %v1459_v38  ;;  %v1664_v1 = vadd.f32 %v1663_v50, %v1449_v56  ;;  %v1417_v51 = vld [vmem:[%s4033_s20 + $0x18] sm:$0xff] }
0x1118   :  { %v2818_v55 = vpop.f32.mrf.mxu1  ;;  %v1687_v11 = vsel %vm1686_vm0, %v1564_v6, 0.0 }
0x1119   :  { %v1679_v58 = vadd.f32 %v2818_v55, %v1464_v44  ;;  %v1706_v59 = vsel %vm1686_vm0, %v1683_v54, 0.0  ;;  %v1696_v63 = vsel %vm1686_vm0, %v1567_v53, 0.0  ;;  %v1566_v3 = vmax.f32 %v1556_v57, 0.0 }
0x111a   :  { %v1673_v60 = vpop.f32.mrf.mxu1  ;;  %1707 = vadd.xlane.f32.xlu1 %v1706_v59  ;;  %v1682_v7 = vmax.f32 %v1664_v1, 0.0 }
0x111b   :  { %v1685_v61 = vmax.f32 %v1679_v58, 0.0  ;;  %v1674_v62 = vadd.f32 %v1673_v60, %v1459_v38  ;;  %v1693_v8 = vsel %vm1686_vm0, %v1566_v3, 0.0 }
0x111c   :  { %v1703_v10 = vsel %vm1686_vm0, %v1682_v7, 0.0 }
0x111d   :  { %v1684_v4 = vmax.f32 %v1674_v62, 0.0  ;;  %v1712_v5 = vsel %vm1686_vm0, %v1685_v61, 0.0 }
0x111e   :  { %1713 = vadd.xlane.f32.xlu0 %v1712_v5  ;;  %1697 = vadd.xlane.f32.xlu1 %v1696_v63 }
0x111f   :  { %v1709_v9 = vsel %vm1686_vm0, %v1684_v4, 0.0 }
0x1122   :  { %1694 = vadd.xlane.f32.xlu0 %v1693_v8  ;;  %1710 = vadd.xlane.f32.xlu1 %v1709_v9 }
0x1126   :  { %1704 = vadd.xlane.f32.xlu1 %v1703_v10  ;;  %1688 = vadd.xlane.f32.xlu0 %v1687_v11  ;;  %v1411_v11 = vld [vmem:[%s4032_s19 + $0x8] sm:$0xff] }
0x119f   :  { %v1692_v12 = vpop.xlane.xlu0 %1691 }
0x11a3   :  { %v1708_v13 = vpop.xlane.xlu1 %1707 }
0x11a4   :  { %v1716_v14 = vadd.f32 %v1708_v13, %v1692_v12 }
0x11a6   :  { %v1720_v15 = vmul.f32 0.125, %v1716_v14  ;;  %v1413_v14 = vld [vmem:[%s4032_s19 + $0x18] sm:$0xff] }
0x11a7   :  { %v1698_v16 = vpop.xlane.xlu1 %1697  ;;  %v1714_v2 = vpop.xlane.xlu0 %1713 }
0x11a8   :  { %v3536_v17 = vsub.f32 %v1565_v43, %v1720_v15  ;;  %v3538_v18 = vsub.f32 %v1683_v54, %v1720_v15  ;;  %v1718_v19 = vadd.f32 %v1714_v2, %v1698_v16  ;;  %v1412_v2 = vld [vmem:[%s4032_s19 + $0x10] sm:$0xff] }
0x11aa   :  { %v1722_v20 = vmul.f32 0.125, %v1718_v19  ;;  %v1752_v21 = vmul.f32 %v3538_v18, %v3538_v18  ;;  %v1732_v22 = vmul.f32 %v3536_v17, %v3536_v17 }
0x11ab   :  { %v1711_v23 = vpop.xlane.xlu1 %1710  ;;  %v1695_v24 = vpop.xlane.xlu0 %1694 }
0x11ac   :  { %v3544_v25 = vsub.f32 %v1567_v53, %v1722_v20  ;;  %v3546_v26 = vsub.f32 %v1685_v61, %v1722_v20  ;;  %v1717_v27 = vadd.f32 %v1711_v23, %v1695_v24  ;;  %v1758_v28 = vsel %vm1686_vm0, %v1752_v21, 0.0  ;;  %v1416_v53 = vld [vmem:[%s4033_s20 + $0x10] sm:$0xff]  ;;  %v1410_v21 = vld [vmem:[%s4032_s19] sm:$0xff]  ;;  %v1415_v23 = vld [vmem:[%s4033_s20 + $0x8] sm:$0xff] }
0x11ad   :  { %1759 = vadd.xlane.f32.xlu1 %v1758_v28  ;;  %v1738_v29 = vsel %vm1686_vm0, %v1732_v22, 0.0 }
0x11ae   :  { %v1721_v30 = vmul.f32 0.125, %v1717_v27  ;;  %1739 = vadd.xlane.f32.xlu0 %v1738_v29  ;;  %v1754_v31 = vmul.f32 %v3546_v26, %v3546_v26  ;;  %v1734_v32 = vmul.f32 %v3544_v25, %v3544_v25  ;;  %v1414_v27 = vld [vmem:[%s4033_s20] sm:$0xff] }
0x11af   :  { %v1705_v33 = vpop.xlane.xlu1 %1704  ;;  %v1689_v34 = vpop.xlane.xlu0 %1688 }
0x11b0   :  { %v3554_v35 = vsub.f32 %v1566_v3, %v1721_v30  ;;  %v3556_v36 = vsub.f32 %v1684_v4, %v1721_v30  ;;  %v1715_v37 = vadd.f32 %v1705_v33, %v1689_v34  ;;  %v1764_v38 = vsel %vm1686_vm0, %v1754_v31, 0.0 }
0x11b1   :  { %1765 = vadd.xlane.f32.xlu1 %v1764_v38  ;;  %v1744_v39 = vsel %vm1686_vm0, %v1734_v32, 0.0 }
0x11b2   :  { %v1719_v40 = vmul.f32 0.125, %v1715_v37  ;;  %1745 = vadd.xlane.f32.xlu0 %v1744_v39  ;;  %v1753_v41 = vmul.f32 %v3556_v36, %v3556_v36  ;;  %v1733_v42 = vmul.f32 %v3554_v35, %v3554_v35 }
0x11b4   :  { %v3564_v43 = vsub.f32 %v1564_v6, %v1719_v40  ;;  %v3566_v44 = vsub.f32 %v1682_v7, %v1719_v40  ;;  %v1761_v45 = vsel %vm1686_vm0, %v1753_v41, 0.0  ;;  %v1741_v46 = vsel %vm1686_vm0, %v1733_v42, 0.0 }
0x11b5   :  { %1762 = vadd.xlane.f32.xlu1 %v1761_v45 }
0x11b6   :  { %1742 = vadd.xlane.f32.xlu0 %v1741_v46  ;;  %v1751_v47 = vmul.f32 %v3566_v44, %v3566_v44  ;;  %v1731_v48 = vmul.f32 %v3564_v43, %v3564_v43 }
0x11b8   :  { %v1755_v49 = vsel %vm1686_vm0, %v1751_v47, 0.0  ;;  %v1735_v50 = vsel %vm1686_vm0, %v1731_v48, 0.0 }
0x11b9   :  { %1756 = vadd.xlane.f32.xlu1 %v1755_v49 }
0x11ba   :  { %1736 = vadd.xlane.f32.xlu0 %v1735_v50 }
0x11ca   :  { %1828 = vperm.xlu1 %2865, %v1417_v51  }
0x11ce   :  { %1823 = vperm.xlu1 %2865, %v1416_v53  }
0x1236   :  { %v1760_v54 = vpop.xlane.xlu1 %1759 }
0x1237   :  { %v1740_v55 = vpop.xlane.xlu0 %1739 }
0x1238   :  { %v1768_v56 = vadd.f32 %v1760_v54, %v1740_v55 }
0x123a   :  { %v1772_v57 = vmul.f32 0.125, %v1768_v56  ;;  %v1766_v58 = vpop.xlane.xlu1 %1765 }
0x123b   :  { %v1746_v59 = vpop.xlane.xlu0 %1745 }
0x123c   :  { %v1776_v60 = vadd.f32 1e-05, %v1772_v57  ;;  %v1770_v61 = vadd.f32 %v1766_v58, %v1746_v59 }
0x123e   :  { %2866 = vrsqrt.f32 %v1776_v60  ;;  %v1774_v62 = vmul.f32 0.125, %v1770_v61  ;;  %v1763_v63 = vpop.xlane.xlu1 %1762 }
0x123f   :  { %v1743_v0 = vpop.xlane.xlu0 %1742 }
0x1240   :  { %v1778_v1 = vadd.f32 1e-05, %v1774_v62  ;;  %v1769_v3 = vadd.f32 %v1763_v63, %v1743_v0 }
0x1242   :  { %2868 = vrsqrt.f32 %v1778_v1  ;;  %v1773_v4 = vmul.f32 0.125, %v1769_v3  ;;  %v1757_v5 = vpop.xlane.xlu1 %1756  ;;  %v1886_v1 = vld [vmem:[%s4034_s21 + $0x8] sm:$0xff]  ;;  %v1893_v3 = vld [vmem:[%s4035_s22] sm:$0xff] }
0x1243   :  { %v1737_v6 = vpop.xlane.xlu0 %1736  ;;  %2541 = vmatprep.mubr.msk.f32.mxu0 %vm1981_vm7, %v1886_v1  ;;  %2545 = vmatprep.mubr.msk.f32.mxu1 %vm1981_vm7, %v1886_v1 }
0x1244   :  { %v1777_v7 = vadd.f32 1e-05, %v1773_v4  ;;  %v1767_v8 = vadd.f32 %v1757_v5, %v1737_v6  ;;  %v1894_v4 = vld [vmem:[%s4035_s22 + $0x8] sm:$0xff]  ;;  %v1895_v5 = vld [vmem:[%s4035_s22 + $0x10] sm:$0xff]  ;;  %v1896_v6 = vld [vmem:[%s4035_s22 + $0x18] sm:$0xff] }
0x1246   :  { %2870 = vrsqrt.f32 %v1777_v7  ;;  %v1771_v9 = vmul.f32 0.125, %v1767_v8  ;;  %v1829_v28 = vpop.permute.xlu1 %1828 }
0x1248   :  { %v1775_v10 = vadd.f32 1e-05, %v1771_v9 }
0x124a   :  { %2872 = vrsqrt.f32 %v1775_v10  ;;  %v1824_v29 = vpop.permute.xlu1 %1823 }
0x124b   :  { %v2867_v12 = vpop.eup %2866 }
0x124c   :  { %v1784_v13 = vmul.f32 %v2867_v12, %v1411_v11 }
0x124e   :  { %1794 = vperm.xlu0 %2864, %v1784_v13  }
0x124f   :  { %v2869_v15 = vpop.eup %2868 }
0x1250   :  { %v1786_v16 = vmul.f32 %v2869_v15, %v1413_v14 }
0x1252   :  { %1804 = vperm.xlu0 %2864, %v1786_v16  }
0x1253   :  { %v2871_v19 = vpop.eup %2870 }
0x1254   :  { %v1785_v20 = vmul.f32 %v2871_v19, %v1412_v2 }
0x1256   :  { %1799 = vperm.xlu1 %2865, %v1785_v20  }
0x1257   :  { %v2873_v22 = vpop.eup %2872 }
0x1258   :  { %v1783_v24 = vmul.f32 %v2873_v22, %v1410_v21 }
0x125a   :  { %1818 = vperm.xlu1 %2865, %v1415_v23   ;;  %1789 = vperm.xlu0 %2864, %v1783_v24  }
0x125e   :  { %1813 = vperm.xlu0 %2864, %v1414_v27  }
0x12c9   :  { %v1795_v30 = vpop.permute.xlu0 %1794 }
0x12ca   :  { %v1808_v33 = vmul.f32 %v1795_v30, %v3536_v17  ;;  %v1857_v34 = vmul.f32 %v1795_v30, %v3538_v18 }
0x12cd   :  { %v1805_v32 = vpop.permute.xlu0 %1804 }
0x12ce   :  { %v1810_v38 = vmul.f32 %v1805_v32, %v3544_v25  ;;  %v1859_v39 = vmul.f32 %v1805_v32, %v3546_v26 }
0x12d0   :  { %v1834_v45 = vadd.f32 %v1829_v28, %v1810_v38  ;;  %v1863_v46 = vadd.f32 %v1859_v39, %v1829_v28 }
0x12d1   :  { %v1800_v31 = vpop.permute.xlu1 %1799 }
0x12d2   :  { %v1809_v47 = vmul.f32 %v1800_v31, %v3554_v35  ;;  %v1858_v17 = vmul.f32 %v1800_v31, %v3556_v36 }
0x12d4   :  { %v1833_v18 = vadd.f32 %v1824_v29, %v1809_v47  ;;  %v1862_v25 = vadd.f32 %v1858_v17, %v1824_v29  ;;  %v1888_v47 = vld [vmem:[%s4034_s21 + $0x18] sm:$0xff]  ;;  %v1887_v17 = vld [vmem:[%s4034_s21 + $0x10] sm:$0xff] }
0x12d5   :  { %v1819_v37 = vpop.permute.xlu1 %1818  ;;  %v1790_v42 = vpop.permute.xlu0 %1789 }
0x12d6   :  { %v1832_v40 = vadd.f32 %v1819_v37, %v1808_v33  ;;  %v1861_v41 = vadd.f32 %v1857_v34, %v1819_v37  ;;  %v1807_v48 = vmul.f32 %v1790_v42, %v3564_v43  ;;  %v1856_v49 = vmul.f32 %v1790_v42, %v3566_v44  ;;  %v1885_v42 = vld [vmem:[%s4034_s21] sm:$0xff] }
0x12d8   :  { %1870 = vrot.lane.b32.xlu0 %v1861_v41, %s2923_s27  ;;  %1841 = vrot.lane.b32.xlu1 %v1832_v40, %s2923_s27 }
0x12d9   :  { %v1814_v26 = vpop.permute.xlu0 %1813 }
0x12da   :  { %v1831_v50 = vadd.f32 %v1814_v26, %v1807_v48  ;;  %v1860_v51 = vadd.f32 %v1856_v49, %v1814_v26  ;;  %v1891_v26 = vld [vmem:[%s4034_s21 + $0x30] sm:$0xff] }
0x12dc   :  { %1874 = vrot.lane.b32.xlu0 %v1863_v46, %s2923_s27  ;;  %1845 = vrot.lane.b32.xlu1 %v1834_v45, %s2923_s27 }
0x12e0   :  { %1872 = vrot.lane.b32.xlu0 %v1862_v25, %s2923_s27  ;;  %1843 = vrot.lane.b32.xlu1 %v1833_v18, %s2923_s27  ;;  %v1889_v18 = vld [vmem:[%s4034_s21 + $0x20] sm:$0xff]  ;;  %v1892_v25 = vld [vmem:[%s4034_s21 + $0x38] sm:$0xff] }
0x12e4   :  { %1839 = vrot.lane.b32.xlu1 %v1831_v50, %s2923_s27  ;;  %1868 = vrot.lane.b32.xlu0 %v1860_v51, %s2923_s27 }
0x134a   :  { %v1842_v35 = vpop.permute.xlu1 %1841  ;;  %v1871_v36 = vpop.permute.xlu0 %1870 }
0x134b   :  { %1853 = vst.msk [vmem:[#allocation9 + $0x8] sm:$0xff] %vm1851_vm6, %v1842_v35  ;;  %1882 = vst.msk [vmem:[#allocation9 + $0x28] sm:$0xff] %vm1851_vm6, %v1871_v36 }
0x134e   :  { %v1846_v43 = vpop.permute.xlu1 %1845  ;;  %v1875_v53 = vpop.permute.xlu0 %1874 }
0x134f   :  { %1855 = vst.msk [vmem:[#allocation9 + $0x18] sm:$0xff] %vm1851_vm6, %v1846_v43  ;;  %1884 = vst.msk [vmem:[#allocation9 + $0x38] sm:$0xff] %vm1851_vm6, %v1875_v53 }
0x1352   :  { %v1844_v44 = vpop.permute.xlu1 %1843  ;;  %v1873_v54 = vpop.permute.xlu0 %1872  ;;  %v3620_v55 = vld [vmem:[#allocation9 + $0x8] sm:$0xff] }
0x1353   :  { %v3622_v56 = vld [vmem:[#allocation9 + $0x28] sm:$0xff]  ;;  %1854 = vst.msk [vmem:[#allocation9 + $0x10] sm:$0xff] %vm1851_vm6, %v1844_v44  ;;  %1883 = vst.msk [vmem:[#allocation9 + $0x30] sm:$0xff] %vm1851_vm6, %v1873_v54  ;;  %1939 = vrot.lane.b32.xlu1 %v3620_v55, %s2926_s15 }
0x1354   :  { %2117 = vrot.lane.b32.xlu0 %v3622_v56, %s2926_s15 }
0x1356   :  { %v1840_v57 = vpop.permute.xlu1 %1839  ;;  %v1869_v58 = vpop.permute.xlu0 %1868  ;;  %v3648_v61 = vld [vmem:[#allocation9 + $0x18] sm:$0xff] }
0x1357   :  { %1852 = vst.msk [vmem:[#allocation9] sm:$0xff] %vm1851_vm6, %v1840_v57  ;;  %1881 = vst.msk [vmem:[#allocation9 + $0x20] sm:$0xff] %vm1851_vm6, %v1869_v58  ;;  %1927 = vrot.lane.b32.xlu1 %v3620_v55, %s2927_s10  ;;  %v3650_v62 = vld [vmem:[#allocation9 + $0x38] sm:$0xff] }
0x1358   :  { %2105 = vrot.lane.b32.xlu0 %v3622_v56, %s2927_s10 }
0x135a   :  { %v3660_v63 = vld [vmem:[#allocation9 + $0x10] sm:$0xff] }
0x135b   :  { %v3662_v0 = vld [vmem:[#allocation9 + $0x30] sm:$0xff] }
0x135e   :  { %v3636_v59 = vld [vmem:[#allocation9] sm:$0xff] }
0x135f   :  { %v3638_v60 = vld [vmem:[#allocation9 + $0x20] sm:$0xff]  ;;  %1937 = vrot.lane.b32.xlu1 %v3636_v59, %s2926_s15 }
0x1360   :  { %2115 = vrot.lane.b32.xlu0 %v3638_v60, %s2926_s15 }
0x1363   :  { %1925 = vrot.lane.b32.xlu1 %v3636_v59, %s2927_s10 }
0x1364   :  { %2103 = vrot.lane.b32.xlu0 %v3638_v60, %s2927_s10 }
0x1367   :  { %1943 = vrot.lane.b32.xlu1 %v3648_v61, %s2926_s15 }
0x1368   :  { %2121 = vrot.lane.b32.xlu0 %v3650_v62, %s2926_s15 }
0x136b   :  { %1931 = vrot.lane.b32.xlu1 %v3648_v61, %s2927_s10 }
0x136c   :  { %2109 = vrot.lane.b32.xlu0 %v3650_v62, %s2927_s10 }
0x136f   :  { %1941 = vrot.lane.b32.xlu1 %v3660_v63, %s2926_s15 }
0x1370   :  { %2119 = vrot.lane.b32.xlu0 %v3662_v0, %s2926_s15 }
0x1373   :  { %1919 = vrot.lane.b32.xlu1 %v3648_v61, %s2921_s30 }
0x1374   :  { %2097 = vrot.lane.b32.xlu0 %v3650_v62, %s2921_s30 }
0x1377   :  { %1929 = vrot.lane.b32.xlu1 %v3660_v63, %s2927_s10 }
0x1378   :  { %2107 = vrot.lane.b32.xlu0 %v3662_v0, %s2927_s10 }
0x137b   :  { %1915 = vrot.lane.b32.xlu1 %v3620_v55, %s2921_s30 }
0x137c   :  { %2093 = vrot.lane.b32.xlu0 %v3622_v56, %s2921_s30 }
0x137f   :  { %1917 = vrot.lane.b32.xlu1 %v3660_v63, %s2921_s30 }
0x1380   :  { %2095 = vrot.lane.b32.xlu0 %v3662_v0, %s2921_s30 }
0x1383   :  { %1913 = vrot.lane.b32.xlu1 %v3636_v59, %s2921_s30 }
0x1384   :  { %2091 = vrot.lane.b32.xlu0 %v3638_v60, %s2921_s30 }
0x1387   :  { %1955 = vrot.lane.b32.xlu1 %v3648_v61, %s2925_s2 }
0x1388   :  { %2133 = vrot.lane.b32.xlu0 %v3650_v62, %s2925_s2 }
0x138b   :  { %1951 = vrot.lane.b32.xlu1 %v3620_v55, %s2925_s2 }
0x138c   :  { %2129 = vrot.lane.b32.xlu0 %v3622_v56, %s2925_s2 }
0x138f   :  { %1953 = vrot.lane.b32.xlu1 %v3660_v63, %s2925_s2 }
0x1390   :  { %2131 = vrot.lane.b32.xlu0 %v3662_v0, %s2925_s2 }
0x1393   :  { %1949 = vrot.lane.b32.xlu1 %v3636_v59, %s2925_s2 }
0x1394   :  { %2127 = vrot.lane.b32.xlu0 %v3638_v60, %s2925_s2 }
0x1397   :  { %1963 = vperm.xlu1 %2865, %v1893_v3  }
0x1398   :  { %1968 = vperm.xlu0 %2864, %v1894_v4  }
0x139b   :  { %1973 = vperm.xlu1 %2865, %v1895_v5  }
0x139c   :  { %1978 = vperm.xlu0 %2864, %v1896_v6  }
0x13c5   :  { %v1940_v7 = vpop.permute.xlu1 %1939 }
0x13c6   :  { %v2118_v8 = vpop.permute.xlu0 %2117 }
0x13c9   :  { %v1928_v9 = vpop.permute.xlu1 %1927 }
0x13ca   :  { %v2106_v10 = vpop.permute.xlu0 %2105 }
0x13d1   :  { %v1938_v11 = vpop.permute.xlu1 %1937 }
0x13d2   :  { %v2116_v12 = vpop.permute.xlu0 %2115 }
0x13d5   :  { %v1926_v13 = vpop.permute.xlu1 %1925 }
0x13d6   :  { %v2104_v14 = vpop.permute.xlu0 %2103 }
0x13d9   :  { %v1944_v15 = vpop.permute.xlu1 %1943 }
0x13da   :  { %v2122_v16 = vpop.permute.xlu0 %2121  ;;  %1995 = vmatpush1.msra.mxu0 %v1944_v15 }
0x13db   :  { %2140 = vmatpush1.msra.mxu1 %v2122_v16  ;;  %1996 = vmatprep.subr.mxu0 %v2922_v52 }
0x13dc   :  { %2141 = vmatprep.subr.mxu1 %v2922_v52 }
0x13dd   :  { %v1932_v2 = vpop.permute.xlu1 %1931 }
0x13de   :  { %v2110_v19 = vpop.permute.xlu0 %2109 }
0x13e1   :  { %v1942_v20 = vpop.permute.xlu1 %1941 }
0x13e2   :  { %v2120_v21 = vpop.permute.xlu0 %2119  ;;  %1997 = vmatpush1.msra.mxu0 %v1942_v20 }
0x13e3   :  { %2142 = vmatpush1.msra.mxu1 %v2120_v21  ;;  %1998 = vmatprep.subr.mxu0 %v2922_v52 }
0x13e4   :  { %2143 = vmatprep.subr.mxu1 %v2922_v52  ;;  %1999 = vmatpush1.msra.mxu0 %v1940_v7 }
0x13e5   :  { %2144 = vmatpush1.msra.mxu1 %v2118_v8  ;;  %2000 = vmatprep.subr.mxu0 %v2922_v52  ;;  %v1920_v22 = vpop.permute.xlu1 %1919 }
0x13e6   :  { %2145 = vmatprep.subr.mxu1 %v2922_v52  ;;  %v2098_v23 = vpop.permute.xlu0 %2097  ;;  %2001 = vmatpush1.msra.mxu0 %v1938_v11 }
0x13e7   :  { %2146 = vmatpush1.msra.mxu1 %v2116_v12  ;;  %2002 = vmatprep.subr.mxu0 %v2922_v52 }
0x13e8   :  { %2147 = vmatprep.subr.mxu1 %v2922_v52  ;;  %2003 = vmatpush1.msra.mxu0 %v1932_v2 }
0x13e9   :  { %2148 = vmatpush1.msra.mxu1 %v2110_v19  ;;  %2004 = vmatprep.subr.mxu0 %v2922_v52  ;;  %v1930_v24 = vpop.permute.xlu1 %1929 }
0x13ea   :  { %2149 = vmatprep.subr.mxu1 %v2922_v52  ;;  %v2108_v27 = vpop.permute.xlu0 %2107  ;;  %2005 = vmatpush1.msra.mxu0 %v1930_v24 }
0x13eb   :  { %2150 = vmatpush1.msra.mxu1 %v2108_v27  ;;  %2006 = vmatprep.subr.mxu0 %v2922_v52 }
0x13ec   :  { %2151 = vmatprep.subr.mxu1 %v2922_v52  ;;  %2007 = vmatpush1.msra.mxu0 %v1928_v9 }
0x13ed   :  { %2152 = vmatpush1.msra.mxu1 %v2106_v10  ;;  %2008 = vmatprep.subr.mxu0 %v2922_v52  ;;  %v1916_v28 = vpop.permute.xlu1 %1915 }
0x13ee   :  { %2153 = vmatprep.subr.mxu1 %v2922_v52  ;;  %v2094_v29 = vpop.permute.xlu0 %2093  ;;  %2009 = vmatpush1.msra.mxu0 %v1926_v13 }
0x13ef   :  { %2154 = vmatpush1.msra.mxu1 %v2104_v14  ;;  %2010 = vmatprep.subr.mxu0 %v2922_v52 }
0x13f0   :  { %2155 = vmatprep.subr.mxu1 %v2922_v52  ;;  %2011 = vmatpush1.msra.mxu0 %v1920_v22 }
0x13f1   :  { %2156 = vmatpush1.msra.mxu1 %v2098_v23  ;;  %2012 = vmatprep.subr.mxu0 %v2922_v52  ;;  %v1918_v30 = vpop.permute.xlu1 %1917 }
0x13f2   :  { %2157 = vmatprep.subr.mxu1 %v2922_v52  ;;  %v2096_v31 = vpop.permute.xlu0 %2095  ;;  %2013 = vmatpush1.msra.mxu0 %v1918_v30 }
0x13f3   :  { %2158 = vmatpush1.msra.mxu1 %v2096_v31  ;;  %2014 = vmatprep.subr.mxu0 %v2922_v52 }
0x13f4   :  { %2159 = vmatprep.subr.mxu1 %v2922_v52  ;;  %2015 = vmatpush1.msra.mxu0 %v1916_v28 }
0x13f5   :  { %2160 = vmatpush1.msra.mxu1 %v2094_v29  ;;  %2016 = vmatprep.subr.mxu0 %v2922_v52  ;;  %v1914_v32 = vpop.permute.xlu1 %1913 }
0x13f6   :  { %2161 = vmatprep.subr.mxu1 %v2922_v52  ;;  %v2092_v33 = vpop.permute.xlu0 %2091  ;;  %2017 = vmatpush1.msra.mxu0 %v1914_v32 }
0x13f7   :  { %2162 = vmatpush1.msra.mxu1 %v2092_v33  ;;  %2018 = vmatprep.subr.mxu0 %v2922_v52 }
0x13f8   :  { %2163 = vmatprep.subr.mxu1 %v2922_v52  ;;  %2019 = vmatpush1.msra.mxu0 %v3648_v61 }
0x13f9   :  { %2164 = vmatpush1.msra.mxu1 %v3650_v62  ;;  %2020 = vmatprep.subr.mxu0 %v2922_v52  ;;  %v1956_v34 = vpop.permute.xlu1 %1955 }
0x13fa   :  { %2165 = vmatprep.subr.mxu1 %v2922_v52  ;;  %v2134_v37 = vpop.permute.xlu0 %2133  ;;  %2021 = vmatpush1.msra.mxu0 %v3660_v63 }
0x13fb   :  { %2166 = vmatpush1.msra.mxu1 %v3662_v0  ;;  %2022 = vmatprep.subr.mxu0 %v2922_v52 }
0x13fc   :  { %2167 = vmatprep.subr.mxu1 %v2922_v52  ;;  %2023 = vmatpush1.msra.mxu0 %v3620_v55 }
0x13fd   :  { %2168 = vmatpush1.msra.mxu1 %v3622_v56  ;;  %2024 = vmatprep.subr.mxu0 %v2922_v52  ;;  %v1952_v38 = vpop.permute.xlu1 %1951 }
0x13fe   :  { %2169 = vmatprep.subr.mxu1 %v2922_v52  ;;  %v2130_v39 = vpop.permute.xlu0 %2129  ;;  %2025 = vmatpush1.msra.mxu0 %v3636_v59 }
0x13ff   :  { %2170 = vmatpush1.msra.mxu1 %v3638_v60  ;;  %2050 = vmatprep.subr.mxu0 %v2922_v52 }
0x1400   :  { %2195 = vmatprep.subr.mxu1 %v2922_v52  ;;  %2051 = vmatpush2.msra.mxu0 %v1956_v34 }
0x1401   :  { %2196 = vmatpush2.msra.mxu1 %v2134_v37  ;;  %2052 = vmatprep.subr.mxu0 %v2922_v52  ;;  %v1954_v40 = vpop.permute.xlu1 %1953 }
0x1402   :  { %2197 = vmatprep.subr.mxu1 %v2922_v52  ;;  %v2132_v41 = vpop.permute.xlu0 %2131  ;;  %2053 = vmatpush2.msra.mxu0 %v1954_v40 }
0x1403   :  { %2198 = vmatpush2.msra.mxu1 %v2132_v41  ;;  %2054 = vmatprep.subr.mxu0 %v2922_v52 }
0x1404   :  { %2199 = vmatprep.subr.mxu1 %v2922_v52  ;;  %2055 = vmatpush2.msra.mxu0 %v1952_v38 }
0x1405   :  { %2200 = vmatpush2.msra.mxu1 %v2130_v39  ;;  %2056 = vmatprep.subr.mxu0 %v2922_v52  ;;  %v1950_v45 = vpop.permute.xlu1 %1949 }
0x1406   :  { %2201 = vmatprep.subr.mxu1 %v2922_v52  ;;  %v2128_v46 = vpop.permute.xlu0 %2127  ;;  %2057 = vmatpush2.msra.mxu0 %v1950_v45  ;;  %v1890_v52 = vld [vmem:[%s4034_s21 + $0x28] sm:$0xff] }
0x1407   :  { %2202 = vmatpush2.msra.mxu1 %v2128_v46  ;;  %2059 = vmatmul.mubr.f32.vlgmr.msra.gmra.mxu0 %v1885_v42 }
0x1408   :  { %2204 = vmatmul.mubr.f32.vlgmr.msra.gmra.mxu1 %v1885_v42  ;;  %2542 = vmatprep.mubr.msk.f32.mxu0 %vm1981_vm7, %v1888_v47 }
0x1409   :  { %2546 = vmatprep.mubr.msk.f32.mxu1 %vm1981_vm7, %v1888_v47 }
0x140b   :  { %2064 = vmatmul.mubr.f32.gmra.mxu0 %v1887_v17 }
0x140c   :  { %2209 = vmatmul.mubr.f32.gmra.mxu1 %v1887_v17  ;;  %2543 = vmatprep.mubr.msk.f32.mxu0 %vm1981_vm7, %v1890_v52 }
0x140d   :  { %2547 = vmatprep.mubr.msk.f32.mxu1 %vm1981_vm7, %v1890_v52 }
0x140f   :  { %2069 = vmatmul.mubr.f32.gmra.mxu0 %v1889_v18 }
0x1410   :  { %2214 = vmatmul.mubr.f32.gmra.mxu1 %v1889_v18  ;;  %2544 = vmatprep.mubr.msk.f32.mxu0 %vm1981_vm7, %v1892_v25 }
0x1411   :  { %2548 = vmatprep.mubr.msk.f32.mxu1 %vm1981_vm7, %v1892_v25 }
0x1412   :  { %v1964_v48 = vpop.permute.xlu1 %1963 }
0x1413   :  { %2074 = vmatmul.mubr.f32.gmra.mxu0 %v1891_v26  ;;  %v1969_v53 = vpop.permute.xlu0 %1968 }
0x1414   :  { %2219 = vmatmul.mubr.f32.gmra.mxu1 %v1891_v26 }
0x1416   :  { %v1974_v63 = vpop.permute.xlu1 %1973 }
0x1417   :  { %v1979_v11 = vpop.permute.xlu0 %1978 }
0x14c7   :  { %v2060_v49 = vpop.f32.mrf.mxu0 }
0x14c8   :  { %v2205_v50 = vpop.f32.mrf.mxu1  ;;  %v2061_v51 = vadd.f32 %v2060_v49, %v1964_v48 }
0x14c9   :  { %v2206_v35 = vadd.f32 %v2205_v50, %v1964_v48  ;;  %v2062_v36 = vpop.f32.mrf.mxu0 }
0x14ca   :  { %v2207_v43 = vpop.f32.mrf.mxu1  ;;  %v2079_v44 = vmax.f32 %v2061_v51, 0.0 }
0x14cb   :  { %v2224_v54 = vmax.f32 %v2206_v35, 0.0  ;;  %v2065_v55 = vpop.f32.mrf.mxu0 }
0x14cc   :  { %v2210_v56 = vpop.f32.mrf.mxu1  ;;  %v2066_v57 = vadd.f32 %v2065_v55, %v1969_v53  ;;  %v2228_v59 = vsel %vm1686_vm0, %v2079_v44, 0.0 }
0x14cd   :  { %v2211_v58 = vadd.f32 %v2210_v56, %v1969_v53  ;;  %v2244_v60 = vsel %vm1686_vm0, %v2224_v54, 0.0  ;;  %v2067_v61 = vpop.f32.mrf.mxu0  ;;  %2229 = vadd.xlane.f32.xlu1 %v2228_v59 }
0x14ce   :  { %v2212_v62 = vpop.f32.mrf.mxu1  ;;  %2245 = vadd.xlane.f32.xlu0 %v2244_v60  ;;  %v2080_v0 = vmax.f32 %v2066_v57, 0.0 }
0x14cf   :  { %v2225_v1 = vmax.f32 %v2211_v58, 0.0  ;;  %v2070_v3 = vpop.f32.mrf.mxu0 }
0x14d0   :  { %v2215_v4 = vpop.f32.mrf.mxu1  ;;  %v2071_v5 = vadd.f32 %v2070_v3, %v1974_v63  ;;  %v2231_v8 = vsel %vm1686_vm0, %v2080_v0, 0.0  ;;  %v1902_v3 = vld [vmem:[%s4037_s24 + $0x8] sm:$0xff] }
0x14d1   :  { %v2216_v6 = vadd.f32 %v2215_v4, %v1974_v63  ;;  %v2247_v7 = vsel %vm1686_vm0, %v2225_v1, 0.0  ;;  %v2072_v9 = vpop.f32.mrf.mxu0 }
0x14d2   :  { %v2217_v10 = vpop.f32.mrf.mxu1  ;;  %2248 = vadd.xlane.f32.xlu1 %v2247_v7  ;;  %2232 = vadd.xlane.f32.xlu0 %v2231_v8  ;;  %v2081_v12 = vmax.f32 %v2071_v5, 0.0 }
0x14d3   :  { %v2075_v13 = vpop.f32.mrf.mxu0  ;;  %v2226_v15 = vmax.f32 %v2216_v6, 0.0 }
0x14d4   :  { %v2220_v14 = vpop.f32.mrf.mxu1  ;;  %v2076_v16 = vadd.f32 %v2075_v13, %v1979_v11  ;;  %v2234_v19 = vsel %vm1686_vm0, %v2081_v12, 0.0 }
0x14d5   :  { %v2221_v2 = vadd.f32 %v2220_v14, %v1979_v11  ;;  %v2077_v20 = vpop.f32.mrf.mxu0  ;;  %v2250_v24 = vsel %vm1686_vm0, %v2226_v15, 0.0 }
0x14d6   :  { %2235 = vadd.xlane.f32.xlu0 %v2234_v19  ;;  %v2222_v21 = vpop.f32.mrf.mxu1  ;;  %v2082_v22 = vmax.f32 %v2076_v16, 0.0 }
0x14d7   :  { %v2227_v23 = vmax.f32 %v2221_v2, 0.0 }
0x14d8   :  { %v2237_v27 = vsel %vm1686_vm0, %v2082_v22, 0.0 }
0x14d9   :  { %2238 = vadd.xlane.f32.xlu1 %v2237_v27  ;;  %v2253_v28 = vsel %vm1686_vm0, %v2227_v23, 0.0 }
0x14da   :  { %2251 = vadd.xlane.f32.xlu0 %v2250_v24 }
0x14dd   :  { %2254 = vadd.xlane.f32.xlu1 %v2253_v28 }
0x1556   :  { %v2230_v29 = vpop.xlane.xlu1 %2229 }
0x1557   :  { %v2246_v30 = vpop.xlane.xlu0 %2245 }
0x1558   :  { %v2256_v31 = vadd.f32 %v2246_v30, %v2230_v29  ;;  %v1898_v30 = vld [vmem:[%s4036_s23 + $0x8] sm:$0xff] }
0x155a   :  { %v2260_v32 = vmul.f32 0.125, %v2256_v31 }
0x155b   :  { %v2249_v33 = vpop.xlane.xlu1 %2248  ;;  %v2233_v34 = vpop.xlane.xlu0 %2232 }
0x155c   :  { %v3802_v37 = vsub.f32 %v2079_v44, %v2260_v32  ;;  %v3804_v38 = vsub.f32 %v2224_v54, %v2260_v32  ;;  %v2257_v39 = vadd.f32 %v2249_v33, %v2233_v34  ;;  %v1899_v33 = vld [vmem:[%s4036_s23 + $0x10] sm:$0xff] }
0x155e   :  { %v2261_v40 = vmul.f32 0.125, %v2257_v39  ;;  %v2272_v41 = vmul.f32 %v3802_v37, %v3802_v37  ;;  %v2292_v17 = vmul.f32 %v3804_v38, %v3804_v38 }
0x155f   :  { %v2236_v42 = vpop.xlane.xlu0 %2235 }
0x1560   :  { %v3808_v45 = vsub.f32 %v2080_v0, %v2261_v40  ;;  %v3810_v46 = vsub.f32 %v2225_v1, %v2261_v40  ;;  %v2276_v47 = vsel %vm1686_vm0, %v2272_v41, 0.0  ;;  %v2296_v48 = vsel %vm1686_vm0, %v2292_v17, 0.0  ;;  %v1901_v1 = vld [vmem:[%s4037_s24] sm:$0xff]  ;;  %v1900_v40 = vld [vmem:[%s4036_s23 + $0x18] sm:$0xff] }
0x1561   :  { %2277 = vadd.xlane.f32.xlu0 %v2276_v47  ;;  %v1904_v17 = vld [vmem:[%s4037_s24 + $0x18] sm:$0xff] }
0x1562   :  { %v2273_v52 = vmul.f32 %v3808_v45, %v3808_v45  ;;  %v2239_v18 = vpop.xlane.xlu1 %2238  ;;  %v2293_v50 = vmul.f32 %v3810_v46, %v3810_v46 }
0x1563   :  { %v2252_v25 = vpop.xlane.xlu0 %2251 }
0x1564   :  { %v2258_v26 = vadd.f32 %v2252_v25, %v2236_v42  ;;  %v2279_v49 = vsel %vm1686_vm0, %v2273_v52, 0.0  ;;  %v2299_v44 = vsel %vm1686_vm0, %v2293_v50, 0.0  ;;  %v1903_v42 = vld [vmem:[%s4037_s24 + $0x10] sm:$0xff] }
0x1565   :  { %2297 = vadd.xlane.f32.xlu0 %v2296_v48  ;;  %2280 = vadd.xlane.f32.xlu1 %v2279_v49 }
0x1566   :  { %v2262_v51 = vmul.f32 0.125, %v2258_v26  ;;  %v2255_v35 = vpop.xlane.xlu1 %2254 }
0x1567   :  { %v2259_v53 = vadd.f32 %v2255_v35, %v2239_v18 }
0x1568   :  { %v3821_v36 = vsub.f32 %v2081_v12, %v2262_v51  ;;  %v3823_v43 = vsub.f32 %v2226_v15, %v2262_v51 }
0x1569   :  { %2300 = vadd.xlane.f32.xlu1 %v2299_v44  ;;  %v2263_v54 = vmul.f32 0.125, %v2259_v53 }
0x156a   :  { %v2274_v55 = vmul.f32 %v3821_v36, %v3821_v36  ;;  %v2294_v59 = vmul.f32 %v3823_v43, %v3823_v43 }
0x156b   :  { %v3828_v56 = vsub.f32 %v2082_v22, %v2263_v54  ;;  %v3830_v57 = vsub.f32 %v2227_v23, %v2263_v54  ;;  %v1897_v23 = vld [vmem:[%s4036_s23] sm:$0xff] }
0x156c   :  { %v2282_v58 = vsel %vm1686_vm0, %v2274_v55, 0.0  ;;  %v2302_v62 = vsel %vm1686_vm0, %v2294_v59, 0.0 }
0x156d   :  { %2283 = vadd.xlane.f32.xlu0 %v2282_v58  ;;  %v2275_v60 = vmul.f32 %v3828_v56, %v3828_v56  ;;  %v2295_v63 = vmul.f32 %v3830_v57, %v3830_v57 }
0x156f   :  { %v2285_v61 = vsel %vm1686_vm0, %v2275_v60, 0.0  ;;  %v2305_v0 = vsel %vm1686_vm0, %v2295_v63, 0.0 }
0x1570   :  { %2286 = vadd.xlane.f32.xlu1 %v2285_v61 }
0x1571   :  { %2303 = vadd.xlane.f32.xlu0 %v2302_v62 }
0x1574   :  { %2306 = vadd.xlane.f32.xlu1 %v2305_v0 }
0x1585   :  { %2354 = vperm.xlu1 %2865, %v1901_v1  }
0x1587   :  { %2359 = vperm.xlu0 %2864, %v1902_v3  }
0x15ea   :  { %v2278_v4 = vpop.xlane.xlu0 %2277 }
0x15ee   :  { %v2281_v5 = vpop.xlane.xlu1 %2280  ;;  %v2298_v6 = vpop.xlane.xlu0 %2297 }
0x15ef   :  { %v2308_v7 = vadd.f32 %v2298_v6, %v2278_v4 }
0x15f1   :  { %v2312_v8 = vmul.f32 0.125, %v2308_v7 }
0x15f2   :  { %v2301_v9 = vpop.xlane.xlu1 %2300 }
0x15f3   :  { %v2316_v10 = vadd.f32 1e-05, %v2312_v8  ;;  %v2309_v11 = vadd.f32 %v2301_v9, %v2281_v5 }
0x15f5   :  { %2874 = vrsqrt.f32 %v2316_v10  ;;  %v2313_v12 = vmul.f32 0.125, %v2309_v11 }
0x15f6   :  { %v2284_v13 = vpop.xlane.xlu0 %2283 }
0x15f7   :  { %v2317_v14 = vadd.f32 1e-05, %v2313_v12 }
0x15f9   :  { %2876 = vrsqrt.f32 %v2317_v14  ;;  %v2287_v15 = vpop.xlane.xlu1 %2286 }
0x15fa   :  { %v2304_v16 = vpop.xlane.xlu0 %2303 }
0x15fb   :  { %v2310_v2 = vadd.f32 %v2304_v16, %v2284_v13 }
0x15fd   :  { %v2314_v19 = vmul.f32 0.125, %v2310_v2  ;;  %v2307_v20 = vpop.xlane.xlu1 %2306 }
0x15fe   :  { %v2311_v22 = vadd.f32 %v2307_v20, %v2287_v15 }
0x15ff   :  { %v2318_v21 = vadd.f32 1e-05, %v2314_v19 }
0x1600   :  { %v2315_v24 = vmul.f32 0.125, %v2311_v22 }
0x1601   :  { %2878 = vrsqrt.f32 %v2318_v21  ;;  %v2355_v18 = vpop.permute.xlu1 %2354 }
0x1602   :  { %v2875_v27 = vpop.eup %2874  ;;  %v2319_v28 = vadd.f32 1e-05, %v2315_v24  ;;  %v2360_v52 = vpop.permute.xlu0 %2359 }
0x1603   :  { %v2324_v29 = vmul.f32 %v2875_v27, %v1897_v23 }
0x1604   :  { %2880 = vrsqrt.f32 %v2319_v28 }
0x1605   :  { %2330 = vperm.xlu0 %2864, %v2324_v29  }
0x1606   :  { %v2877_v31 = vpop.eup %2876 }
0x1607   :  { %v2325_v32 = vmul.f32 %v2877_v31, %v1898_v30 }
0x1609   :  { %2335 = vperm.xlu1 %2865, %v2325_v32  }
0x160e   :  { %v2879_v34 = vpop.eup %2878 }
0x160f   :  { %v2326_v39 = vmul.f32 %v2879_v34, %v1899_v33 }
0x1611   :  { %2340 = vperm.xlu1 %2865, %v2326_v39   ;;  %v2881_v41 = vpop.eup %2880 }
0x1612   :  { %v2327_v47 = vmul.f32 %v2881_v41, %v1900_v40 }
0x1614   :  { %2345 = vperm.xlu0 %2864, %v2327_v47  }
0x1615   :  { %2364 = vperm.xlu1 %2865, %v1903_v42  }
0x1618   :  { %2369 = vperm.xlu0 %2864, %v1904_v17  }
0x1680   :  { %v2331_v25 = vpop.permute.xlu0 %2330 }
0x1681   :  { %v2348_v26 = vmul.f32 %v2331_v25, %v3802_v37  ;;  %v2380_v48 = vmul.f32 %v2331_v25, %v3804_v38 }
0x1683   :  { %v2372_v49 = vadd.f32 %v2355_v18, %v2348_v26  ;;  %v2384_v50 = vadd.f32 %v2380_v48, %v2355_v18 }
0x1684   :  { %v2336_v51 = vpop.permute.xlu1 %2335 }
0x1685   :  { %2376 = vst.msk [vmem:[%s4041_s28] sm:$0xff] %vm1686_vm0, %v2372_v49  ;;  %2549 = vst.msk [vmem:[%s4041_s28 + $0x20] sm:$0xff] %vm1686_vm0, %v2384_v50  ;;  %v2349_v35 = vmul.f32 %v2336_v51, %v3808_v45  ;;  %v2381_v53 = vmul.f32 %v2336_v51, %v3810_v46 }
0x1687   :  { %v2373_v37 = vadd.f32 %v2360_v52, %v2349_v35  ;;  %v2385_v44 = vadd.f32 %v2381_v53, %v2360_v52 }
0x1689   :  { %2377 = vst.msk [vmem:[%s4041_s28 + $0x8] sm:$0xff] %vm1686_vm0, %v2373_v37  ;;  %2550 = vst.msk [vmem:[%s4041_s28 + $0x28] sm:$0xff] %vm1686_vm0, %v2385_v44 }
0x168c   :  { %v2341_v38 = vpop.permute.xlu1 %2340  ;;  %v2393_v63 = vld [vmem:[%s4041_s28] sm:$0xff] }
0x168d   :  { %v2350_v54 = vmul.f32 %v2341_v38, %v3821_v36  ;;  %v2382_v55 = vmul.f32 %v2341_v38, %v3823_v43  ;;  %2409 = vrot.lane.b32.xlu0 %v2393_v63, %s2929_s3  ;;  %v2397_v3 = vld [vmem:[%s4041_s28 + $0x20] sm:$0xff] }
0x168f   :  { %v2346_v58 = vpop.permute.xlu0 %2345 }
0x1690   :  { %v2365_v45 = vpop.permute.xlu1 %2364  ;;  %v2351_v60 = vmul.f32 %v2346_v58, %v3828_v56  ;;  %v2383_v36 = vmul.f32 %v2346_v58, %v3830_v57  ;;  %v2394_v57 = vld [vmem:[%s4041_s28 + $0x8] sm:$0xff] }
0x1691   :  { %v2374_v46 = vadd.f32 %v2365_v45, %v2350_v54  ;;  %v2386_v59 = vadd.f32 %v2382_v55, %v2365_v45  ;;  %2411 = vrot.lane.b32.xlu0 %v2394_v57, %s2929_s3  ;;  %v2398_v1 = vld [vmem:[%s4041_s28 + $0x28] sm:$0xff] }
0x1693   :  { %2378 = vst.msk [vmem:[%s4041_s28 + $0x10] sm:$0xff] %vm1686_vm0, %v2374_v46  ;;  %2551 = vst.msk [vmem:[%s4041_s28 + $0x30] sm:$0xff] %vm1686_vm0, %v2386_v59  ;;  %v2370_v61 = vpop.permute.xlu0 %2369 }
0x1694   :  { %v2375_v43 = vadd.f32 %v2370_v61, %v2351_v60  ;;  %v2387_v62 = vadd.f32 %v2383_v36, %v2370_v61 }
0x1695   :  { %2417 = vrot.lane.b32.xlu0 %v2397_v3, %s2929_s3 }
0x1696   :  { %2379 = vst.msk [vmem:[%s4041_s28 + $0x18] sm:$0xff] %vm1686_vm0, %v2375_v43  ;;  %2552 = vst.msk [vmem:[%s4041_s28 + $0x38] sm:$0xff] %vm1686_vm0, %v2387_v62 }
0x169a   :  { %v2395_v56 = vld [vmem:[%s4041_s28 + $0x10] sm:$0xff] }
0x169b   :  { %2413 = vrot.lane.b32.xlu1 %v2395_v56, %s2929_s3  ;;  %v2399_v5 = vld [vmem:[%s4041_s28 + $0x30] sm:$0xff] }
0x169c   :  { %2421 = vrot.lane.b32.xlu0 %v2399_v5, %s2929_s3 }
0x169d   :  { %v2396_v0 = vld [vmem:[%s4041_s28 + $0x18] sm:$0xff] }
0x169e   :  { %v2400_v4 = vld [vmem:[%s4041_s28 + $0x38] sm:$0xff]  ;;  %s2930_s28 = smov [#allocation2]  }
0x169f   :  { %2415 = vrot.lane.b32.xlu1 %v2396_v0, %s2929_s3  ;;  %s2498_s4 = sshll.u32 %s2930_s28, 4  ;;  %s2499_s4 = int_to_ptr.vmem [resolvable:$true] %s2498_s4 }
0x16a0   :  { %s2882_s19 = scalar_lea.vmem %s2499_s4, 256  ;;  %p2887_p1 = scmp.lt.s32.totalorder %s2499_s4, %s2499_s4 }
0x16a1   :  { %p2883_p0 = scmp.ne.s32.totalorder %s2499_s4, %s2882_s19  ;;  %p2888_p2 = scmp.lt.s32.totalorder %s2882_s19, %s2882_s19 }
0x16a3   :  { %2419 = vrot.lane.b32.xlu1 %v2398_v1, %s2929_s3  ;;  %p2889_p3 = por %p2888_p2, %p2887_p1 }
0x16a5   :  { %p2890_p4 = pnand %p2889_p3, %p2883_p0 }
0x16a7   :  { %2423 = vrot.lane.b32.xlu1 %v2400_v4, %s2929_s3 }
0x16ff   :  { %v2410_v6 = vpop.permute.xlu0 %2409 }
0x1700   :  { %v2433_v8 = vmax.f32 %v2393_v63, %v2410_v6 }
0x1702   :  { %2442 = vst.msk [vmem:[%s4038_s25] sm:$0xff] %vm2441_vm8, %v2433_v8  ;;  %2458 = vrot.lane.b32.xlu0 %v2433_v8, %s2929_s3 }
0x1703   :  { %v2412_v10 = vpop.permute.xlu0 %2411 }
0x1704   :  { %v2434_v12 = vmax.f32 %v2394_v57, %v2412_v10 }
0x1706   :  { %2443 = vst.msk [vmem:[%s4038_s25 + $0x8] sm:$0xff] %vm2441_vm8, %v2434_v12  ;;  %2460 = vrot.lane.b32.xlu1 %v2434_v12, %s2929_s3 }
0x1707   :  { %v2418_v15 = vpop.permute.xlu0 %2417 }
0x170d   :  { %v2414_v7 = vpop.permute.xlu1 %2413 }
0x170e   :  { %v2435_v9 = vmax.f32 %v2395_v56, %v2414_v7 }
0x1710   :  { %2444 = vst.msk [vmem:[%s4038_s25 + $0x10] sm:$0xff] %vm2441_vm8, %v2435_v9  ;;  %2462 = vrot.lane.b32.xlu0 %v2435_v9, %s2929_s3 }
0x1711   :  { %v2416_v11 = vpop.permute.xlu1 %2415 }
0x1712   :  { %v2436_v13 = vmax.f32 %v2396_v0, %v2416_v11 }
0x1714   :  { %2445 = vst.msk [vmem:[%s4038_s25 + $0x18] sm:$0xff] %vm2441_vm8, %v2436_v13 }
0x1715   :  { %v2420_v14 = vpop.permute.xlu1 %2419 }
0x1716   :  { %2893 = shalt.err (!%p2890_p4)
}
0x1717   :  { %s2931_s20 = smov 128   ;;  %s2932_s30 = smov 8   ;;  %v2438_v16 = vmax.f32 %v2398_v1, %v2420_v14  ;;  %v2437_v2 = vmax.f32 %v2397_v3, %v2418_v15  ;;  %2464 = vrot.lane.b32.xlu1 %v2436_v13, %s2929_s3  ;;  %v2422_v20 = vpop.permute.xlu0 %2421  ;;  %vm2482_vm9 = vcmask 15368  }
0x1718   :  { %2504 = dma.vmem_to_hbm [thread:$0]  %s2499_s4, 256, %s4039_s26, [#allocation3], %s2931_s20, %s2931_s20, %s2932_s30   ;;  %v2439_v22 = vmax.f32 %v2399_v5, %v2422_v20 }
0x1719   :  { %2447 = vst.msk [vmem:[%s4038_s25 + $0x28] sm:$0xff] %vm2441_vm8, %v2438_v16  ;;  %2446 = vst.msk [vmem:[%s4038_s25 + $0x20] sm:$0xff] %vm2441_vm8, %v2437_v2  ;;  %2466 = vrot.lane.b32.xlu0 %v2437_v2, %s2929_s3  ;;  %v2424_v19 = vpop.permute.xlu1 %2423 }
0x171a   :  { %v2440_v21 = vmax.f32 %v2400_v4, %v2424_v19  ;;  %2448 = vst.msk [vmem:[%s4038_s25 + $0x30] sm:$0xff] %vm2441_vm8, %v2439_v22 }
0x171b   :  { %2468 = vrot.lane.b32.xlu1 %v2438_v16, %s2929_s3 }
0x171c   :  { %2449 = vst.msk [vmem:[%s4038_s25 + $0x38] sm:$0xff] %vm2441_vm8, %v2440_v21 }
0x171d   :  { %2470 = vrot.lane.b32.xlu0 %v2439_v22, %s2929_s3 }
0x171f   :  { %2472 = vrot.lane.b32.xlu1 %v2440_v21, %s2929_s3 }
0x1774   :  { %v2459_v23 = vpop.permute.xlu0 %2458 }
0x1775   :  { %2483 = vst.msk [vmem:[%s4038_s25] sm:$0xff] %vm2482_vm9, %v2459_v23 }
0x1778   :  { %v2461_v24 = vpop.permute.xlu1 %2460 }
0x1779   :  { %2484 = vst.msk [vmem:[%s4038_s25 + $0x8] sm:$0xff] %vm2482_vm9, %v2461_v24 }
0x1782   :  { %v2463_v27 = vpop.permute.xlu0 %2462 }
0x1783   :  { %2485 = vst.msk [vmem:[%s4038_s25 + $0x10] sm:$0xff] %vm2482_vm9, %v2463_v27 }
0x1789   :  { %v2465_v28 = vpop.permute.xlu1 %2464 }
0x178a   :  { %2486 = vst.msk [vmem:[%s4038_s25 + $0x18] sm:$0xff] %vm2482_vm9, %v2465_v28 }
0x178b   :  { %v2467_v29 = vpop.permute.xlu0 %2466 }
0x178c   :  { %2487 = vst.msk [vmem:[%s4038_s25 + $0x20] sm:$0xff] %vm2482_vm9, %v2467_v29 }
0x178d   :  { %v2469_v30 = vpop.permute.xlu1 %2468 }
0x178e   :  { %2488 = vst.msk [vmem:[%s4038_s25 + $0x28] sm:$0xff] %vm2482_vm9, %v2469_v30 }
0x178f   :  { %v2471_v31 = vpop.permute.xlu0 %2470 }
0x1790   :  { %2489 = vst.msk [vmem:[%s4038_s25 + $0x30] sm:$0xff] %vm2482_vm9, %v2471_v31 }
0x1791   :  { %v2473_v32 = vpop.permute.xlu1 %2472 }
0x1792   :  { %2490 = vst.msk [vmem:[%s4038_s25 + $0x38] sm:$0xff] %vm2482_vm9, %v2473_v32 }
0x1793   :  { %2902 = dma.done.wait [#allocation3], 256  }
0x1794   :  { %2903 = vsyncadd [#allocation3], 4294967040 }
0x1795   :  { %2518 = vsyncpa [#allocation3], 1 }

</bundles_post_ra>
